<compile_context>
chip_gen: v6e
topology: v6e:2x2x1
jax: 0.10.0
libtpu: 0.0.40
codegen_flags: <defaults>
</compile_context>

<pallas_src>
import jax
import jax.numpy as jnp
from jax import lax
from jax.experimental import pallas as pl
from jax.experimental.pallas import tpu as pltpu


# ---------------------------------------------------------------------------
# Fused kernel: BN1 -> conv3x3(s=1,p=1) -> PReLU -> conv3x3(stride,p=1) -> BN2
#               -> SE(pool, fc1, relu, fc2, sigmoid, scale) -> shortcut(+BN) -> add
# One batch element per grid step; the whole image lives in VMEM scratch.
# ---------------------------------------------------------------------------
def _make_kernel(H, W, Cin, D, Ho, Wo, stride, identity_shortcut):

    def kernel(*refs):
        # ---- unpack refs (signature depends on stride / shortcut type) ----
        if stride == 1:
            (x_ref, s1_ref, b1_ref, w1_ref, alpha_ref, w2_ref,
             s2_ref, b2_ref, wfc1_ref, wfc2_ref) = refs[:10]
            rest = refs[10:]
        else:
            (xe_ref, xo_ref, s1_ref, b1_ref, w1_ref, alpha_ref, w2_ref,
             s2_ref, b2_ref, wfc1_ref, wfc2_ref) = refs[:11]
            rest = refs[11:]
        if identity_shortcut:
            out_ref = rest[0]
            scratch = rest[1:]
        else:
            wsc_ref, ssc_ref, bsc_ref, out_ref = rest[:4]
            scratch = rest[4:]

        mxu = w1_ref.dtype                 # bf16 (default) or f32; accumulation stays f32
        s1 = s1_ref[...]
        b1 = b1_ref[...]
        alpha = alpha_ref[...]

        if stride == 1:
            # ---------------------------- stride-1 path ----------------------------
            pad1_ref, pad2_ref, acc1_ref, acc2_ref = scratch
            x = x_ref[...]                                        # (H, W, Cin) f32
            xb = (x * s1 + b1).astype(mxu)                        # BN1, cast once for the MXU

            # Padded BN1 image.  Left/right halo columns are folded into the interior slab
            # write; only top/bottom halo rows are zeroed (re-zeroed each step so the
            # 'parallel' batch axis stays safe when split across TensorCores).
            zrow = jnp.zeros((W + 2, Cin), mxu)
            zcol = jnp.zeros((H, 1, Cin), mxu)
            pad1_ref[0] = zrow
            pad1_ref[H + 1] = zrow
            pad1_ref[1:H + 1] = jnp.concatenate([zcol, xb, zcol], axis=1)

            # Conv1 3x3 s=1 p=1: dx taps fused along K -> 3 dots of K=3*Cin (vs 9 of K=Cin).
            for dy in range(3):
                lhs = jnp.concatenate(
                    [pad1_ref[dy:dy + H, 0:W],
                     pad1_ref[dy:dy + H, 1:W + 1],
                     pad1_ref[dy:dy + H, 2:W + 2]], axis=-1).reshape(H * W, 3 * Cin)
                term = jnp.dot(lhs, w1_ref[dy], preferred_element_type=jnp.float32)
                if dy == 0:
                    acc1_ref[...] = term
                else:
                    acc1_ref[...] += term

            # PReLU (f32), stored padded in the MXU dtype for conv2.
            a1 = acc1_ref[...]
            y = jnp.where(a1 > 0, a1, a1 * alpha).astype(mxu).reshape(H, W, D)
            zrow_d = jnp.zeros((W + 2, D), mxu)
            zcol_d = jnp.zeros((H, 1, D), mxu)
            pad2_ref[0] = zrow_d
            pad2_ref[H + 1] = zrow_d
            pad2_ref[1:H + 1] = jnp.concatenate([zcol_d, y, zcol_d], axis=1)

            # Conv2 3x3 s=1 p=1: same K-fused structure (3 dots of K=3*D).
            for dy in range(3):
                lhs = jnp.concatenate(
                    [pad2_ref[dy:dy + H, 0:W],
                     pad2_ref[dy:dy + H, 1:W + 1],
                     pad2_ref[dy:dy + H, 2:W + 2]], axis=-1).reshape(H * W, 3 * D)
                term = jnp.dot(lhs, w2_ref[dy], preferred_element_type=jnp.float32)
                if dy == 0:
                    acc2_ref[...] = term
                else:
                    acc2_ref[...] += term

            xs = x.reshape(H * W, Cin)                            # MaxPool2d(1, 1) == identity

        else:
            # ---------------------------- stride-2 path ----------------------------
            (p1e_ref, p1o_ref, p2e_ref, p2o_ref,
             acc1e_ref, acc1o_ref, acc2_ref) = scratch
            xe = xe_ref[...]                                      # (H, Wo, Cin) even input cols
            xo = xo_ref[...]                                      # (H, Wo, Cin) odd  input cols
            xbe = (xe * s1 + b1).astype(mxu)
            xbo = (xo * s1 + b1).astype(mxu)

            # Column-parity-split padded BN1 image (P = zero-padded BN1(x)):
            #   p1e[i, j] = P[i, 2j]     -> [zero col, odd input cols]   (Wo+1 cols)
            #   p1o[i, j] = P[i, 2j + 1] -> [even input cols, zero col]  (Wo+1 cols)
            zrow = jnp.zeros((Wo + 1, Cin), mxu)
            zcol = jnp.zeros((H, 1, Cin), mxu)
            p1e_ref[0] = zrow
            p1e_ref[H + 1] = zrow
            p1o_ref[0] = zrow
            p1o_ref[H + 1] = zrow
            p1e_ref[1:H + 1] = jnp.concatenate([zcol, xbo], axis=1)
            p1o_ref[1:H + 1] = jnp.concatenate([xbe, zcol], axis=1)

            # Conv1 3x3 s=1 p=1, produced parity-split (even/odd output columns) so the
            # strided conv2 below only reads contiguous slices.  dx taps fused along K:
            # 2 parities x 3 dy = 6 dots of K=3*Cin.
            for dy in range(3):
                e = p1e_ref[dy:dy + H]                            # (H, Wo+1, Cin)
                o = p1o_ref[dy:dy + H]
                lhs_e = jnp.concatenate(
                    [e[:, 0:Wo], o[:, 0:Wo], e[:, 1:Wo + 1]], axis=-1
                ).reshape(H * Wo, 3 * Cin)
                lhs_o = jnp.concatenate(
                    [o[:, 0:Wo], e[:, 1:Wo + 1], o[:, 1:Wo + 1]], axis=-1
                ).reshape(H * Wo, 3 * Cin)
                te = jnp.dot(lhs_e, w1_ref[dy], preferred_element_type=jnp.float32)
                to = jnp.dot(lhs_o, w1_ref[dy], preferred_element_type=jnp.float32)
                if dy == 0:
                    acc1e_ref[...] = te
                    acc1o_ref[...] = to
                else:
                    acc1e_ref[...] += te
                    acc1o_ref[...] += to

            # PReLU (f32), then store the conv1 output parity-split + padded:
            #   p2e[i, j] = Q[i, 2j]     -> [zero col, odd conv1 cols]   (Wo+1 cols)
            #   p2o[i, j] = Q[i, 2j + 1] -> [even conv1 cols]            (Wo   cols)
            a_e = acc1e_ref[...]
            a_o = acc1o_ref[...]
            y_e = jnp.where(a_e > 0, a_e, a_e * alpha).astype(mxu).reshape(H, Wo, D)
            y_o = jnp.where(a_o > 0, a_o, a_o * alpha).astype(mxu).reshape(H, Wo, D)
            zrow_e = jnp.zeros((Wo + 1, D), mxu)
            zrow_o = jnp.zeros((Wo, D), mxu)
            zcol_d = jnp.zeros((H, 1, D), mxu)
            p2e_ref[0] = zrow_e
            p2e_ref[H + 1] = zrow_e
            p2o_ref[0] = zrow_o
            p2o_ref[H + 1] = zrow_o
            p2e_ref[1:H + 1] = jnp.concatenate([zcol_d, y_o], axis=1)
            p2o_ref[1:H + 1] = y_e

            # Conv2 3x3 stride=2 p=1 at the TRUE stride: the dy-row subsample is a free
            # leading-dim reshape; the dx taps are contiguous parity-split slices fused
            # along K -> 3 dots of K=3*D.  No strided / gathered VMEM access anywhere.
            for dy in range(3):
                e = p2e_ref[dy:dy + H].reshape(Ho, 2, Wo + 1, D)[:, 0]   # rows dy, dy+2, ...
                o = p2o_ref[dy:dy + H].reshape(Ho, 2, Wo, D)[:, 0]
                lhs = jnp.concatenate(
                    [e[:, 0:Wo], o, e[:, 1:Wo + 1]], axis=-1
                ).reshape(Ho * Wo, 3 * D)
                term = jnp.dot(lhs, w2_ref[dy], preferred_element_type=jnp.float32)
                if dy == 0:
                    acc2_ref[...] = term
                else:
                    acc2_ref[...] += term

            # Shortcut subsample x[::2, ::2]: even rows of the even-column input buffer.
            xs = xe.reshape(Ho, 2, Wo, Cin)[:, 0].reshape(Ho * Wo, Cin)

        # ----------------------------- common tail -----------------------------
        # BatchNorm2d(depth), inference mode (f32).
        r = acc2_ref[...] * s2_ref[...] + b2_ref[...]             # (Ho*Wo, D)

        # SEModule: global average pool -> fc1 -> ReLU -> fc2 -> sigmoid -> scale (f32).
        pooled = jnp.sum(r, axis=0, keepdims=True) * (1.0 / (Ho * Wo))   # (1, D)
        z = jnp.maximum(jnp.dot(pooled, wfc1_ref[...],
                                preferred_element_type=jnp.float32), 0.0)
        z = jnp.dot(z, wfc2_ref[...], preferred_element_type=jnp.float32)
        r = r * jax.nn.sigmoid(z)

        # Shortcut branch + residual add.
        if identity_shortcut:
            out = r + xs                      # MaxPool2d(1, stride) == pure subsample
        else:
            sc = jnp.dot(xs.astype(mxu), wsc_ref[...],
                         preferred_element_type=jnp.float32)
            out = r + (sc * ssc_ref[...] + bsc_ref[...])
        out_ref[...] = out                    # one (Ho*Wo, D) slab store

    return kernel


# ---------------------------------------------------------------------------
# Glue
# ---------------------------------------------------------------------------
def _fold_bn(gamma, beta, mean, var, eps=1e-5):
    scale = gamma / jnp.sqrt(var + eps)
    return scale, beta - mean * scale


def bottleneck_ir_se_forward(x_nhwc, p, in_channel, depth, stride,
                             mxu_dtype=jnp.bfloat16):
    """NHWC forward of bottleneck_IR_SE.  Matmul operands (and the padded conv scratches)
    are kept in `mxu_dtype` (bf16 recommended on v6e/v7x); accumulation and all
    elementwise math stay f32."""
    N, H, W, Cin = x_nhwc.shape
    assert Cin == in_channel
    assert stride in (1, 2)
    if stride == 2:
        assert H % 2 == 0 and W % 2 == 0, "stride-2 path assumes even H, W"
    D = depth
    Ho = (H - 1) // stride + 1
    Wo = (W - 1) // stride + 1
    Dr = D // 16
    identity = (in_channel == depth)

    s1, b1 = _fold_bn(p["bn1_g"], p["bn1_b"], p["bn1_rm"], p["bn1_rv"])
    s2, b2 = _fold_bn(p["bn2_g"], p["bn2_b"], p["bn2_rm"], p["bn2_rv"])
    # OIHW -> per-dy, dx-K-fused (3, 3*Cin, Cout)
    w1 = jnp.transpose(p["conv1_w"], (2, 3, 1, 0)).reshape(3, 3 * Cin, D).astype(mxu_dtype)
    w2 = jnp.transpose(p["conv2_w"], (2, 3, 1, 0)).reshape(3, 3 * D, D).astype(mxu_dtype)
    alpha = p["prelu_w"].reshape(1, D)
    wfc1 = p["se_fc1_w"].T                       # (D, D//16), kept f32 (tiny)
    wfc2 = p["se_fc2_w"].T                       # (D//16, D), kept f32 (tiny)

    if stride == 1:
        x_args = [x_nhwc]
        x_specs = [pl.BlockSpec((None, H, W, Cin), lambda n: (n, 0, 0, 0))]
    else:
        # Column-parity split done once in the wrapper (XLA-level) so the kernel never
        # issues a strided load.
        xe = x_nhwc[:, :, 0::2, :]
        xo = x_nhwc[:, :, 1::2, :]
        x_args = [xe, xo]
        x_specs = [pl.BlockSpec((None, H, Wo, Cin), lambda n: (n, 0, 0, 0)),
                   pl.BlockSpec((None, H, Wo, Cin), lambda n: (n, 0, 0, 0))]

    args = x_args + [s1.reshape(1, Cin), b1.reshape(1, Cin), w1, alpha, w2,
                     s2.reshape(1, D), b2.reshape(1, D), wfc1, wfc2]
    in_specs = x_specs + [
        pl.BlockSpec((1, Cin), lambda n: (0, 0)),
        pl.BlockSpec((1, Cin), lambda n: (0, 0)),
        pl.BlockSpec((3, 3 * Cin, D), lambda n: (0, 0, 0)),
        pl.BlockSpec((1, D), lambda n: (0, 0)),
        pl.BlockSpec((3, 3 * D, D), lambda n: (0, 0, 0)),
        pl.BlockSpec((1, D), lambda n: (0, 0)),
        pl.BlockSpec((1, D), lambda n: (0, 0)),
        pl.BlockSpec((D, Dr), lambda n: (0, 0)),
        pl.BlockSpec((Dr, D), lambda n: (0, 0)),
    ]
    if not identity:
        ssc, bsc = _fold_bn(p["sc_bn_g"], p["sc_bn_b"], p["sc_bn_rm"], p["sc_bn_rv"])
        args += [p["sc_conv_w"].T.astype(mxu_dtype),             # (Cin, D)
                 ssc.reshape(1, D), bsc.reshape(1, D)]
        in_specs += [pl.BlockSpec((Cin, D), lambda n: (0, 0)),
                     pl.BlockSpec((1, D), lambda n: (0, 0)),
                     pl.BlockSpec((1, D), lambda n: (0, 0))]

    if stride == 1:
        scratch = [
            pltpu.VMEM((H + 2, W + 2, Cin), mxu_dtype),   # padded BN1(x)
            pltpu.VMEM((H + 2, W + 2, D), mxu_dtype),     # padded PReLU(conv1)
            pltpu.VMEM((H * W, D), jnp.float32),          # conv1 accumulator
            pltpu.VMEM((H * W, D), jnp.float32),          # conv2 accumulator
        ]
    else:
        scratch = [
            pltpu.VMEM((H + 2, Wo + 1, Cin), mxu_dtype),  # padded BN1(x), even padded cols
            pltpu.VMEM((H + 2, Wo + 1, Cin), mxu_dtype),  # padded BN1(x), odd  padded cols
            pltpu.VMEM((H + 2, Wo + 1, D), mxu_dtype),    # padded PReLU(conv1), even cols
            pltpu.VMEM((H + 2, Wo, D), mxu_dtype),        # padded PReLU(conv1), odd  cols
            pltpu.VMEM((H * Wo, D), jnp.float32),         # conv1 accumulator (even out cols)
            pltpu.VMEM((H * Wo, D), jnp.float32),         # conv1 accumulator (odd  out cols)
            pltpu.VMEM((Ho * Wo, D), jnp.float32),        # conv2 accumulator
        ]

    kernel = _make_kernel(H, W, Cin, D, Ho, Wo, stride, identity)

    out_flat = pl.pallas_call(
        kernel,
        out_shape=jax.ShapeDtypeStruct((N, Ho * Wo, D), jnp.float32),
        grid=(N,),
        in_specs=in_specs,
        out_specs=pl.BlockSpec((None, Ho * Wo, D), lambda n: (n, 0, 0)),
        scratch_shapes=scratch,
        compiler_params=pltpu.CompilerParams(dimension_semantics=("parallel",)),
    )(*args)
    return out_flat.reshape(N, Ho, Wo, D)


# ---------------------------------------------------------------------------
# Deterministic parameter init (shapes per bottleneck_IR_SE.__init__)
# ---------------------------------------------------------------------------
def init_params(key, in_channel, depth, reduction=16):
    ks = jax.random.split(key, 8)

    def normal(k, shape, scale=0.1):
        return scale * jax.random.normal(k, shape, jnp.float32)

    def bn(k, c):
        k1, k2, k3, k4 = jax.random.split(k, 4)
        return dict(g=jax.random.uniform(k1, (c,), jnp.float32, 0.5, 1.5),
                    b=normal(k2, (c,)),
                    rm=normal(k3, (c,)),
                    rv=jax.random.uniform(k4, (c,), jnp.float32, 0.5, 1.5))

    bn1, bn2, bns = bn(ks[0], in_channel), bn(ks[1], depth), bn(ks[2], depth)
    return {
        "bn1_g": bn1["g"], "bn1_b": bn1["b"], "bn1_rm": bn1["rm"], "bn1_rv": bn1["rv"],
        "conv1_w": normal(ks[3], (depth, in_channel, 3, 3)),
        "prelu_w": jnp.full((depth,), 0.25, jnp.float32),
        "conv2_w": normal(ks[4], (depth, depth, 3, 3)),
        "bn2_g": bn2["g"], "bn2_b": bn2["b"], "bn2_rm": bn2["rm"], "bn2_rv": bn2["rv"],
        "se_fc1_w": normal(ks[5], (depth // reduction, depth)),
        "se_fc2_w": normal(ks[6], (depth, depth // reduction)),
        "sc_conv_w": normal(ks[7], (depth, in_channel)),
        "sc_bn_g": bns["g"], "sc_bn_b": bns["b"], "sc_bn_rm": bns["rm"], "sc_bn_rv": bns["rv"],
    }


# ---------------------------------------------------------------------------
# Pure-JAX NCHW reference (mirrors the PyTorch forward, eval-mode BN).
# `conv_dtype` lets us build a reference whose conv operands are rounded to bf16
# exactly like the kernel's MXU path (accumulation stays f32; SE FCs stay f32).
# ---------------------------------------------------------------------------
def ref_forward_nchw(x, p, in_channel, depth, stride, conv_dtype=jnp.float32):
    eps = 1e-5
    dn = ("NCHW", "OIHW", "NCHW")

    def bn(v, g, b, rm, rv):
        return ((v - rm[None, :, None, None]) / jnp.sqrt(rv[None, :, None, None] + eps)
                * g[None, :, None, None] + b[None, :, None, None])

    def conv(v, w, strides, padding):
        return lax.conv_general_dilated(v.astype(conv_dtype), w.astype(conv_dtype),
                                        strides, padding, dimension_numbers=dn,
                                        preferred_element_type=jnp.float32)

    y = bn(x, p["bn1_g"], p["bn1_b"], p["bn1_rm"], p["bn1_rv"])
    y = conv(y, p["conv1_w"], (1, 1), ((1, 1), (1, 1)))
    a = p["prelu_w"][None, :, None, None]
    y = jnp.where(y > 0, y, y * a)
    y = conv(y, p["conv2_w"], (stride, stride), ((1, 1), (1, 1)))
    y = bn(y, p["bn2_g"], p["bn2_b"], p["bn2_rm"], p["bn2_rv"])
    pooled = jnp.mean(y, axis=(2, 3), keepdims=True)
    z = lax.conv_general_dilated(pooled, p["se_fc1_w"][:, :, None, None], (1, 1), "VALID",
                                 dimension_numbers=dn)
    z = jnp.maximum(z, 0.0)
    z = lax.conv_general_dilated(z, p["se_fc2_w"][:, :, None, None], (1, 1), "VALID",
                                 dimension_numbers=dn)
    res = y * jax.nn.sigmoid(z)
    if in_channel == depth:
        shortcut = x[:, :, ::stride, ::stride]
    else:
        sc = conv(x, p["sc_conv_w"][:, :, None, None], (stride, stride), "VALID")
        shortcut = bn(sc, p["sc_bn_g"], p["sc_bn_b"], p["sc_bn_rm"], p["sc_bn_rv"])
    return res + shortcut


if __name__ == "__main__":
    # (N, in_channel, depth, H, W, stride): exercise conv-BN vs identity (MaxPool) shortcut
    # and both the strided (parity-split) and stride-1 conv2 paths.
    configs = [
        (2, 16, 32, 16, 16, 2),   # conv+BN shortcut, strided conv2
        (2, 32, 32, 16, 16, 2),   # identity shortcut, strided conv2
        (2, 16, 32, 8, 8, 1),     # conv+BN shortcut, stride-1 conv2
        (2, 32, 32, 8, 8, 1),     # identity shortcut, stride-1 conv2
    ]
    key = jax.random.PRNGKey(0)
    for idx, (N, Cin, D, H, W, stride) in enumerate(configs):
        kx, kp, key = jax.random.split(key, 3)
        x_nchw = jax.random.normal(kx, (N, Cin, H, W), jnp.float32)
        params = init_params(kp, Cin, D)
        x_nhwc = jnp.transpose(x_nchw, (0, 2, 3, 1))

        # Full-precision MXU path: must match the f32 reference tightly.
        out = bottleneck_ir_se_forward(x_nhwc, params, Cin, D, stride,
                                       mxu_dtype=jnp.float32)
        out = jnp.transpose(out, (0, 3, 1, 2))
        jax.block_until_ready(out)
        ref32 = ref_forward_nchw(x_nchw, params, Cin, D, stride, conv_dtype=jnp.float32)
        err32 = float(jnp.max(jnp.abs(out - ref32)))
        assert err32 < 2e-3, f"cfg{idx} f32 max abs err {err32}"

        # bf16-MXU path (recommended on v6e/v7x): compared against a reference whose
        # conv operands are rounded to bf16 the same way (f32 accumulation everywhere).
        out16 = bottleneck_ir_se_forward(x_nhwc, params, Cin, D, stride,
                                         mxu_dtype=jnp.bfloat16)
        out16 = jnp.transpose(out16, (0, 3, 1, 2))
        jax.block_until_ready(out16)
        ref16 = ref_forward_nchw(x_nchw, params, Cin, D, stride, conv_dtype=jnp.bfloat16)
        err16 = float(jnp.max(jnp.abs(out16 - ref16)))
        assert err16 < 2e-2, f"cfg{idx} bf16 max abs err {err16}"

    print("KERNEL_OK")
</pallas_src>

<mosaic_0001>
module attributes {stable_mosaic.version = 11 : i64} {
  func.func @kernel(%arg0: i32, %arg1: memref<1x16x8x16xf32, #tpu.memory_space<vmem>>, %arg2: memref<1x16x8x16xf32, #tpu.memory_space<vmem>>, %arg3: memref<1x16xf32, #tpu.memory_space<vmem>>, %arg4: memref<1x16xf32, #tpu.memory_space<vmem>>, %arg5: memref<3x48x32xf32, #tpu.memory_space<vmem>>, %arg6: memref<1x32xf32, #tpu.memory_space<vmem>>, %arg7: memref<3x96x32xf32, #tpu.memory_space<vmem>>, %arg8: memref<1x32xf32, #tpu.memory_space<vmem>>, %arg9: memref<1x32xf32, #tpu.memory_space<vmem>>, %arg10: memref<32x2xf32, #tpu.memory_space<vmem>>, %arg11: memref<2x32xf32, #tpu.memory_space<vmem>>, %arg12: memref<16x32xf32, #tpu.memory_space<vmem>>, %arg13: memref<1x32xf32, #tpu.memory_space<vmem>>, %arg14: memref<1x32xf32, #tpu.memory_space<vmem>>, %arg15: memref<1x64x32xf32, #tpu.memory_space<vmem>>, %arg16: memref<18x9x16xf32, #tpu.memory_space<vmem>>, %arg17: memref<18x9x16xf32, #tpu.memory_space<vmem>>, %arg18: memref<18x9x32xf32, #tpu.memory_space<vmem>>, %arg19: memref<18x8x32xf32, #tpu.memory_space<vmem>>, %arg20: memref<128x32xf32, #tpu.memory_space<vmem>>, %arg21: memref<128x32xf32, #tpu.memory_space<vmem>>, %arg22: memref<64x32xf32, #tpu.memory_space<vmem>>) attributes {dimension_semantics = [#tpu.dimension_semantics<parallel>], iteration_bounds = array<i64: 2>, scalar_prefetch = 0 : i64, scratch_operands = 7 : i64, tpu.core_type = #tpu.core_type<tc>, window_params = [{transform_indices = @transform_0, window_bounds = array<i64: 1, 16, 8, 16>}, {transform_indices = @transform_1, window_bounds = array<i64: 1, 16, 8, 16>}, {pipeline_mode = #tpu.pipeline_mode<synchronous>, transform_indices = @transform_2, window_bounds = array<i64: 1, 16>}, {pipeline_mode = #tpu.pipeline_mode<synchronous>, transform_indices = @transform_3, window_bounds = array<i64: 1, 16>}, {pipeline_mode = #tpu.pipeline_mode<synchronous>, transform_indices = @transform_4, window_bounds = array<i64: 3, 48, 32>}, {pipeline_mode = #tpu.pipeline_mode<synchronous>, transform_indices = @transform_5, window_bounds = array<i64: 1, 32>}, {pipeline_mode = #tpu.pipeline_mode<synchronous>, transform_indices = @transform_6, window_bounds = array<i64: 3, 96, 32>}, {pipeline_mode = #tpu.pipeline_mode<synchronous>, transform_indices = @transform_7, window_bounds = array<i64: 1, 32>}, {pipeline_mode = #tpu.pipeline_mode<synchronous>, transform_indices = @transform_8, window_bounds = array<i64: 1, 32>}, {pipeline_mode = #tpu.pipeline_mode<synchronous>, transform_indices = @transform_9, window_bounds = array<i64: 32, 2>}, {pipeline_mode = #tpu.pipeline_mode<synchronous>, transform_indices = @transform_10, window_bounds = array<i64: 2, 32>}, {pipeline_mode = #tpu.pipeline_mode<synchronous>, transform_indices = @transform_11, window_bounds = array<i64: 16, 32>}, {pipeline_mode = #tpu.pipeline_mode<synchronous>, transform_indices = @transform_12, window_bounds = array<i64: 1, 32>}, {pipeline_mode = #tpu.pipeline_mode<synchronous>, transform_indices = @transform_13, window_bounds = array<i64: 1, 32>}, {transform_indices = @transform_14, window_bounds = array<i64: 1, 64, 32>}]} {
    %c0 = arith.constant 0 : index
    %c0_0 = arith.constant 0 : index
    %0 = vector.load %arg3[%c0, %c0_0] : memref<1x16xf32, #tpu.memory_space<vmem>>, vector<1x16xf32>
    %c0_1 = arith.constant 0 : index
    %c0_2 = arith.constant 0 : index
    %1 = vector.load %arg4[%c0_1, %c0_2] : memref<1x16xf32, #tpu.memory_space<vmem>>, vector<1x16xf32>
    %c0_3 = arith.constant 0 : index
    %c0_4 = arith.constant 0 : index
    %2 = vector.load %arg6[%c0_3, %c0_4] : memref<1x32xf32, #tpu.memory_space<vmem>>, vector<1x32xf32>
    %c0_5 = arith.constant 0 : index
    %c0_6 = arith.constant 0 : index
    %c0_7 = arith.constant 0 : index
    %c0_8 = arith.constant 0 : index
    %3 = vector.load %arg1[%c0_5, %c0_6, %c0_7, %c0_8] : memref<1x16x8x16xf32, #tpu.memory_space<vmem>>, vector<1x16x8x16xf32>
    %4 = vector.shape_cast %3 : vector<1x16x8x16xf32> to vector<16x8x16xf32>
    %c0_9 = arith.constant 0 : index
    %c0_10 = arith.constant 0 : index
    %c0_11 = arith.constant 0 : index
    %c0_12 = arith.constant 0 : index
    %5 = vector.load %arg2[%c0_9, %c0_10, %c0_11, %c0_12] : memref<1x16x8x16xf32, #tpu.memory_space<vmem>>, vector<1x16x8x16xf32>
    %6 = vector.shape_cast %5 : vector<1x16x8x16xf32> to vector<16x8x16xf32>
    %7 = vector.shape_cast %0 : vector<1x16xf32> to vector<1x1x16xf32>
    %8 = vector.broadcast %7 : vector<1x1x16xf32> to vector<16x8x16xf32>
    %9 = arith.mulf %4, %8 : vector<16x8x16xf32>
    %10 = vector.shape_cast %1 : vector<1x16xf32> to vector<1x1x16xf32>
    %11 = vector.broadcast %10 : vector<1x1x16xf32> to vector<16x8x16xf32>
    %12 = arith.addf %9, %11 : vector<16x8x16xf32>
    %13 = vector.shape_cast %0 : vector<1x16xf32> to vector<1x1x16xf32>
    %14 = vector.broadcast %13 : vector<1x1x16xf32> to vector<16x8x16xf32>
    %15 = arith.mulf %6, %14 : vector<16x8x16xf32>
    %16 = vector.shape_cast %1 : vector<1x16xf32> to vector<1x1x16xf32>
    %17 = vector.broadcast %16 : vector<1x1x16xf32> to vector<16x8x16xf32>
    %18 = arith.addf %15, %17 : vector<16x8x16xf32>
    %cst = arith.constant 0.000000e+00 : f32
    %19 = vector.broadcast %cst : f32 to vector<9x16xf32>
    %cst_13 = arith.constant 0.000000e+00 : f32
    %20 = vector.broadcast %cst_13 : f32 to vector<16x1x16xf32>
    %c0_14 = arith.constant 0 : index
    %c0_15 = arith.constant 0 : index
    %c0_16 = arith.constant 0 : index
    %21 = vector.load %arg16[%c0_14, %c0_15, %c0_16] : memref<18x9x16xf32, #tpu.memory_space<vmem>>, vector<1x9x16xf32>
    %22 = vector.shape_cast %21 : vector<1x9x16xf32> to vector<9x16xf32>
    %23 = vector.shape_cast %19 : vector<9x16xf32> to vector<1x9x16xf32>
    tpu.vector_store %arg16[%c0_14, %c0_15, %c0_16], %23 {strides = array<i32>} : memref<18x9x16xf32, #tpu.memory_space<vmem>>, vector<1x9x16xf32>,
    %c17 = arith.constant 17 : index
    %c0_17 = arith.constant 0 : index
    %c0_18 = arith.constant 0 : index
    %24 = vector.load %arg16[%c17, %c0_17, %c0_18] : memref<18x9x16xf32, #tpu.memory_space<vmem>>, vector<1x9x16xf32>
    %25 = vector.shape_cast %24 : vector<1x9x16xf32> to vector<9x16xf32>
    %26 = vector.shape_cast %19 : vector<9x16xf32> to vector<1x9x16xf32>
    tpu.vector_store %arg16[%c17, %c0_17, %c0_18], %26 {strides = array<i32>} : memref<18x9x16xf32, #tpu.memory_space<vmem>>, vector<1x9x16xf32>,
    %c0_19 = arith.constant 0 : index
    %c0_20 = arith.constant 0 : index
    %c0_21 = arith.constant 0 : index
    %27 = vector.load %arg17[%c0_19, %c0_20, %c0_21] : memref<18x9x16xf32, #tpu.memory_space<vmem>>, vector<1x9x16xf32>
    %28 = vector.shape_cast %27 : vector<1x9x16xf32> to vector<9x16xf32>
    %29 = vector.shape_cast %19 : vector<9x16xf32> to vector<1x9x16xf32>
    tpu.vector_store %arg17[%c0_19, %c0_20, %c0_21], %29 {strides = array<i32>} : memref<18x9x16xf32, #tpu.memory_space<vmem>>, vector<1x9x16xf32>,
    %c17_22 = arith.constant 17 : index
    %c0_23 = arith.constant 0 : index
    %c0_24 = arith.constant 0 : index
    %30 = vector.load %arg17[%c17_22, %c0_23, %c0_24] : memref<18x9x16xf32, #tpu.memory_space<vmem>>, vector<1x9x16xf32>
    %31 = vector.shape_cast %30 : vector<1x9x16xf32> to vector<9x16xf32>
    %32 = vector.shape_cast %19 : vector<9x16xf32> to vector<1x9x16xf32>
    tpu.vector_store %arg17[%c17_22, %c0_23, %c0_24], %32 {strides = array<i32>} : memref<18x9x16xf32, #tpu.memory_space<vmem>>, vector<1x9x16xf32>,
    %33 = tpu.concatenate %20, %18 in 1 : vector<16x1x16xf32>, vector<16x8x16xf32> -> vector<16x9x16xf32>
    %c1 = arith.constant 1 : index
    %c0_25 = arith.constant 0 : index
    %c0_26 = arith.constant 0 : index
    %34 = vector.load %arg16[%c1, %c0_25, %c0_26] : memref<18x9x16xf32, #tpu.memory_space<vmem>>, vector<16x9x16xf32>
    tpu.vector_store %arg16[%c1, %c0_25, %c0_26], %33 {strides = array<i32>} : memref<18x9x16xf32, #tpu.memory_space<vmem>>, vector<16x9x16xf32>,
    %35 = tpu.concatenate %12, %20 in 1 : vector<16x8x16xf32>, vector<16x1x16xf32> -> vector<16x9x16xf32>
    %c1_27 = arith.constant 1 : index
    %c0_28 = arith.constant 0 : index
    %c0_29 = arith.constant 0 : index
    %36 = vector.load %arg17[%c1_27, %c0_28, %c0_29] : memref<18x9x16xf32, #tpu.memory_space<vmem>>, vector<16x9x16xf32>
    tpu.vector_store %arg17[%c1_27, %c0_28, %c0_29], %35 {strides = array<i32>} : memref<18x9x16xf32, #tpu.memory_space<vmem>>, vector<16x9x16xf32>,
    %c0_30 = arith.constant 0 : index
    %c0_31 = arith.constant 0 : index
    %c0_32 = arith.constant 0 : index
    %37 = vector.load %arg16[%c0_30, %c0_31, %c0_32] : memref<18x9x16xf32, #tpu.memory_space<vmem>>, vector<16x9x16xf32>
    %c0_33 = arith.constant 0 : index
    %c0_34 = arith.constant 0 : index
    %c0_35 = arith.constant 0 : index
    %38 = vector.load %arg17[%c0_33, %c0_34, %c0_35] : memref<18x9x16xf32, #tpu.memory_space<vmem>>, vector<16x9x16xf32>
    %39 = vector.extract_strided_slice %37 {offsets = [0, 0, 0], sizes = [16, 8, 16], strides = [1, 1, 1]} : vector<16x9x16xf32> to vector<16x8x16xf32>
    %40 = vector.extract_strided_slice %38 {offsets = [0, 0, 0], sizes = [16, 8, 16], strides = [1, 1, 1]} : vector<16x9x16xf32> to vector<16x8x16xf32>
    %41 = vector.extract_strided_slice %37 {offsets = [0, 1, 0], sizes = [16, 8, 16], strides = [1, 1, 1]} : vector<16x9x16xf32> to vector<16x8x16xf32>
    %42 = tpu.concatenate %39, %40, %41 in 2 : vector<16x8x16xf32>, vector<16x8x16xf32>, vector<16x8x16xf32> -> vector<16x8x48xf32>
    %43 = vector.shape_cast %42 : vector<16x8x48xf32> to vector<128x48xf32>
    %44 = vector.extract_strided_slice %38 {offsets = [0, 0, 0], sizes = [16, 8, 16], strides = [1, 1, 1]} : vector<16x9x16xf32> to vector<16x8x16xf32>
    %45 = vector.extract_strided_slice %37 {offsets = [0, 1, 0], sizes = [16, 8, 16], strides = [1, 1, 1]} : vector<16x9x16xf32> to vector<16x8x16xf32>
    %46 = vector.extract_strided_slice %38 {offsets = [0, 1, 0], sizes = [16, 8, 16], strides = [1, 1, 1]} : vector<16x9x16xf32> to vector<16x8x16xf32>
    %47 = tpu.concatenate %44, %45, %46 in 2 : vector<16x8x16xf32>, vector<16x8x16xf32>, vector<16x8x16xf32> -> vector<16x8x48xf32>
    %48 = vector.shape_cast %47 : vector<16x8x48xf32> to vector<128x48xf32>
    %c0_36 = arith.constant 0 : index
    %c0_37 = arith.constant 0 : index
    %c0_38 = arith.constant 0 : index
    %49 = vector.load %arg5[%c0_36, %c0_37, %c0_38] : memref<3x48x32xf32, #tpu.memory_space<vmem>>, vector<1x48x32xf32>
    %50 = vector.shape_cast %49 : vector<1x48x32xf32> to vector<48x32xf32>
    %cst_39 = arith.constant dense<0.000000e+00> : vector<128x32xf32>
    %51 = tpu.matmul %43, %50, %cst_39 {dimension_numbers = #tpu.dot_dimension_numbers<[1], [0], [0], [1], [0, 0, 1, 1], [], []>} : vector<128x48xf32>, vector<48x32xf32>, vector<128x32xf32> -> vector<128x32xf32>
    %c0_40 = arith.constant 0 : index
    %c0_41 = arith.constant 0 : index
    %c0_42 = arith.constant 0 : index
    %52 = vector.load %arg5[%c0_40, %c0_41, %c0_42] : memref<3x48x32xf32, #tpu.memory_space<vmem>>, vector<1x48x32xf32>
    %53 = vector.shape_cast %52 : vector<1x48x32xf32> to vector<48x32xf32>
    %cst_43 = arith.constant dense<0.000000e+00> : vector<128x32xf32>
    %54 = tpu.matmul %48, %53, %cst_43 {dimension_numbers = #tpu.dot_dimension_numbers<[1], [0], [0], [1], [0, 0, 1, 1], [], []>} : vector<128x48xf32>, vector<48x32xf32>, vector<128x32xf32> -> vector<128x32xf32>
    %c0_44 = arith.constant 0 : index
    %c0_45 = arith.constant 0 : index
    %55 = vector.load %arg20[%c0_44, %c0_45] : memref<128x32xf32, #tpu.memory_space<vmem>>, vector<128x32xf32>
    tpu.vector_store %arg20[%c0_44, %c0_45], %51 {strides = array<i32>} : memref<128x32xf32, #tpu.memory_space<vmem>>, vector<128x32xf32>,
    %c0_46 = arith.constant 0 : index
    %c0_47 = arith.constant 0 : index
    %56 = vector.load %arg21[%c0_46, %c0_47] : memref<128x32xf32, #tpu.memory_space<vmem>>, vector<128x32xf32>
    tpu.vector_store %arg21[%c0_46, %c0_47], %54 {strides = array<i32>} : memref<128x32xf32, #tpu.memory_space<vmem>>, vector<128x32xf32>,
    %c1_48 = arith.constant 1 : index
    %c0_49 = arith.constant 0 : index
    %c0_50 = arith.constant 0 : index
    %57 = vector.load %arg16[%c1_48, %c0_49, %c0_50] : memref<18x9x16xf32, #tpu.memory_space<vmem>>, vector<16x9x16xf32>
    %c1_51 = arith.constant 1 : index
    %c0_52 = arith.constant 0 : index
    %c0_53 = arith.constant 0 : index
    %58 = vector.load %arg17[%c1_51, %c0_52, %c0_53] : memref<18x9x16xf32, #tpu.memory_space<vmem>>, vector<16x9x16xf32>
    %59 = vector.extract_strided_slice %57 {offsets = [0, 0, 0], sizes = [16, 8, 16], strides = [1, 1, 1]} : vector<16x9x16xf32> to vector<16x8x16xf32>
    %60 = vector.extract_strided_slice %58 {offsets = [0, 0, 0], sizes = [16, 8, 16], strides = [1, 1, 1]} : vector<16x9x16xf32> to vector<16x8x16xf32>
    %61 = vector.extract_strided_slice %57 {offsets = [0, 1, 0], sizes = [16, 8, 16], strides = [1, 1, 1]} : vector<16x9x16xf32> to vector<16x8x16xf32>
    %62 = tpu.concatenate %59, %60, %61 in 2 : vector<16x8x16xf32>, vector<16x8x16xf32>, vector<16x8x16xf32> -> vector<16x8x48xf32>
    %63 = vector.shape_cast %62 : vector<16x8x48xf32> to vector<128x48xf32>
    %64 = vector.extract_strided_slice %58 {offsets = [0, 0, 0], sizes = [16, 8, 16], strides = [1, 1, 1]} : vector<16x9x16xf32> to vector<16x8x16xf32>
    %65 = vector.extract_strided_slice %57 {offsets = [0, 1, 0], sizes = [16, 8, 16], strides = [1, 1, 1]} : vector<16x9x16xf32> to vector<16x8x16xf32>
    %66 = vector.extract_strided_slice %58 {offsets = [0, 1, 0], sizes = [16, 8, 16], strides = [1, 1, 1]} : vector<16x9x16xf32> to vector<16x8x16xf32>
    %67 = tpu.concatenate %64, %65, %66 in 2 : vector<16x8x16xf32>, vector<16x8x16xf32>, vector<16x8x16xf32> -> vector<16x8x48xf32>
    %68 = vector.shape_cast %67 : vector<16x8x48xf32> to vector<128x48xf32>
    %c1_54 = arith.constant 1 : index
    %c0_55 = arith.constant 0 : index
    %c0_56 = arith.constant 0 : index
    %69 = vector.load %arg5[%c1_54, %c0_55, %c0_56] : memref<3x48x32xf32, #tpu.memory_space<vmem>>, vector<1x48x32xf32>
    %70 = vector.shape_cast %69 : vector<1x48x32xf32> to vector<48x32xf32>
    %cst_57 = arith.constant dense<0.000000e+00> : vector<128x32xf32>
    %71 = tpu.matmul %63, %70, %cst_57 {dimension_numbers = #tpu.dot_dimension_numbers<[1], [0], [0], [1], [0, 0, 1, 1], [], []>} : vector<128x48xf32>, vector<48x32xf32>, vector<128x32xf32> -> vector<128x32xf32>
    %c1_58 = arith.constant 1 : index
    %c0_59 = arith.constant 0 : index
    %c0_60 = arith.constant 0 : index
    %72 = vector.load %arg5[%c1_58, %c0_59, %c0_60] : memref<3x48x32xf32, #tpu.memory_space<vmem>>, vector<1x48x32xf32>
    %73 = vector.shape_cast %72 : vector<1x48x32xf32> to vector<48x32xf32>
    %cst_61 = arith.constant dense<0.000000e+00> : vector<128x32xf32>
    %74 = tpu.matmul %68, %73, %cst_61 {dimension_numbers = #tpu.dot_dimension_numbers<[1], [0], [0], [1], [0, 0, 1, 1], [], []>} : vector<128x48xf32>, vector<48x32xf32>, vector<128x32xf32> -> vector<128x32xf32>
    %c0_62 = arith.constant 0 : index
    %c0_63 = arith.constant 0 : index
    %75 = vector.load %arg20[%c0_62, %c0_63] : memref<128x32xf32, #tpu.memory_space<vmem>>, vector<128x32xf32>
    %76 = arith.addf %75, %71 : vector<128x32xf32>
    %c0_64 = arith.constant 0 : index
    %c0_65 = arith.constant 0 : index
    %77 = vector.load %arg20[%c0_64, %c0_65] : memref<128x32xf32, #tpu.memory_space<vmem>>, vector<128x32xf32>
    tpu.vector_store %arg20[%c0_64, %c0_65], %76 {strides = array<i32>} : memref<128x32xf32, #tpu.memory_space<vmem>>, vector<128x32xf32>,
    %c0_66 = arith.constant 0 : index
    %c0_67 = arith.constant 0 : index
    %78 = vector.load %arg21[%c0_66, %c0_67] : memref<128x32xf32, #tpu.memory_space<vmem>>, vector<128x32xf32>
    %79 = arith.addf %78, %74 : vector<128x32xf32>
    %c0_68 = arith.constant 0 : index
    %c0_69 = arith.constant 0 : index
    %80 = vector.load %arg21[%c0_68, %c0_69] : memref<128x32xf32, #tpu.memory_space<vmem>>, vector<128x32xf32>
    tpu.vector_store %arg21[%c0_68, %c0_69], %79 {strides = array<i32>} : memref<128x32xf32, #tpu.memory_space<vmem>>, vector<128x32xf32>,
    %c2 = arith.constant 2 : index
    %c0_70 = arith.constant 0 : index
    %c0_71 = arith.constant 0 : index
    %81 = vector.load %arg16[%c2, %c0_70, %c0_71] : memref<18x9x16xf32, #tpu.memory_space<vmem>>, vector<16x9x16xf32>
    %c2_72 = arith.constant 2 : index
    %c0_73 = arith.constant 0 : index
    %c0_74 = arith.constant 0 : index
    %82 = vector.load %arg17[%c2_72, %c0_73, %c0_74] : memref<18x9x16xf32, #tpu.memory_space<vmem>>, vector<16x9x16xf32>
    %83 = vector.extract_strided_slice %81 {offsets = [0, 0, 0], sizes = [16, 8, 16], strides = [1, 1, 1]} : vector<16x9x16xf32> to vector<16x8x16xf32>
    %84 = vector.extract_strided_slice %82 {offsets = [0, 0, 0], sizes = [16, 8, 16], strides = [1, 1, 1]} : vector<16x9x16xf32> to vector<16x8x16xf32>
    %85 = vector.extract_strided_slice %81 {offsets = [0, 1, 0], sizes = [16, 8, 16], strides = [1, 1, 1]} : vector<16x9x16xf32> to vector<16x8x16xf32>
    %86 = tpu.concatenate %83, %84, %85 in 2 : vector<16x8x16xf32>, vector<16x8x16xf32>, vector<16x8x16xf32> -> vector<16x8x48xf32>
    %87 = vector.shape_cast %86 : vector<16x8x48xf32> to vector<128x48xf32>
    %88 = vector.extract_strided_slice %82 {offsets = [0, 0, 0], sizes = [16, 8, 16], strides = [1, 1, 1]} : vector<16x9x16xf32> to vector<16x8x16xf32>
    %89 = vector.extract_strided_slice %81 {offsets = [0, 1, 0], sizes = [16, 8, 16], strides = [1, 1, 1]} : vector<16x9x16xf32> to vector<16x8x16xf32>
    %90 = vector.extract_strided_slice %82 {offsets = [0, 1, 0], sizes = [16, 8, 16], strides = [1, 1, 1]} : vector<16x9x16xf32> to vector<16x8x16xf32>
    %91 = tpu.concatenate %88, %89, %90 in 2 : vector<16x8x16xf32>, vector<16x8x16xf32>, vector<16x8x16xf32> -> vector<16x8x48xf32>
    %92 = vector.shape_cast %91 : vector<16x8x48xf32> to vector<128x48xf32>
    %c2_75 = arith.constant 2 : index
    %c0_76 = arith.constant 0 : index
    %c0_77 = arith.constant 0 : index
    %93 = vector.load %arg5[%c2_75, %c0_76, %c0_77] : memref<3x48x32xf32, #tpu.memory_space<vmem>>, vector<1x48x32xf32>
    %94 = vector.shape_cast %93 : vector<1x48x32xf32> to vector<48x32xf32>
    %cst_78 = arith.constant dense<0.000000e+00> : vector<128x32xf32>
    %95 = tpu.matmul %87, %94, %cst_78 {dimension_numbers = #tpu.dot_dimension_numbers<[1], [0], [0], [1], [0, 0, 1, 1], [], []>} : vector<128x48xf32>, vector<48x32xf32>, vector<128x32xf32> -> vector<128x32xf32>
    %c2_79 = arith.constant 2 : index
    %c0_80 = arith.constant 0 : index
    %c0_81 = arith.constant 0 : index
    %96 = vector.load %arg5[%c2_79, %c0_80, %c0_81] : memref<3x48x32xf32, #tpu.memory_space<vmem>>, vector<1x48x32xf32>
    %97 = vector.shape_cast %96 : vector<1x48x32xf32> to vector<48x32xf32>
    %cst_82 = arith.constant dense<0.000000e+00> : vector<128x32xf32>
    %98 = tpu.matmul %92, %97, %cst_82 {dimension_numbers = #tpu.dot_dimension_numbers<[1], [0], [0], [1], [0, 0, 1, 1], [], []>} : vector<128x48xf32>, vector<48x32xf32>, vector<128x32xf32> -> vector<128x32xf32>
    %c0_83 = arith.constant 0 : index
    %c0_84 = arith.constant 0 : index
    %99 = vector.load %arg20[%c0_83, %c0_84] : memref<128x32xf32, #tpu.memory_space<vmem>>, vector<128x32xf32>
    %100 = arith.addf %99, %95 : vector<128x32xf32>
    %c0_85 = arith.constant 0 : index
    %c0_86 = arith.constant 0 : index
    %101 = vector.load %arg20[%c0_85, %c0_86] : memref<128x32xf32, #tpu.memory_space<vmem>>, vector<128x32xf32>
    tpu.vector_store %arg20[%c0_85, %c0_86], %100 {strides = array<i32>} : memref<128x32xf32, #tpu.memory_space<vmem>>, vector<128x32xf32>,
    %c0_87 = arith.constant 0 : index
    %c0_88 = arith.constant 0 : index
    %102 = vector.load %arg21[%c0_87, %c0_88] : memref<128x32xf32, #tpu.memory_space<vmem>>, vector<128x32xf32>
    %103 = arith.addf %102, %98 : vector<128x32xf32>
    %c0_89 = arith.constant 0 : index
    %c0_90 = arith.constant 0 : index
    %104 = vector.load %arg21[%c0_89, %c0_90] : memref<128x32xf32, #tpu.memory_space<vmem>>, vector<128x32xf32>
    tpu.vector_store %arg21[%c0_89, %c0_90], %103 {strides = array<i32>} : memref<128x32xf32, #tpu.memory_space<vmem>>, vector<128x32xf32>,
    %c0_91 = arith.constant 0 : index
    %c0_92 = arith.constant 0 : index
    %105 = vector.load %arg20[%c0_91, %c0_92] : memref<128x32xf32, #tpu.memory_space<vmem>>, vector<128x32xf32>
    %c0_93 = arith.constant 0 : index
    %c0_94 = arith.constant 0 : index
    %106 = vector.load %arg21[%c0_93, %c0_94] : memref<128x32xf32, #tpu.memory_space<vmem>>, vector<128x32xf32>
    %cst_95 = arith.constant 0.000000e+00 : f32
    %107 = vector.broadcast %cst_95 : f32 to vector<128x32xf32>
    %108 = arith.cmpf ogt, %105, %107 : vector<128x32xf32>
    %109 = vector.broadcast %2 : vector<1x32xf32> to vector<128x32xf32>
    %110 = arith.mulf %105, %109 : vector<128x32xf32>
    %111 = arith.select %108, %105, %110 : vector<128x32xi1>, vector<128x32xf32>
    %112 = vector.shape_cast %111 : vector<128x32xf32> to vector<16x8x32xf32>
    %cst_96 = arith.constant 0.000000e+00 : f32
    %113 = vector.broadcast %cst_96 : f32 to vector<128x32xf32>
    %114 = arith.cmpf ogt, %106, %113 : vector<128x32xf32>
    %115 = vector.broadcast %2 : vector<1x32xf32> to vector<128x32xf32>
    %116 = arith.mulf %106, %115 : vector<128x32xf32>
    %117 = arith.select %114, %106, %116 : vector<128x32xi1>, vector<128x32xf32>
    %118 = vector.shape_cast %117 : vector<128x32xf32> to vector<16x8x32xf32>
    %cst_97 = arith.constant 0.000000e+00 : f32
    %119 = vector.broadcast %cst_97 : f32 to vector<9x32xf32>
    %cst_98 = arith.constant 0.000000e+00 : f32
    %120 = vector.broadcast %cst_98 : f32 to vector<8x32xf32>
    %cst_99 = arith.constant 0.000000e+00 : f32
    %121 = vector.broadcast %cst_99 : f32 to vector<16x1x32xf32>
    %c0_100 = arith.constant 0 : index
    %c0_101 = arith.constant 0 : index
    %c0_102 = arith.constant 0 : index
    %122 = vector.load %arg18[%c0_100, %c0_101, %c0_102] : memref<18x9x32xf32, #tpu.memory_space<vmem>>, vector<1x9x32xf32>
    %123 = vector.shape_cast %122 : vector<1x9x32xf32> to vector<9x32xf32>
    %124 = vector.shape_cast %119 : vector<9x32xf32> to vector<1x9x32xf32>
    tpu.vector_store %arg18[%c0_100, %c0_101, %c0_102], %124 {strides = array<i32>} : memref<18x9x32xf32, #tpu.memory_space<vmem>>, vector<1x9x32xf32>,
    %c17_103 = arith.constant 17 : index
    %c0_104 = arith.constant 0 : index
    %c0_105 = arith.constant 0 : index
    %125 = vector.load %arg18[%c17_103, %c0_104, %c0_105] : memref<18x9x32xf32, #tpu.memory_space<vmem>>, vector<1x9x32xf32>
    %126 = vector.shape_cast %125 : vector<1x9x32xf32> to vector<9x32xf32>
    %127 = vector.shape_cast %119 : vector<9x32xf32> to vector<1x9x32xf32>
    tpu.vector_store %arg18[%c17_103, %c0_104, %c0_105], %127 {strides = array<i32>} : memref<18x9x32xf32, #tpu.memory_space<vmem>>, vector<1x9x32xf32>,
    %c0_106 = arith.constant 0 : index
    %c0_107 = arith.constant 0 : index
    %c0_108 = arith.constant 0 : index
    %128 = vector.load %arg19[%c0_106, %c0_107, %c0_108] : memref<18x8x32xf32, #tpu.memory_space<vmem>>, vector<1x8x32xf32>
    %129 = vector.shape_cast %128 : vector<1x8x32xf32> to vector<8x32xf32>
    %130 = vector.shape_cast %120 : vector<8x32xf32> to vector<1x8x32xf32>
    tpu.vector_store %arg19[%c0_106, %c0_107, %c0_108], %130 {strides = array<i32>} : memref<18x8x32xf32, #tpu.memory_space<vmem>>, vector<1x8x32xf32>,
    %c17_109 = arith.constant 17 : index
    %c0_110 = arith.constant 0 : index
    %c0_111 = arith.constant 0 : index
    %131 = vector.load %arg19[%c17_109, %c0_110, %c0_111] : memref<18x8x32xf32, #tpu.memory_space<vmem>>, vector<1x8x32xf32>
    %132 = vector.shape_cast %131 : vector<1x8x32xf32> to vector<8x32xf32>
    %133 = vector.shape_cast %120 : vector<8x32xf32> to vector<1x8x32xf32>
    tpu.vector_store %arg19[%c17_109, %c0_110, %c0_111], %133 {strides = array<i32>} : memref<18x8x32xf32, #tpu.memory_space<vmem>>, vector<1x8x32xf32>,
    %134 = tpu.concatenate %121, %118 in 1 : vector<16x1x32xf32>, vector<16x8x32xf32> -> vector<16x9x32xf32>
    %c1_112 = arith.constant 1 : index
    %c0_113 = arith.constant 0 : index
    %c0_114 = arith.constant 0 : index
    %135 = vector.load %arg18[%c1_112, %c0_113, %c0_114] : memref<18x9x32xf32, #tpu.memory_space<vmem>>, vector<16x9x32xf32>
    tpu.vector_store %arg18[%c1_112, %c0_113, %c0_114], %134 {strides = array<i32>} : memref<18x9x32xf32, #tpu.memory_space<vmem>>, vector<16x9x32xf32>,
    %c1_115 = arith.constant 1 : index
    %c0_116 = arith.constant 0 : index
    %c0_117 = arith.constant 0 : index
    %136 = vector.load %arg19[%c1_115, %c0_116, %c0_117] : memref<18x8x32xf32, #tpu.memory_space<vmem>>, vector<16x8x32xf32>
    tpu.vector_store %arg19[%c1_115, %c0_116, %c0_117], %112 {strides = array<i32>} : memref<18x8x32xf32, #tpu.memory_space<vmem>>, vector<16x8x32xf32>,
    %c0_118 = arith.constant 0 : index
    %c0_119 = arith.constant 0 : index
    %c0_120 = arith.constant 0 : index
    %137 = vector.load %arg18[%c0_118, %c0_119, %c0_120] : memref<18x9x32xf32, #tpu.memory_space<vmem>>, vector<16x9x32xf32>
    %138 = vector.shape_cast %137 : vector<16x9x32xf32> to vector<8x2x9x32xf32>
    %139 = vector.extract_strided_slice %138 {offsets = [0, 0, 0, 0], sizes = [8, 1, 9, 32], strides = [1, 1, 1, 1]} : vector<8x2x9x32xf32> to vector<8x1x9x32xf32>
    %140 = vector.shape_cast %139 : vector<8x1x9x32xf32> to vector<8x9x32xf32>
    %c0_121 = arith.constant 0 : index
    %c0_122 = arith.constant 0 : index
    %c0_123 = arith.constant 0 : index
    %141 = vector.load %arg19[%c0_121, %c0_122, %c0_123] : memref<18x8x32xf32, #tpu.memory_space<vmem>>, vector<16x8x32xf32>
    %142 = vector.shape_cast %141 : vector<16x8x32xf32> to vector<8x2x8x32xf32>
    %143 = vector.extract_strided_slice %142 {offsets = [0, 0, 0, 0], sizes = [8, 1, 8, 32], strides = [1, 1, 1, 1]} : vector<8x2x8x32xf32> to vector<8x1x8x32xf32>
    %144 = vector.shape_cast %143 : vector<8x1x8x32xf32> to vector<8x8x32xf32>
    %145 = vector.extract_strided_slice %140 {offsets = [0, 0, 0], sizes = [8, 8, 32], strides = [1, 1, 1]} : vector<8x9x32xf32> to vector<8x8x32xf32>
    %146 = vector.extract_strided_slice %140 {offsets = [0, 1, 0], sizes = [8, 8, 32], strides = [1, 1, 1]} : vector<8x9x32xf32> to vector<8x8x32xf32>
    %147 = tpu.concatenate %145, %144, %146 in 2 : vector<8x8x32xf32>, vector<8x8x32xf32>, vector<8x8x32xf32> -> vector<8x8x96xf32>
    %148 = vector.shape_cast %147 : vector<8x8x96xf32> to vector<64x96xf32>
    %c0_124 = arith.constant 0 : index
    %c0_125 = arith.constant 0 : index
    %c0_126 = arith.constant 0 : index
    %149 = vector.load %arg7[%c0_124, %c0_125, %c0_126] : memref<3x96x32xf32, #tpu.memory_space<vmem>>, vector<1x96x32xf32>
    %150 = vector.shape_cast %149 : vector<1x96x32xf32> to vector<96x32xf32>
    %cst_127 = arith.constant dense<0.000000e+00> : vector<64x32xf32>
    %151 = tpu.matmul %148, %150, %cst_127 {dimension_numbers = #tpu.dot_dimension_numbers<[1], [0], [0], [1], [0, 0, 1, 1], [], []>} : vector<64x96xf32>, vector<96x32xf32>, vector<64x32xf32> -> vector<64x32xf32>
    %c0_128 = arith.constant 0 : index
    %c0_129 = arith.constant 0 : index
    %152 = vector.load %arg22[%c0_128, %c0_129] : memref<64x32xf32, #tpu.memory_space<vmem>>, vector<64x32xf32>
    tpu.vector_store %arg22[%c0_128, %c0_129], %151 {strides = array<i32>} : memref<64x32xf32, #tpu.memory_space<vmem>>, vector<64x32xf32>,
    %c1_130 = arith.constant 1 : index
    %c0_131 = arith.constant 0 : index
    %c0_132 = arith.constant 0 : index
    %153 = vector.load %arg18[%c1_130, %c0_131, %c0_132] : memref<18x9x32xf32, #tpu.memory_space<vmem>>, vector<16x9x32xf32>
    %154 = vector.shape_cast %153 : vector<16x9x32xf32> to vector<8x2x9x32xf32>
    %155 = vector.extract_strided_slice %154 {offsets = [0, 0, 0, 0], sizes = [8, 1, 9, 32], strides = [1, 1, 1, 1]} : vector<8x2x9x32xf32> to vector<8x1x9x32xf32>
    %156 = vector.shape_cast %155 : vector<8x1x9x32xf32> to vector<8x9x32xf32>
    %c1_133 = arith.constant 1 : index
    %c0_134 = arith.constant 0 : index
    %c0_135 = arith.constant 0 : index
    %157 = vector.load %arg19[%c1_133, %c0_134, %c0_135] : memref<18x8x32xf32, #tpu.memory_space<vmem>>, vector<16x8x32xf32>
    %158 = vector.shape_cast %157 : vector<16x8x32xf32> to vector<8x2x8x32xf32>
    %159 = vector.extract_strided_slice %158 {offsets = [0, 0, 0, 0], sizes = [8, 1, 8, 32], strides = [1, 1, 1, 1]} : vector<8x2x8x32xf32> to vector<8x1x8x32xf32>
    %160 = vector.shape_cast %159 : vector<8x1x8x32xf32> to vector<8x8x32xf32>
    %161 = vector.extract_strided_slice %156 {offsets = [0, 0, 0], sizes = [8, 8, 32], strides = [1, 1, 1]} : vector<8x9x32xf32> to vector<8x8x32xf32>
    %162 = vector.extract_strided_slice %156 {offsets = [0, 1, 0], sizes = [8, 8, 32], strides = [1, 1, 1]} : vector<8x9x32xf32> to vector<8x8x32xf32>
    %163 = tpu.concatenate %161, %160, %162 in 2 : vector<8x8x32xf32>, vector<8x8x32xf32>, vector<8x8x32xf32> -> vector<8x8x96xf32>
    %164 = vector.shape_cast %163 : vector<8x8x96xf32> to vector<64x96xf32>
    %c1_136 = arith.constant 1 : index
    %c0_137 = arith.constant 0 : index
    %c0_138 = arith.constant 0 : index
    %165 = vector.load %arg7[%c1_136, %c0_137, %c0_138] : memref<3x96x32xf32, #tpu.memory_space<vmem>>, vector<1x96x32xf32>
    %166 = vector.shape_cast %165 : vector<1x96x32xf32> to vector<96x32xf32>
    %cst_139 = arith.constant dense<0.000000e+00> : vector<64x32xf32>
    %167 = tpu.matmul %164, %166, %cst_139 {dimension_numbers = #tpu.dot_dimension_numbers<[1], [0], [0], [1], [0, 0, 1, 1], [], []>} : vector<64x96xf32>, vector<96x32xf32>, vector<64x32xf32> -> vector<64x32xf32>
    %c0_140 = arith.constant 0 : index
    %c0_141 = arith.constant 0 : index
    %168 = vector.load %arg22[%c0_140, %c0_141] : memref<64x32xf32, #tpu.memory_space<vmem>>, vector<64x32xf32>
    %169 = arith.addf %168, %167 : vector<64x32xf32>
    %c0_142 = arith.constant 0 : index
    %c0_143 = arith.constant 0 : index
    %170 = vector.load %arg22[%c0_142, %c0_143] : memref<64x32xf32, #tpu.memory_space<vmem>>, vector<64x32xf32>
    tpu.vector_store %arg22[%c0_142, %c0_143], %169 {strides = array<i32>} : memref<64x32xf32, #tpu.memory_space<vmem>>, vector<64x32xf32>,
    %c2_144 = arith.constant 2 : index
    %c0_145 = arith.constant 0 : index
    %c0_146 = arith.constant 0 : index
    %171 = vector.load %arg18[%c2_144, %c0_145, %c0_146] : memref<18x9x32xf32, #tpu.memory_space<vmem>>, vector<16x9x32xf32>
    %172 = vector.shape_cast %171 : vector<16x9x32xf32> to vector<8x2x9x32xf32>
    %173 = vector.extract_strided_slice %172 {offsets = [0, 0, 0, 0], sizes = [8, 1, 9, 32], strides = [1, 1, 1, 1]} : vector<8x2x9x32xf32> to vector<8x1x9x32xf32>
    %174 = vector.shape_cast %173 : vector<8x1x9x32xf32> to vector<8x9x32xf32>
    %c2_147 = arith.constant 2 : index
    %c0_148 = arith.constant 0 : index
    %c0_149 = arith.constant 0 : index
    %175 = vector.load %arg19[%c2_147, %c0_148, %c0_149] : memref<18x8x32xf32, #tpu.memory_space<vmem>>, vector<16x8x32xf32>
    %176 = vector.shape_cast %175 : vector<16x8x32xf32> to vector<8x2x8x32xf32>
    %177 = vector.extract_strided_slice %176 {offsets = [0, 0, 0, 0], sizes = [8, 1, 8, 32], strides = [1, 1, 1, 1]} : vector<8x2x8x32xf32> to vector<8x1x8x32xf32>
    %178 = vector.shape_cast %177 : vector<8x1x8x32xf32> to vector<8x8x32xf32>
    %179 = vector.extract_strided_slice %174 {offsets = [0, 0, 0], sizes = [8, 8, 32], strides = [1, 1, 1]} : vector<8x9x32xf32> to vector<8x8x32xf32>
    %180 = vector.extract_strided_slice %174 {offsets = [0, 1, 0], sizes = [8, 8, 32], strides = [1, 1, 1]} : vector<8x9x32xf32> to vector<8x8x32xf32>
    %181 = tpu.concatenate %179, %178, %180 in 2 : vector<8x8x32xf32>, vector<8x8x32xf32>, vector<8x8x32xf32> -> vector<8x8x96xf32>
    %182 = vector.shape_cast %181 : vector<8x8x96xf32> to vector<64x96xf32>
    %c2_150 = arith.constant 2 : index
    %c0_151 = arith.constant 0 : index
    %c0_152 = arith.constant 0 : index
    %183 = vector.load %arg7[%c2_150, %c0_151, %c0_152] : memref<3x96x32xf32, #tpu.memory_space<vmem>>, vector<1x96x32xf32>
    %184 = vector.shape_cast %183 : vector<1x96x32xf32> to vector<96x32xf32>
    %cst_153 = arith.constant dense<0.000000e+00> : vector<64x32xf32>
    %185 = tpu.matmul %182, %184, %cst_153 {dimension_numbers = #tpu.dot_dimension_numbers<[1], [0], [0], [1], [0, 0, 1, 1], [], []>} : vector<64x96xf32>, vector<96x32xf32>, vector<64x32xf32> -> vector<64x32xf32>
    %c0_154 = arith.constant 0 : index
    %c0_155 = arith.constant 0 : index
    %186 = vector.load %arg22[%c0_154, %c0_155] : memref<64x32xf32, #tpu.memory_space<vmem>>, vector<64x32xf32>
    %187 = arith.addf %186, %185 : vector<64x32xf32>
    %c0_156 = arith.constant 0 : index
    %c0_157 = arith.constant 0 : index
    %188 = vector.load %arg22[%c0_156, %c0_157] : memref<64x32xf32, #tpu.memory_space<vmem>>, vector<64x32xf32>
    tpu.vector_store %arg22[%c0_156, %c0_157], %187 {strides = array<i32>} : memref<64x32xf32, #tpu.memory_space<vmem>>, vector<64x32xf32>,
    %189 = vector.shape_cast %4 : vector<16x8x16xf32> to vector<8x2x8x16xf32>
    %190 = vector.extract_strided_slice %189 {offsets = [0, 0, 0, 0], sizes = [8, 1, 8, 16], strides = [1, 1, 1, 1]} : vector<8x2x8x16xf32> to vector<8x1x8x16xf32>
    %191 = vector.shape_cast %190 : vector<8x1x8x16xf32> to vector<8x8x16xf32>
    %192 = vector.shape_cast %191 : vector<8x8x16xf32> to vector<64x16xf32>
    %c0_158 = arith.constant 0 : index
    %c0_159 = arith.constant 0 : index
    %193 = vector.load %arg22[%c0_158, %c0_159] : memref<64x32xf32, #tpu.memory_space<vmem>>, vector<64x32xf32>
    %c0_160 = arith.constant 0 : index
    %c0_161 = arith.constant 0 : index
    %194 = vector.load %arg8[%c0_160, %c0_161] : memref<1x32xf32, #tpu.memory_space<vmem>>, vector<1x32xf32>
    %195 = vector.broadcast %194 : vector<1x32xf32> to vector<64x32xf32>
    %196 = arith.mulf %193, %195 : vector<64x32xf32>
    %c0_162 = arith.constant 0 : index
    %c0_163 = arith.constant 0 : index
    %197 = vector.load %arg9[%c0_162, %c0_163] : memref<1x32xf32, #tpu.memory_space<vmem>>, vector<1x32xf32>
    %198 = vector.broadcast %197 : vector<1x32xf32> to vector<64x32xf32>
    %199 = arith.addf %196, %198 : vector<64x32xf32>
    %cst_164 = arith.constant dense<0.000000e+00> : vector<32xf32>
    %200 = vector.multi_reduction <add>, %199, %cst_164 [0] : vector<64x32xf32> to vector<32xf32>
    %201 = vector.shape_cast %200 : vector<32xf32> to vector<1x32xf32>
    %cst_165 = arith.constant 1.562500e-02 : f32
    %202 = vector.broadcast %cst_165 : f32 to vector<1x32xf32>
    %203 = arith.mulf %201, %202 : vector<1x32xf32>
    %c0_166 = arith.constant 0 : index
    %c0_167 = arith.constant 0 : index
    %204 = vector.load %arg10[%c0_166, %c0_167] : memref<32x2xf32, #tpu.memory_space<vmem>>, vector<32x2xf32>
    %cst_168 = arith.constant dense<0.000000e+00> : vector<1x2xf32>
    %205 = tpu.matmul %203, %204, %cst_168 {dimension_numbers = #tpu.dot_dimension_numbers<[1], [0], [0], [1], [0, 0, 1, 1], [], []>} : vector<1x32xf32>, vector<32x2xf32>, vector<1x2xf32> -> vector<1x2xf32>
    %cst_169 = arith.constant 0.000000e+00 : f32
    %206 = vector.broadcast %cst_169 : f32 to vector<1x2xf32>
    %207 = arith.maximumf %205, %206 : vector<1x2xf32>
    %c0_170 = arith.constant 0 : index
    %c0_171 = arith.constant 0 : index
    %208 = vector.load %arg11[%c0_170, %c0_171] : memref<2x32xf32, #tpu.memory_space<vmem>>, vector<2x32xf32>
    %cst_172 = arith.constant dense<0.000000e+00> : vector<1x32xf32>
    %209 = tpu.matmul %207, %208, %cst_172 {dimension_numbers = #tpu.dot_dimension_numbers<[1], [0], [0], [1], [0, 0, 1, 1], [], []>} : vector<1x2xf32>, vector<2x32xf32>, vector<1x32xf32> -> vector<1x32xf32>
    %210 = arith.negf %209 : vector<1x32xf32>
    %211 = math.exp %210 : vector<1x32xf32>
    %cst_173 = arith.constant 1.000000e+00 : f32
    %212 = vector.broadcast %cst_173 : f32 to vector<1x32xf32>
    %213 = arith.addf %212, %211 : vector<1x32xf32>
    %214 = arith.divf %212, %213 : vector<1x32xf32>
    %215 = vector.broadcast %214 : vector<1x32xf32> to vector<64x32xf32>
    %216 = arith.mulf %199, %215 : vector<64x32xf32>
    %c0_174 = arith.constant 0 : index
    %c0_175 = arith.constant 0 : index
    %217 = vector.load %arg12[%c0_174, %c0_175] : memref<16x32xf32, #tpu.memory_space<vmem>>, vector<16x32xf32>
    %cst_176 = arith.constant dense<0.000000e+00> : vector<64x32xf32>
    %218 = tpu.matmul %192, %217, %cst_176 {dimension_numbers = #tpu.dot_dimension_numbers<[1], [0], [0], [1], [0, 0, 1, 1], [], []>} : vector<64x16xf32>, vector<16x32xf32>, vector<64x32xf32> -> vector<64x32xf32>
    %c0_177 = arith.constant 0 : index
    %c0_178 = arith.constant 0 : index
    %219 = vector.load %arg13[%c0_177, %c0_178] : memref<1x32xf32, #tpu.memory_space<vmem>>, vector<1x32xf32>
    %220 = vector.broadcast %219 : vector<1x32xf32> to vector<64x32xf32>
    %221 = arith.mulf %218, %220 : vector<64x32xf32>
    %c0_179 = arith.constant 0 : index
    %c0_180 = arith.constant 0 : index
    %222 = vector.load %arg14[%c0_179, %c0_180] : memref<1x32xf32, #tpu.memory_space<vmem>>, vector<1x32xf32>
    %223 = vector.broadcast %222 : vector<1x32xf32> to vector<64x32xf32>
    %224 = arith.addf %221, %223 : vector<64x32xf32>
    %225 = arith.addf %216, %224 : vector<64x32xf32>
    %c0_181 = arith.constant 0 : index
    %c0_182 = arith.constant 0 : index
    %c0_183 = arith.constant 0 : index
    %226 = vector.load %arg15[%c0_181, %c0_182, %c0_183] : memref<1x64x32xf32, #tpu.memory_space<vmem>>, vector<1x64x32xf32>
    %227 = vector.shape_cast %226 : vector<1x64x32xf32> to vector<64x32xf32>
    %228 = vector.shape_cast %225 : vector<64x32xf32> to vector<1x64x32xf32>
    tpu.vector_store %arg15[%c0_181, %c0_182, %c0_183], %228 {strides = array<i32>} : memref<1x64x32xf32, #tpu.memory_space<vmem>>, vector<1x64x32xf32>,
    return
  }
  func.func @transform_0(%arg0: i32) -> (i32, i32, i32, i32) {
    %c0_i32 = arith.constant 0 : i32
    %c0_i32_0 = arith.constant 0 : i32
    %c0_i32_1 = arith.constant 0 : i32
    %c0_i32_2 = arith.constant 0 : i32
    return %arg0, %c0_i32, %c0_i32_0, %c0_i32_1 : i32, i32, i32, i32
  }
  func.func @transform_1(%arg0: i32) -> (i32, i32, i32, i32) {
    %c0_i32 = arith.constant 0 : i32
    %c0_i32_0 = arith.constant 0 : i32
    %c0_i32_1 = arith.constant 0 : i32
    %c0_i32_2 = arith.constant 0 : i32
    return %arg0, %c0_i32, %c0_i32_0, %c0_i32_1 : i32, i32, i32, i32
  }
  func.func @transform_2(%arg0: i32) -> (i32, i32) {
    %c0_i32 = arith.constant 0 : i32
    %c0_i32_0 = arith.constant 0 : i32
    %c0_i32_1 = arith.constant 0 : i32
    return %c0_i32, %c0_i32_0 : i32, i32
  }
  func.func @transform_3(%arg0: i32) -> (i32, i32) {
    %c0_i32 = arith.constant 0 : i32
    %c0_i32_0 = arith.constant 0 : i32
    %c0_i32_1 = arith.constant 0 : i32
    return %c0_i32, %c0_i32_0 : i32, i32
  }
  func.func @transform_4(%arg0: i32) -> (i32, i32, i32) {
    %c0_i32 = arith.constant 0 : i32
    %c0_i32_0 = arith.constant 0 : i32
    %c0_i32_1 = arith.constant 0 : i32
    %c0_i32_2 = arith.constant 0 : i32
    return %c0_i32, %c0_i32_0, %c0_i32_1 : i32, i32, i32
  }
  func.func @transform_5(%arg0: i32) -> (i32, i32) {
    %c0_i32 = arith.constant 0 : i32
    %c0_i32_0 = arith.constant 0 : i32
    %c0_i32_1 = arith.constant 0 : i32
    return %c0_i32, %c0_i32_0 : i32, i32
  }
  func.func @transform_6(%arg0: i32) -> (i32, i32, i32) {
    %c0_i32 = arith.constant 0 : i32
    %c0_i32_0 = arith.constant 0 : i32
    %c0_i32_1 = arith.constant 0 : i32
    %c0_i32_2 = arith.constant 0 : i32
    return %c0_i32, %c0_i32_0, %c0_i32_1 : i32, i32, i32
  }
  func.func @transform_7(%arg0: i32) -> (i32, i32) {
    %c0_i32 = arith.constant 0 : i32
    %c0_i32_0 = arith.constant 0 : i32
    %c0_i32_1 = arith.constant 0 : i32
    return %c0_i32, %c0_i32_0 : i32, i32
  }
  func.func @transform_8(%arg0: i32) -> (i32, i32) {
    %c0_i32 = arith.constant 0 : i32
    %c0_i32_0 = arith.constant 0 : i32
    %c0_i32_1 = arith.constant 0 : i32
    return %c0_i32, %c0_i32_0 : i32, i32
  }
  func.func @transform_9(%arg0: i32) -> (i32, i32) {
    %c0_i32 = arith.constant 0 : i32
    %c0_i32_0 = arith.constant 0 : i32
    %c0_i32_1 = arith.constant 0 : i32
    return %c0_i32, %c0_i32_0 : i32, i32
  }
  func.func @transform_10(%arg0: i32) -> (i32, i32) {
    %c0_i32 = arith.constant 0 : i32
    %c0_i32_0 = arith.constant 0 : i32
    %c0_i32_1 = arith.constant 0 : i32
    return %c0_i32, %c0_i32_0 : i32, i32
  }
  func.func @transform_11(%arg0: i32) -> (i32, i32) {
    %c0_i32 = arith.constant 0 : i32
    %c0_i32_0 = arith.constant 0 : i32
    %c0_i32_1 = arith.constant 0 : i32
    return %c0_i32, %c0_i32_0 : i32, i32
  }
  func.func @transform_12(%arg0: i32) -> (i32, i32) {
    %c0_i32 = arith.constant 0 : i32
    %c0_i32_0 = arith.constant 0 : i32
    %c0_i32_1 = arith.constant 0 : i32
    return %c0_i32, %c0_i32_0 : i32, i32
  }
  func.func @transform_13(%arg0: i32) -> (i32, i32) {
    %c0_i32 = arith.constant 0 : i32
    %c0_i32_0 = arith.constant 0 : i32
    %c0_i32_1 = arith.constant 0 : i32
    return %c0_i32, %c0_i32_0 : i32, i32
  }
  func.func @transform_14(%arg0: i32) -> (i32, i32, i32) {
    %c0_i32 = arith.constant 0 : i32
    %c0_i32_0 = arith.constant 0 : i32
    %c0_i32_1 = arith.constant 0 : i32
    return %arg0, %c0_i32, %c0_i32_0 : i32, i32, i32
  }
}

</mosaic_0001>

<bundles_post_ra>
// kernel: tpu_custom_call.1
= control target key start
LH: loop header
LB: loop body
LE: loop exit
PB: predicated region body
PF: predicated region fallthrough
CT: control target
= control target key end

     0   :  { %s6120_s29 = smov 0   ;;  %s8288_s0 = inlined_call_operand.vmem [shape: f32[2,16,8,16], index: 0, kind: input, shape index: {}]   ;;  %s8289_s1 = inlined_call_operand.vmem [shape: f32[2,16,8,16], index: 1, kind: input, shape index: {}]   ;;  %s8290_s2 = inlined_call_operand.vmem [shape: f32[1,16], index: 2, kind: input, shape index: {}]   ;;  %s8291_s3 = inlined_call_operand.vmem [shape: f32[1,16], index: 3, kind: input, shape index: {}]   ;;  %s8292_s4 = inlined_call_operand.vmem [shape: f32[3,48,32], index: 4, kind: input, shape index: {}]   ;;  %s8293_s5 = inlined_call_operand.vmem [shape: f32[1,32], index: 5, kind: input, shape index: {}]   ;;  %s8294_s6 = inlined_call_operand.vmem [shape: f32[3,96,32], index: 6, kind: input, shape index: {}]   ;;  %s8295_s7 = inlined_call_operand.vmem [shape: f32[1,32], index: 7, kind: input, shape index: {}]   ;;  %s8296_s8 = inlined_call_operand.vmem [shape: f32[1,32], index: 8, kind: input, shape index: {}]   ;;  %s8297_s9 = inlined_call_operand.vmem [shape: f32[32,2], index: 9, kind: input, shape index: {}]   ;;  %s8298_s10 = inlined_call_operand.vmem [shape: f32[2,32], index: 10, kind: input, shape index: {}]   ;;  %s8299_s11 = inlined_call_operand.vmem [shape: f32[16,32], index: 11, kind: input, shape index: {}]   ;;  %s8300_s12 = inlined_call_operand.vmem [shape: f32[1,32], index: 12, kind: input, shape index: {}]   ;;  %s8301_s13 = inlined_call_operand.vmem [shape: f32[1,32], index: 13, kind: input, shape index: {}]   ;;  %s8302_s14 = inlined_call_operand.vmem [shape: f32[2,64,32], index: 14, kind: output, shape index: {}]  }
   0x1 LB: > { %s5218_s30 = sadd.s32 4294967295, %s6038_s29   ;;  %p5222_p0 = scmp.ge.s32.totalorder %s6038_s29, 1  ;;  %s6038_s29 = sphi %s6120_s29, %s24_s29  }
   0x2   : > { %p422_p1 = scmp.lt.s32.totalorder %s6038_s29, 3 }
   0x4   : > { %p423_p2 = pnand %p5222_p0, %p422_p1 }
   0x5   : > { %p473_p3 = scmp.lt.s32.totalorder (!%p423_p2), %s5218_s30, 1  ;;  %s6041_s28 = smov (!%p423_p2), 16  }
   0x6   : > { %426 = sbr.rel (%p423_p2) target bundleno = 1544 (0x608), region = 76 }
   0xb   : > { %vm599_vm0 = vcmask 130048   ;;  %vm601_vm1 = vcmask 122880   ;;  %v8303_v0 = vmov 0.0   ;;  %s8333_s30 = smov (!%p473_p3, %s5218_s30), 1  ;;  %vm1015_vm2 = vcmask 261120   ;;  %v1229_v2 = vld [vmem:[%s8292_s4 + $0x28] sm:$0xff] }
   0xc   : > { %606 = vst.msk [vmem:[#allocation3] sm:$0xff] %vm599_vm0, %v8303_v0  ;;  %600 = vst.msk [vmem:[#allocation2] sm:$0xff] %vm599_vm0, %v8303_v0  ;;  %s5406_s15 = sshll.u32 %s8333_s30, 7  ;;  %v6186_v1 = vld [vmem:[%s8290_s2] ss:$0 sm:$0xff]  ;;  %5654 = vmatprep.subr.mxu1 %v1229_v2  ;;  %5618 = vmatprep.subr.mxu0 %v1229_v2  ;;  %vm902_vm3 = vcmask 1046528  }
   0xd   : > { %604 = vst.msk [vmem:[#allocation2 + $0x110] sm:$0xff] %vm599_vm0, %v8303_v0  ;;  %609 = vst.msk [vmem:[#allocation3 + $0x110] sm:$0xff] %vm599_vm0, %v8303_v0  ;;  %s6198_s22 = scalar_lea.vmem %s8288_s0, %s5406_s15  ;;  %s6203_s25 = scalar_lea.vmem %s8289_s1, %s5406_s15  ;;  %v6208_v3 = vld [vmem:[%s8291_s3] ss:$0 sm:$0xff]  ;;  %5655 = vmatpush3.msra.mxu1 %v1229_v2  ;;  %5619 = vmatpush3.msra.mxu0 %v1229_v2  ;;  %vm659_vm4 = vcmask 1040384   ;;  %vm1230_vm5 = vcmask 392192  }
   0xe   : > { %607 = vst.msk [vmem:[#allocation3 + $0x8] sm:$0x1] %vm601_vm1, %v8303_v0  ;;  %602 = vst.msk [vmem:[#allocation2 + $0x8] sm:$0x1] %vm601_vm1, %v8303_v0  ;;  %v491_v4 = vld [vmem:[%s6198_s22] sm:$0xff]  ;;  %v492_v5 = vld [vmem:[%s6198_s22 + $0x8] sm:$0xff] }
   0xf   : > { %605 = vst.msk [vmem:[#allocation2 + $0x118] sm:$0x1] %vm601_vm1, %v8303_v0  ;;  %610 = vst.msk [vmem:[#allocation3 + $0x118] sm:$0x1] %vm601_vm1, %v8303_v0  ;;  %v493_v6 = vld [vmem:[%s6198_s22 + $0x10] sm:$0xff]  ;;  %v529_v10 = vmul.f32 %v6186_v1, %v491_v4  ;;  %v530_v11 = vmul.f32 %v6186_v1, %v492_v5  ;;  %v507_v17 = vld [vmem:[%s6203_s25] sm:$0xff] }
  0x10   : > { %711 = vst.msk [vmem:[#allocation3 + $0x18] sm:$0x1] %vm601_vm1, %v8303_v0  ;;  %713 = vst.msk [vmem:[#allocation3 + $0x28] sm:$0x1] %vm601_vm1, %v8303_v0  ;;  %v531_v12 = vmul.f32 %v6186_v1, %v493_v6  ;;  %v508_v22 = vld [vmem:[%s6203_s25 + $0x8] sm:$0xff]  ;;  %v567_v24 = vmul.f32 %v6186_v1, %v507_v17  ;;  %v509_v25 = vld [vmem:[%s6203_s25 + $0x10] sm:$0xff] }
  0x11   : > { %715 = vst.msk [vmem:[#allocation3 + $0x38] sm:$0x1] %vm601_vm1, %v8303_v0  ;;  %717 = vst.msk [vmem:[#allocation3 + $0x48] sm:$0x1] %vm601_vm1, %v8303_v0  ;;  %v551_v19 = vadd.f32 %v6208_v3, %v529_v10  ;;  %v552_v20 = vadd.f32 %v6208_v3, %v530_v11  ;;  %v494_v26 = vld [vmem:[%s6198_s22 + $0x18] sm:$0xff]  ;;  %v568_v29 = vmul.f32 %v6186_v1, %v508_v22  ;;  %v511_v32 = vld [vmem:[%s6203_s25 + $0x20] sm:$0xff] }
  0x12   : > { %719 = vst.msk [vmem:[#allocation3 + $0x58] sm:$0x1] %vm601_vm1, %v8303_v0  ;;  %721 = vst.msk [vmem:[#allocation3 + $0x68] sm:$0x1] %vm601_vm1, %v8303_v0  ;;  %v553_v21 = vadd.f32 %v6208_v3, %v531_v12  ;;  %v569_v30 = vmul.f32 %v6186_v1, %v509_v25  ;;  %v510_v31 = vld [vmem:[%s6203_s25 + $0x18] sm:$0xff]  ;;  %s6042_s15 = smov 32   ;;  %v583_v33 = vadd.f32 %v6208_v3, %v567_v24 }
  0x13   : > { %723 = vst.msk [vmem:[#allocation3 + $0x78] sm:$0x1] %vm601_vm1, %v8303_v0  ;;  %725 = vst.msk [vmem:[#allocation3 + $0x88] sm:$0x1] %vm601_vm1, %v8303_v0  ;;  %v6213_v7 = vld [vmem:[#allocation3] sm:$0xff]  ;;  %v532_v34 = vmul.f32 %v6186_v1, %v494_v26  ;;  %v570_v35 = vmul.f32 %v6186_v1, %v510_v31  ;;  %v584_v38 = vadd.f32 %v6208_v3, %v568_v29  ;;  %v496_v42 = vld [vmem:[%s6198_s22 + $0x28] sm:$0xff] }
  0x14   : > { %727 = vst.msk [vmem:[#allocation3 + $0x98] sm:$0x1] %vm601_vm1, %v8303_v0  ;;  %729 = vst.msk [vmem:[#allocation3 + $0xa8] sm:$0x1] %vm601_vm1, %v8303_v0  ;;  %v6215_v9 = vld [vmem:[#allocation2] sm:$0xff]  ;;  %822 = vrot.lane.b32.xlu1 %v6213_v7, %s6041_s28  ;;  %v1096_v13 = vrot.slane %v6213_v7, 1  ;;  %v585_v39 = vadd.f32 %v6208_v3, %v569_v30  ;;  %v571_v40 = vmul.f32 %v6186_v1, %v511_v32 }
  0x15   : > { %731 = vst.msk [vmem:[#allocation3 + $0xb8] sm:$0x1] %vm601_vm1, %v8303_v0  ;;  %733 = vst.msk [vmem:[#allocation3 + $0xc8] sm:$0x1] %vm601_vm1, %v8303_v0  ;;  %v775_v8 = vld [vmem:[#allocation3 + $0x8] sm:$0x1]  ;;  %v554_v45 = vadd.f32 %v6208_v3, %v532_v34  ;;  %v586_v46 = vadd.f32 %v6208_v3, %v570_v35  ;;  %v534_v57 = vmul.f32 %v6186_v1, %v496_v42 }
  0x16   : > { %735 = vst.msk [vmem:[#allocation3 + $0xd8] sm:$0x1] %vm601_vm1, %v8303_v0  ;;  %737 = vst.msk [vmem:[#allocation3 + $0xe8] sm:$0x1] %vm601_vm1, %v8303_v0  ;;  %v1097_v14 = vrot.slane %v775_v8, 1  ;;  %v903_v16 = vrot.slane %v6215_v9, 1  ;;  %v587_v50 = vadd.f32 %v6208_v3, %v571_v40 }
  0x17   : > { %739 = vst.msk [vmem:[#allocation3 + $0xf8] sm:$0x1] %vm601_vm1, %v8303_v0  ;;  %741 = vst.msk [vmem:[#allocation3 + $0x108] sm:$0x1] %vm601_vm1, %v8303_v0  ;;  %v743_v15 = vld [vmem:[#allocation2 + $0x8] sm:$0x1]  ;;  %v556_v8 = vadd.f32 %v6208_v3, %v534_v57 }
  0x18   : > { %3723 = vst.msk [vmem:[#allocation4] sm:$0xff] %vm1015_vm2, %v8303_v0  ;;  %3729 = vst.msk [vmem:[#allocation5] sm:$0xff] %vm1015_vm2, %v8303_v0  ;;  %v904_v18 = vrot.slane %v743_v15, 1  ;;  %v1098_v23 = vsel %vm902_vm3, %v1096_v13, %v1097_v14  ;;  %v6237_v28 = vld [vmem:[#allocation3 + $0x38] sm:$0x1]  ;;  %v495_v36 = vld [vmem:[%s6198_s22 + $0x20] sm:$0xff] }
  0x19   : > { %710 = vst.msk [vmem:[#allocation3 + $0x10] sm:$0xff] %vm599_vm0, %v551_v19  ;;  %712 = vst.msk [vmem:[#allocation3 + $0x20] sm:$0xff] %vm599_vm0, %v552_v20  ;;  %1144 = vrot.lane.b32.xlu1 %v1098_v23, %s6042_s15  ;;  %v6249_v37 = vld [vmem:[#allocation3 + $0x18] sm:$0x1]  ;;  %v533_v41 = vmul.f32 %v6186_v1, %v495_v36  ;;  %v1106_v43 = vrot.slane %v6237_v28, 1  ;;  %v627_v44 = vrot.slane %v583_v33, 7 }
  0x1a   : > { %v905_v27 = vsel %vm902_vm3, %v903_v16, %v904_v18  ;;  %714 = vst.msk [vmem:[#allocation3 + $0x30] sm:$0xff] %vm599_vm0, %v553_v21  ;;  %v512_v47 = vld [vmem:[%s6203_s25 + $0x28] sm:$0xff]  ;;  %v628_v48 = vrot.slane %v584_v38, 7  ;;  %v629_v49 = vrot.slane %v585_v39, 7  ;;  %v513_v52 = vld [vmem:[%s6203_s25 + $0x30] sm:$0xff]  ;;  %v1100_v54 = vrot.slane %v6249_v37, 1 }
  0x1b   : > { %1032 = vrot.lane.b32.xlu0 %v905_v27, %s6041_s28  ;;  %v555_v51 = vadd.f32 %v6208_v3, %v533_v41  ;;  %v497_v53 = vld [vmem:[%s6198_s22 + $0x30] sm:$0xff]  ;;  %v660_v55 = vsel %vm659_vm4, 0.0, %v627_v44  ;;  %678 = vst.msk [vmem:[#allocation2 + $0x18] sm:$0x1] %vm601_vm1, %v627_v44  ;;  %v630_v56 = vrot.slane %v586_v46, 7  ;;  %v631_v61 = vrot.slane %v587_v50, 7 }
  0x1c   : > { %716 = vst.msk [vmem:[#allocation3 + $0x40] sm:$0xff] %vm599_vm0, %v554_v45  ;;  %677 = vst.msk [vmem:[#allocation2 + $0x10] sm:$0xff] %vm599_vm0, %v660_v55  ;;  %v779_v58 = vld [vmem:[#allocation3 + $0x28] sm:$0x1]  ;;  %v661_v59 = vsel %vm659_vm4, 0.0, %v628_v48  ;;  %v662_v60 = vsel %vm659_vm4, 0.0, %v629_v49  ;;  %v572_v62 = vmul.f32 %v6186_v1, %v512_v47  ;;  %v573_v10 = vmul.f32 %v6186_v1, %v513_v52 }
  0x1d   : > { %951 = vrot.lane.b32.xlu1 %v905_v27, %s6042_s15  ;;  %680 = vst.msk [vmem:[#allocation2 + $0x28] sm:$0x1] %vm601_vm1, %v628_v48  ;;  %682 = vst.msk [vmem:[#allocation2 + $0x38] sm:$0x1] %vm601_vm1, %v629_v49  ;;  %v498_v63 = vld [vmem:[%s6198_s22 + $0x38] sm:$0xff]  ;;  %v663_v6 = vsel %vm659_vm4, 0.0, %v630_v56  ;;  %v535_v11 = vmul.f32 %v6186_v1, %v497_v53 }
  0x1e   : > { %718 = vst.msk [vmem:[#allocation3 + $0x50] sm:$0xff] %vm599_vm0, %v555_v51  ;;  %679 = vst.msk [vmem:[#allocation2 + $0x20] sm:$0xff] %vm599_vm0, %v661_v59  ;;  %v664_v14 = vsel %vm659_vm4, 0.0, %v631_v61  ;;  %v514_v15 = vld [vmem:[%s6203_s25 + $0x38] sm:$0xff]  ;;  %v1103_v16 = vrot.slane %v779_v58, 1  ;;  %v588_v17 = vadd.f32 %v6208_v3, %v572_v62  ;;  %v589_v18 = vadd.f32 %v6208_v3, %v573_v10  ;;  %v515_v20 = vld [vmem:[%s6203_s25 + $0x40] sm:$0xff] }
  0x1f   : > { %681 = vst.msk [vmem:[#allocation2 + $0x30] sm:$0xff] %vm599_vm0, %v662_v60  ;;  %683 = vst.msk [vmem:[#allocation2 + $0x40] sm:$0xff] %vm599_vm0, %v663_v6  ;;  %v557_v19 = vadd.f32 %v6208_v3, %v535_v11  ;;  %v499_v21 = vld [vmem:[%s6198_s22 + $0x40] sm:$0xff]  ;;  %v536_v25 = vmul.f32 %v6186_v1, %v498_v63  ;;  %v574_v28 = vmul.f32 %v6186_v1, %v514_v15  ;;  %v6319_v30 = vld [vmem:[#allocation3 + $0x48] sm:$0x1]  ;;  %vm3724_vm6 = vcmask 253952  }
  0x20   : > { %v6278_v2 = vld [vmem:[#allocation3 + $0x10] sm:$0xff]  ;;  %v6280_v4 = vld [vmem:[#allocation3 + $0x20] sm:$0xff]  ;;  %684 = vst.msk [vmem:[#allocation2 + $0x48] sm:$0x1] %vm601_vm1, %v630_v56  ;;  %686 = vst.msk [vmem:[#allocation2 + $0x58] sm:$0x1] %vm601_vm1, %v631_v61  ;;  %v575_v32 = vmul.f32 %v6186_v1, %v515_v20  ;;  %v537_v33 = vmul.f32 %v6186_v1, %v499_v21 }
  0x21   : > { %v6282_v5 = vld [vmem:[#allocation3 + $0x30] sm:$0xff]  ;;  %824 = vrot.lane.b32.xlu0 %v6278_v2, %s6041_s28  ;;  %v1099_v12 = vrot.slane %v6278_v2, 1  ;;  %826 = vrot.lane.b32.xlu1 %v6280_v4, %s6041_s28  ;;  %685 = vst.msk [vmem:[#allocation2 + $0x50] sm:$0xff] %vm599_vm0, %v664_v14  ;;  %720 = vst.msk [vmem:[#allocation3 + $0x60] sm:$0xff] %vm599_vm0, %v556_v8  ;;  %v1102_v22 = vrot.slane %v6280_v4, 1  ;;  %v632_v26 = vrot.slane %v588_v17, 7  ;;  %v558_v31 = vadd.f32 %v6208_v3, %v536_v25 }
  0x22   : > { %v1105_v13 = vrot.slane %v6282_v5, 1  ;;  %v633_v27 = vrot.slane %v589_v18, 7  ;;  %722 = vst.msk [vmem:[#allocation3 + $0x70] sm:$0xff] %vm599_vm0, %v557_v19  ;;  %v745_v29 = vld [vmem:[#allocation2 + $0x18] sm:$0x1]  ;;  %v500_v37 = vld [vmem:[%s6198_s22 + $0x48] sm:$0xff]  ;;  %v590_v47 = vadd.f32 %v6208_v3, %v574_v28  ;;  %v559_v48 = vadd.f32 %v6208_v3, %v537_v33 }
  0x23   : > { %v1101_v24 = vsel %vm902_vm3, %v1099_v12, %v1100_v54  ;;  %v6325_v34 = vld [vmem:[#allocation2 + $0x10] sm:$0xff]  ;;  %v907_v35 = vrot.slane %v745_v29, 1  ;;  %688 = vst.msk [vmem:[#allocation2 + $0x68] sm:$0x1] %vm601_vm1, %v632_v26  ;;  %v1104_v39 = vsel %vm902_vm3, %v1102_v22, %v1103_v16  ;;  %v6341_v46 = vld [vmem:[#allocation3 + $0x40] sm:$0xff]  ;;  %v591_v50 = vadd.f32 %v6208_v3, %v575_v32  ;;  %v1227_v6 = vld [vmem:[%s8292_s4 + $0x18] sm:$0xff] }
  0x24   : > { %v1107_v23 = vsel %vm902_vm3, %v1105_v13, %v1106_v43  ;;  %v747_v36 = vld [vmem:[#allocation2 + $0x28] sm:$0x1]  ;;  %690 = vst.msk [vmem:[#allocation2 + $0x78] sm:$0x1] %vm601_vm1, %v633_v27  ;;  %v906_v38 = vrot.slane %v6325_v34, 1  ;;  %v538_v51 = vmul.f32 %v6186_v1, %v500_v37  ;;  %v1109_v53 = vrot.slane %v6319_v30, 1 }
  0x25   : > { %1150 = vrot.lane.b32.xlu0 %v1107_v23, %s6042_s15  ;;  %1146 = vrot.lane.b32.xlu1 %v1101_v24, %s6042_s15  ;;  %v6334_v40 = vld [vmem:[#allocation2 + $0x20] sm:$0xff]  ;;  %v910_v41 = vrot.slane %v747_v36, 1  ;;  %v749_v42 = vld [vmem:[#allocation2 + $0x38] sm:$0x1]  ;;  %724 = vst.msk [vmem:[#allocation3 + $0x80] sm:$0xff] %vm599_vm0, %v558_v31  ;;  %v516_v43 = vld [vmem:[%s6203_s25 + $0x48] sm:$0xff] }
  0x26   : > { %v909_v44 = vrot.slane %v6334_v40, 1  ;;  %v6339_v45 = vld [vmem:[#allocation2 + $0x30] sm:$0xff]  ;;  %v908_v49 = vsel %vm902_vm3, %v906_v38, %v907_v35  ;;  %v913_v52 = vrot.slane %v749_v42, 1  ;;  %v6353_v54 = vld [vmem:[#allocation2 + $0x40] sm:$0xff]  ;;  %726 = vst.msk [vmem:[#allocation3 + $0x90] sm:$0xff] %vm599_vm0, %v559_v48  ;;  %v576_v56 = vmul.f32 %v6186_v1, %v516_v43  ;;  %v502_v17 = vld [vmem:[%s6198_s22 + $0x58] sm:$0xff] }
  0x27   : > { %v751_v55 = vld [vmem:[#allocation2 + $0x48] sm:$0x1]  ;;  %v912_v58 = vrot.slane %v6339_v45, 1  ;;  %v1108_v59 = vrot.slane %v6341_v46, 1  ;;  %v665_v60 = vsel %vm659_vm4, 0.0, %v632_v26  ;;  %v1228_v61 = vld [vmem:[%s8292_s4 + $0x20] sm:$0xff]  ;;  %v560_v14 = vadd.f32 %v6208_v3, %v538_v51 }
  0x28   : > { %v6360_v57 = vsel %vm902_vm3, %v909_v44, %v910_v41  ;;  %687 = vst.msk [vmem:[#allocation2 + $0x60] sm:$0xff] %vm599_vm0, %v665_v60  ;;  %v666_v62 = vsel %vm659_vm4, 0.0, %v633_v27  ;;  %v634_v63 = vrot.slane %v590_v47, 7  ;;  %5656 = vmatprep.subr.mxu1 %v1228_v61  ;;  %5620 = vmatprep.subr.mxu0 %v1228_v61  ;;  %v915_v8 = vrot.slane %v6353_v54, 1  ;;  %v517_v15 = vld [vmem:[%s6203_s25 + $0x50] sm:$0xff]  ;;  %v518_v20 = vld [vmem:[%s6203_s25 + $0x58] sm:$0xff] }
  0x29   : > { %1034 = vrot.lane.b32.xlu0 %v908_v49, %s6041_s28  ;;  %1148 = vrot.lane.b32.xlu1 %v1104_v39, %s6042_s15  ;;  %v916_v10 = vrot.slane %v751_v55, 1  ;;  %689 = vst.msk [vmem:[#allocation2 + $0x70] sm:$0xff] %vm599_vm0, %v666_v62  ;;  %v635_v11 = vrot.slane %v591_v50, 7  ;;  %v501_v16 = vld [vmem:[%s6198_s22 + $0x50] sm:$0xff]  ;;  %v6393_v23 = vsel %vm902_vm3, %v912_v58, %v913_v52  ;;  %v1110_v24 = vsel %vm902_vm3, %v1108_v59, %v1109_v53  ;;  %v753_v25 = vld [vmem:[#allocation2 + $0x58] sm:$0x1] }
  0x2a   : > { %5657 = vmatpush3.msra.mxu1 %v1228_v61  ;;  %5621 = vmatpush3.msra.mxu0 %v1228_v61  ;;  %v6382_v18 = vld [vmem:[#allocation2 + $0x50] sm:$0xff]  ;;  %v667_v19 = vsel %vm659_vm4, 0.0, %v634_v63  ;;  %692 = vst.msk [vmem:[#allocation2 + $0x88] sm:$0x1] %vm601_vm1, %v634_v63  ;;  %v592_v27 = vadd.f32 %v6208_v3, %v576_v56  ;;  %v577_v28 = vmul.f32 %v6186_v1, %v517_v15  ;;  %v519_v31 = vld [vmem:[%s6203_s25 + $0x60] sm:$0xff]  ;;  %v1225_v39 = vld [vmem:[%s8292_s4 + $0x8] sm:$0xff] }
  0x2b   : > { %v1226_v21 = vld [vmem:[%s8292_s4 + $0x10] sm:$0xff]  ;;  %691 = vst.msk [vmem:[#allocation2 + $0x80] sm:$0xff] %vm599_vm0, %v667_v19  ;;  %v668_v26 = vsel %vm659_vm4, 0.0, %v635_v11  ;;  %728 = vst.msk [vmem:[#allocation3 + $0xa0] sm:$0xff] %vm599_vm0, %v560_v14  ;;  %5658 = vmatprep.subr.mxu1 %v1227_v6  ;;  %5622 = vmatprep.subr.mxu0 %v1227_v6  ;;  %v539_v29 = vmul.f32 %v6186_v1, %v501_v16  ;;  %v540_v30 = vmul.f32 %v6186_v1, %v502_v17  ;;  %v503_v32 = vld [vmem:[%s6198_s22 + $0x60] sm:$0xff]  ;;  %vm3974_vm13 = vcmask 523264  }
  0x2c   : > { %694 = vst.msk [vmem:[#allocation2 + $0x98] sm:$0x1] %vm601_vm1, %v635_v11  ;;  %5659 = vmatpush3.msra.mxu1 %v1227_v6  ;;  %5623 = vmatpush3.msra.mxu0 %v1227_v6  ;;  %v6412_v33 = vsel %vm902_vm3, %v915_v8, %v916_v10  ;;  %v918_v35 = vrot.slane %v6382_v18, 1  ;;  %v636_v36 = vrot.slane %v592_v27, 7  ;;  %v578_v37 = vmul.f32 %v6186_v1, %v518_v20  ;;  %v504_v52 = vld [vmem:[%s6198_s22 + $0x68] sm:$0xff]  ;;  %v1224_v55 = vld [vmem:[%s8292_s4] sm:$0xff] }
  0x2d   : > { %1036 = vrot.lane.b32.xlu0 %v6360_v57, %s6041_s28  ;;  %953 = vrot.lane.b32.xlu1 %v908_v49, %s6042_s15  ;;  %693 = vst.msk [vmem:[#allocation2 + $0x90] sm:$0xff] %vm599_vm0, %v668_v26  ;;  %v919_v41 = vrot.slane %v753_v25, 1  ;;  %v593_v42 = vadd.f32 %v6208_v3, %v577_v28  ;;  %v561_v43 = vadd.f32 %v6208_v3, %v539_v29  ;;  %v785_v62 = vld [vmem:[#allocation3 + $0x58] sm:$0x1]  ;;  %v520_v10 = vld [vmem:[%s6203_s25 + $0x68] sm:$0xff]  ;;  %v6452_v14 = vld [vmem:[#allocation3 + $0x50] sm:$0xff] }
  0x2e   : > { %5660 = vmatprep.subr.mxu1 %v1226_v21  ;;  %5624 = vmatprep.subr.mxu0 %v1226_v21  ;;  %v562_v47 = vadd.f32 %v6208_v3, %v540_v30  ;;  %v669_v48 = vsel %vm659_vm4, 0.0, %v636_v36  ;;  %696 = vst.msk [vmem:[#allocation2 + $0xa8] sm:$0x1] %vm601_vm1, %v636_v36  ;;  %v594_v49 = vadd.f32 %v6208_v3, %v578_v37  ;;  %v505_v15 = vld [vmem:[%s6198_s22 + $0x70] sm:$0xff]  ;;  %v6459_v16 = vld [vmem:[#allocation3 + $0x60] sm:$0xff]  ;;  %v1111_v26 = vrot.slane %v6452_v14, 1 }
  0x2f   : > { %v579_v50 = vmul.f32 %v6186_v1, %v519_v31  ;;  %v541_v51 = vmul.f32 %v6186_v1, %v503_v32  ;;  %5661 = vmatpush3.msra.mxu1 %v1226_v21  ;;  %5625 = vmatpush3.msra.mxu0 %v1226_v21  ;;  %695 = vst.msk [vmem:[#allocation2 + $0xa0] sm:$0xff] %vm599_vm0, %v669_v48  ;;  %v637_v53 = vrot.slane %v593_v42, 7  ;;  %730 = vst.msk [vmem:[#allocation3 + $0xb0] sm:$0xff] %vm599_vm0, %v561_v43  ;;  %v787_v17 = vld [vmem:[#allocation3 + $0x68] sm:$0x1] }
  0x30   : > { %732 = vst.msk [vmem:[#allocation3 + $0xc0] sm:$0xff] %vm599_vm0, %v562_v47  ;;  %5662 = vmatprep.subr.mxu1 %v1225_v39  ;;  %5626 = vmatprep.subr.mxu0 %v1225_v39  ;;  %v638_v56 = vrot.slane %v594_v49, 7  ;;  %v542_v6 = vmul.f32 %v6186_v1, %v504_v52  ;;  %v6450_v11 = vsel %vm902_vm3, %v918_v35, %v919_v41  ;;  %v1114_v30 = vrot.slane %v6459_v16, 1  ;;  %v755_v36 = vld [vmem:[#allocation2 + $0x68] sm:$0x1] }
  0x31   : > { %1038 = vrot.lane.b32.xlu0 %v6393_v23, %s6041_s28  ;;  %1152 = vrot.lane.b32.xlu1 %v1110_v24, %s6042_s15  ;;  %v595_v60 = vadd.f32 %v6208_v3, %v579_v50  ;;  %v563_v61 = vadd.f32 %v6208_v3, %v541_v51  ;;  %v670_v63 = vsel %vm659_vm4, 0.0, %v637_v53  ;;  %698 = vst.msk [vmem:[#allocation2 + $0xb8] sm:$0x1] %vm601_vm1, %v637_v53  ;;  %v1112_v24 = vrot.slane %v785_v62, 1  ;;  %v6496_v50 = vld [vmem:[#allocation2 + $0x70] sm:$0xff] }
  0x32   : > { %5663 = vmatpush3.msra.mxu1 %v1225_v39  ;;  %5627 = vmatpush3.msra.mxu0 %v1225_v39  ;;  %697 = vst.msk [vmem:[#allocation2 + $0xb0] sm:$0xff] %vm599_vm0, %v670_v63  ;;  %v671_v19 = vsel %vm659_vm4, 0.0, %v638_v56  ;;  %v564_v21 = vadd.f32 %v6208_v3, %v542_v6  ;;  %v580_v25 = vmul.f32 %v6186_v1, %v520_v10  ;;  %v1115_v31 = vrot.slane %v787_v17, 1  ;;  %v757_v51 = vld [vmem:[#allocation2 + $0x78] sm:$0x1]  ;;  %v6514_v63 = vld [vmem:[#allocation3 + $0x70] sm:$0xff] }
  0x33   : > { %700 = vst.msk [vmem:[#allocation2 + $0xc8] sm:$0x1] %vm601_vm1, %v638_v56  ;;  %5664 = vmatprep.subr.mxu1 %v1224_v55  ;;  %5628 = vmatprep.subr.mxu0 %v1224_v55  ;;  %v639_v20 = vrot.slane %v595_v60, 7  ;;  %v543_v29 = vmul.f32 %v6186_v1, %v505_v15  ;;  %v1113_v42 = vsel %vm902_vm3, %v1111_v26, %v1112_v24  ;;  %v922_v48 = vrot.slane %v755_v36, 1  ;;  %v789_v62 = vld [vmem:[#allocation3 + $0x78] sm:$0x1] }
  0x34   : > { %734 = vst.msk [vmem:[#allocation3 + $0xd0] sm:$0xff] %vm599_vm0, %v563_v61  ;;  %5665 = vmatpush3.msra.mxu1 %v1224_v55  ;;  %5629 = vmatpush3.msra.mxu0 %v1224_v55  ;;  %699 = vst.msk [vmem:[#allocation2 + $0xc0] sm:$0xff] %vm599_vm0, %v671_v19  ;;  %v596_v32 = vadd.f32 %v6208_v3, %v580_v25  ;;  %v1116_v43 = vsel %vm902_vm3, %v1114_v30, %v1115_v31  ;;  %v924_v56 = vrot.slane %v6496_v50, 1  ;;  %v6516_v6 = vld [vmem:[#allocation3 + $0x80] sm:$0xff]  ;;  %v791_v10 = vld [vmem:[#allocation3 + $0x88] sm:$0x1] }
  0x35   : > { %1040 = vrot.lane.b32.xlu0 %v6412_v33, %s6041_s28  ;;  %955 = vrot.lane.b32.xlu1 %v6360_v57, %s6042_s15  ;;  %v521_v57 = vld [vmem:[%s6203_s25 + $0x70] sm:$0xff]  ;;  %v672_v27 = vsel %vm659_vm4, 0.0, %v639_v20  ;;  %702 = vst.msk [vmem:[#allocation2 + $0xd8] sm:$0x1] %vm601_vm1, %v639_v20  ;;  %v565_v41 = vadd.f32 %v6208_v3, %v543_v29  ;;  %v925_v60 = vrot.slane %v757_v51, 1  ;;  %v1118_v15 = vrot.slane %v789_v62, 1 }
  0x36   : > { %736 = vst.msk [vmem:[#allocation3 + $0xe0] sm:$0xff] %vm599_vm0, %v564_v21  ;;  %v581_v28 = vmul.f32 %v6186_v1, %v521_v57  ;;  %701 = vst.msk [vmem:[#allocation2 + $0xd0] sm:$0xff] %vm599_vm0, %v672_v27  ;;  %v640_v39 = vrot.slane %v596_v32, 7  ;;  %v1117_v57 = vrot.slane %v6514_v63, 1  ;;  %v1121_v17 = vrot.slane %v791_v10, 1  ;;  %v6523_v19 = vld [vmem:[#allocation2 + $0x80] sm:$0xff] }
  0x37   : > { %738 = vst.msk [vmem:[#allocation3 + $0xf0] sm:$0xff] %vm599_vm0, %v565_v41  ;;  %v926_v61 = vsel %vm902_vm3, %v924_v56, %v925_v60  ;;  %v759_v20 = vld [vmem:[#allocation2 + $0x88] sm:$0x1]  ;;  %v927_v24 = vrot.slane %v6523_v19, 1  ;;  %v6536_v27 = vld [vmem:[#allocation2 + $0x90] sm:$0xff]  ;;  %v6551_v41 = vld [vmem:[#allocation3 + $0xa0] sm:$0xff] }
  0x38   : > { %v597_v37 = vadd.f32 %v6208_v3, %v581_v28  ;;  %v673_v49 = vsel %vm659_vm4, 0.0, %v640_v39  ;;  %704 = vst.msk [vmem:[#allocation2 + $0xe8] sm:$0x1] %vm601_vm1, %v640_v39  ;;  %v1119_v21 = vsel %vm902_vm3, %v1117_v57, %v1118_v15  ;;  %v928_v25 = vrot.slane %v759_v20, 1  ;;  %v761_v28 = vld [vmem:[#allocation2 + $0x98] sm:$0x1] }
  0x39   : > { %1042 = vrot.lane.b32.xlu0 %v6450_v11, %s6041_s28  ;;  %957 = vrot.lane.b32.xlu1 %v6393_v23, %s6042_s15  ;;  %v6478_v23 = vld [vmem:[#allocation2 + $0x60] sm:$0xff]  ;;  %703 = vst.msk [vmem:[#allocation2 + $0xe0] sm:$0xff] %vm599_vm0, %v673_v49  ;;  %v8312_v31 = vrot.slane %v6536_v27, 1  ;;  %v931_v32 = vrot.slane %v761_v28, 1  ;;  %v6549_v39 = vld [vmem:[#allocation3 + $0x90] sm:$0xff]  ;;  %v8310_v49 = vrot.slane %v6551_v41, 1 }
  0x3a   : > { %v921_v47 = vrot.slane %v6478_v23, 1  ;;  %v641_v52 = vrot.slane %v597_v37, 7  ;;  %v929_v29 = vsel %vm902_vm3, %v927_v24, %v928_v25  ;;  %v793_v37 = vld [vmem:[#allocation3 + $0x98] sm:$0x1]  ;;  %v6570_v10 = vld [vmem:[#allocation2 + $0xb0] sm:$0xff] }
  0x3b   : > { %v932_v36 = vsel %vm902_vm3, %v8312_v31, %v931_v32  ;;  %v765_v15 = vld [vmem:[#allocation2 + $0xb8] sm:$0x1]  ;;  %v8306_v20 = vrot.slane %v6570_v10, 1  ;;  %v6583_v28 = vld [vmem:[#allocation3 + $0xb0] sm:$0xff]  ;;  %v6585_v32 = vld [vmem:[#allocation3 + $0xc0] sm:$0xff] }
  0x3c   : > { %v674_v53 = vsel %vm659_vm4, 0.0, %v641_v52  ;;  %706 = vst.msk [vmem:[#allocation2 + $0xf8] sm:$0x1] %vm601_vm1, %v641_v52  ;;  %v923_v55 = vsel %vm902_vm3, %v921_v47, %v922_v48  ;;  %v1124_v48 = vrot.slane %v793_v37, 1  ;;  %v6557_v52 = vld [vmem:[#allocation2 + $0xa0] sm:$0xff] }
  0x3d   : > { %828 = vrot.lane.b32.xlu0 %v6282_v5, %s6041_s28  ;;  %830 = vrot.lane.b32.xlu1 %v6341_v46, %s6041_s28  ;;  %705 = vst.msk [vmem:[#allocation2 + $0xf0] sm:$0xff] %vm599_vm0, %v674_v53  ;;  %v763_v53 = vld [vmem:[#allocation2 + $0xa8] sm:$0x1]  ;;  %v797_v25 = vld [vmem:[#allocation3 + $0xb8] sm:$0x1] }
  0x3e   : > { %v934_v62 = vrot.slane %v763_v53, 1  ;;  %v799_v37 = vld [vmem:[#allocation3 + $0xc8] sm:$0x1]  ;;  %v6591_v53 = vld [vmem:[#allocation2 + $0xc0] sm:$0xff] }
  0x41   : > { %1154 = vrot.lane.b32.xlu0 %v1113_v42, %s6042_s15  ;;  %1156 = vrot.lane.b32.xlu1 %v1116_v43, %s6042_s15  ;;  %v795_v42 = vld [vmem:[#allocation3 + $0xa8] sm:$0x1]  ;;  %v8317_v43 = vrot.slane %v6549_v39, 1 }
  0x42   : > { %v1127_v51 = vrot.slane %v795_v42, 1  ;;  %v8309_v42 = vrot.slane %v6583_v28, 1 }
  0x43   : > { %v773_v31 = vld [vmem:[#allocation2 + $0xf8] sm:$0x1] }
  0x44   : > { %v1128_v60 = vsel %vm902_vm3, %v8310_v49, %v1127_v51  ;;  %v8305_v51 = vrot.slane %v6585_v32, 1  ;;  %v771_v49 = vld [vmem:[#allocation2 + $0xe8] sm:$0x1] }
  0x45   : > { %1044 = vrot.lane.b32.xlu0 %v923_v55, %s6041_s28  ;;  %959 = vrot.lane.b32.xlu1 %v6412_v33, %s6042_s15  ;;  %v1120_v33 = vrot.slane %v6516_v6, 1 }
  0x49   : > { %1046 = vrot.lane.b32.xlu0 %v926_v61, %s6041_s28  ;;  %961 = vrot.lane.b32.xlu1 %v6450_v11, %s6042_s15  ;;  %v1122_v11 = vsel %vm902_vm3, %v1120_v33, %v1121_v17 }
  0x4d   : > { %832 = vrot.lane.b32.xlu0 %v6452_v14, %s6041_s28  ;;  %834 = vrot.lane.b32.xlu1 %v6459_v16, %s6041_s28 }
  0x51   : > { %1158 = vrot.lane.b32.xlu0 %v1119_v21, %s6042_s15  ;;  %1160 = vrot.lane.b32.xlu1 %v1122_v11, %s6042_s15  ;;  %v937_v21 = vrot.slane %v765_v15, 1 }
  0x53   : > { %v938_v11 = vsel %vm902_vm3, %v8306_v20, %v937_v21  ;;  %v6604_v21 = vld [vmem:[#allocation2 + $0xd0] sm:$0xff]  ;;  %v803_v20 = vld [vmem:[#allocation3 + $0xe8] sm:$0x1] }
  0x55   : > { %1048 = vrot.lane.b32.xlu0 %v929_v29, %s6041_s28  ;;  %963 = vrot.lane.b32.xlu1 %v923_v55, %s6042_s15  ;;  %v1125_v55 = vsel %vm902_vm3, %v8317_v43, %v1124_v48  ;;  %v1130_v48 = vrot.slane %v797_v25, 1  ;;  %v769_v25 = vld [vmem:[#allocation2 + $0xd8] sm:$0x1] }
  0x56   : > { %v943_v0 = vrot.slane %v769_v25, 1 }
  0x59   : > { %1050 = vrot.lane.b32.xlu0 %v932_v36, %s6041_s28  ;;  %965 = vrot.lane.b32.xlu1 %v926_v61, %s6042_s15  ;;  %v8311_v61 = vrot.slane %v6557_v52, 1 }
  0x5b   : > { %v935_v17 = vsel %vm902_vm3, %v8311_v61, %v934_v62  ;;  %v8307_v62 = vrot.slane %v6591_v53, 1 }
  0x5d   : > { %836 = vrot.lane.b32.xlu0 %v6514_v63, %s6041_s28  ;;  %838 = vrot.lane.b32.xlu1 %v6516_v6, %s6041_s28 }
  0x61   : > { %1162 = vrot.lane.b32.xlu0 %v1125_v55, %s6042_s15  ;;  %1164 = vrot.lane.b32.xlu1 %v1128_v60, %s6042_s15  ;;  %v767_v55 = vld [vmem:[#allocation2 + $0xc8] sm:$0x1] }
  0x62   : > { %v940_v15 = vrot.slane %v767_v55, 1  ;;  %v801_v55 = vld [vmem:[#allocation3 + $0xd8] sm:$0x1] }
  0x65   : > { %1052 = vrot.lane.b32.xlu0 %v935_v17, %s6041_s28  ;;  %967 = vrot.lane.b32.xlu1 %v929_v29, %s6042_s15  ;;  %v1133_v29 = vrot.slane %v799_v37, 1  ;;  %v941_v37 = vsel %vm902_vm3, %v8307_v62, %v940_v15  ;;  %v1136_v62 = vrot.slane %v801_v55, 1 }
  0x67   : > { %v1134_v60 = vsel %vm902_vm3, %v8305_v51, %v1133_v29  ;;  %v522_v51 = vld [vmem:[%s6203_s25 + $0x78] sm:$0xff] }
  0x68   : > { %v582_v15 = vmul.f32 %v6186_v1, %v522_v51 }
  0x69   : > { %1054 = vrot.lane.b32.xlu0 %v938_v11, %s6041_s28  ;;  %969 = vrot.lane.b32.xlu1 %v932_v36, %s6042_s15  ;;  %v1131_v36 = vsel %vm902_vm3, %v8309_v42, %v1130_v48  ;;  %v8308_v48 = vrot.slane %v6604_v21, 1  ;;  %v6628_v42 = vld [vmem:[#allocation2 + $0xe0] sm:$0xff] }
  0x6a   : > { %v598_v25 = vadd.f32 %v6208_v3, %v582_v15  ;;  %v8315_v55 = vrot.slane %v6628_v42, 1  ;;  %v946_v15 = vrot.slane %v771_v49, 1 }
  0x6b   : > { %v944_v29 = vsel %vm902_vm3, %v8308_v48, %v943_v0  ;;  %v1139_v48 = vrot.slane %v803_v20, 1 }
  0x6c   : > { %v642_v61 = vrot.slane %v598_v25, 7  ;;  %v6644_v25 = vld [vmem:[#allocation2 + $0xf0] sm:$0xff] }
  0x6d   : > { %840 = vrot.lane.b32.xlu0 %v6549_v39, %s6041_s28  ;;  %842 = vrot.lane.b32.xlu1 %v6551_v41, %s6041_s28 }
  0x6e   : > { %708 = vst.msk [vmem:[#allocation2 + $0x108] sm:$0x1] %vm601_vm1, %v642_v61 }
  0x71   : > { %1166 = vrot.lane.b32.xlu0 %v1131_v36, %s6042_s15  ;;  %1168 = vrot.lane.b32.xlu1 %v1134_v60, %s6042_s15  ;;  %v6618_v36 = vld [vmem:[#allocation3 + $0xd0] sm:$0xff]  ;;  %v6620_v60 = vld [vmem:[#allocation3 + $0xe0] sm:$0xff] }
  0x72   : > { %v8314_v0 = vrot.slane %v6620_v60, 1 }
  0x74   : > { %v1140_v20 = vsel %vm902_vm3, %v8314_v0, %v1139_v48  ;;  %v949_v48 = vrot.slane %v773_v31, 1 }
  0x75   : > { %1056 = vrot.lane.b32.xlu0 %v941_v37, %s6041_s28  ;;  %971 = vrot.lane.b32.xlu1 %v935_v17, %s6042_s15  ;;  %v8313_v17 = vrot.slane %v6618_v36, 1 }
  0x77   : > { %v1137_v51 = vsel %vm902_vm3, %v8313_v17, %v1136_v62  ;;  %v947_v62 = vsel %vm902_vm3, %v8315_v55, %v946_v15  ;;  %v8316_v17 = vrot.slane %v6644_v25, 1  ;;  %v805_v15 = vld [vmem:[#allocation3 + $0xf8] sm:$0x1] }
  0x78   : > { %v1682_v55 = vld [vmem:[#allocation3 + $0x18] sm:$0x1]  ;;  %v1142_v31 = vrot.slane %v805_v15, 1 }
  0x79   : > { %1058 = vrot.lane.b32.xlu0 %v944_v29, %s6041_s28  ;;  %973 = vrot.lane.b32.xlu1 %v938_v11, %s6042_s15  ;;  %v675_v11 = vsel %vm659_vm4, 0.0, %v642_v61  ;;  %v506_v61 = vld [vmem:[%s6198_s22 + $0x78] sm:$0xff] }
  0x7a   : > { %707 = vst.msk [vmem:[#allocation2 + $0x100] sm:$0xff] %vm599_vm0, %v675_v11  ;;  %v544_v0 = vmul.f32 %v6186_v1, %v506_v61  ;;  %v950_v11 = vsel %vm902_vm3, %v8316_v17, %v949_v48  ;;  %v6666_v1 = vld [vmem:[%s8292_s4 + $0x58] sm:$0xff]  ;;  %v2002_v61 = vrot.slane %v1682_v55, 1 }
  0x7b   : > { %5726 = vmatprep.subr.mxu1 %v6666_v1  ;;  %5690 = vmatprep.subr.mxu0 %v6666_v1  ;;  %v1650_v48 = vld [vmem:[#allocation2 + $0x18] sm:$0x1] }
  0x7c   : > { %v566_v49 = vadd.f32 %v6208_v3, %v544_v0  ;;  %v1810_v55 = vrot.slane %v1650_v48, 1 }
  0x7d   : > { %844 = vrot.lane.b32.xlu0 %v6583_v28, %s6041_s28  ;;  %846 = vrot.lane.b32.xlu1 %v6585_v32, %s6041_s28 }
  0x7e   : > { %740 = vst.msk [vmem:[#allocation3 + $0x100] sm:$0xff] %vm599_vm0, %v566_v49 }
  0x81   : > { %1170 = vrot.lane.b32.xlu0 %v1137_v51, %s6042_s15  ;;  %1172 = vrot.lane.b32.xlu1 %v1140_v20, %s6042_s15  ;;  %v6661_v20 = vld [vmem:[#allocation3 + $0xf0] sm:$0xff] }
  0x82   : > { %v1141_v3 = vrot.slane %v6661_v20, 1 }
  0x84   : > { %v1143_v15 = vsel %vm902_vm3, %v1141_v3, %v1142_v31  ;;  %v1811_v31 = vsel %vm902_vm3, %v906_v38, %v1810_v55 }
  0x85   : > { %1060 = vrot.lane.b32.xlu0 %v947_v62, %s6041_s28  ;;  %975 = vrot.lane.b32.xlu1 %v941_v37, %s6042_s15 }
  0x86   : > { %v823_v51 = vpop.permute.xlu1 %822 }
  0x87   : > { %v999_v17 = vsel %vm599_vm0, %v6215_v9, %v823_v51  ;;  %v1652_v9 = vld [vmem:[#allocation2 + $0x28] sm:$0x1] }
  0x89   : > { %1062 = vrot.lane.b32.xlu0 %v950_v11, %s6041_s28  ;;  %977 = vrot.lane.b32.xlu1 %v944_v29, %s6042_s15 }
  0x8b   : > { %v1145_v37 = vpop.permute.xlu1 %1144 }
  0x8d   : > { %v1033_v0 = vpop.permute.xlu0 %1032  ;;  %848 = vrot.lane.b32.xlu0 %v6618_v36, %s6041_s28  ;;  %850 = vrot.lane.b32.xlu1 %v6620_v60, %s6041_s28 }
  0x8e   : > { %v1192_v49 = vsel %vm599_vm0, %v6213_v7, %v1033_v0  ;;  %v2003_v7 = vsel %vm902_vm3, %v1099_v12, %v2002_v61  ;;  %v1813_v0 = vrot.slane %v1652_v9, 1  ;;  %v1686_v61 = vld [vmem:[#allocation3 + $0x38] sm:$0x1]  ;;  %v5267_v9 = vld [vmem:[%s8292_s4 + $0x50] sm:$0xff] }
  0x8f   : > { %v1208_v29 = vsel %vm1015_vm2, %v1192_v49, %v1145_v37  ;;  %v952_v43 = vpop.permute.xlu1 %951  ;;  %v2008_v55 = vrot.slane %v1686_v61, 1 }
  0x90   : > { %5666 = vmatprep.mubr.msk.f32.mxu1 %vm1230_vm5, %v1208_v29  ;;  %v1016_v51 = vsel %vm1015_vm2, %v999_v17, %v952_v43  ;;  %v6701_v12 = vsel %vm902_vm3, %v909_v44, %v1813_v0  ;;  %v1684_v17 = vld [vmem:[#allocation3 + $0x28] sm:$0x1] }
  0x91   : > { %1174 = vrot.lane.b32.xlu0 %v1143_v15, %s6042_s15  ;;  %5630 = vmatprep.mubr.msk.f32.mxu0 %vm1230_vm5, %v1016_v51  ;;  %v2005_v38 = vrot.slane %v1684_v17, 1 }
  0x92   : > { %2049 = vrot.lane.b32.xlu1 %v2003_v7, %s6042_s15  ;;  %v1654_v7 = vld [vmem:[#allocation2 + $0x38] sm:$0x1] }
  0x93   : > { %v825_v37 = vpop.permute.xlu0 %824  ;;  %v827_v48 = vpop.permute.xlu1 %826  ;;  %v1816_v51 = vrot.slane %v1654_v7, 1  ;;  %v5265_v7 = vld [vmem:[%s8292_s4 + $0x40] sm:$0xff] }
  0x94   : > { %v1000_v0 = vsel %vm599_vm0, %v6325_v34, %v825_v37  ;;  %v5266_v34 = vld [vmem:[%s8292_s4 + $0x48] sm:$0xff] }
  0x95   : > { %1937 = vrot.lane.b32.xlu0 %v1811_v31, %s6041_s28 }
  0x96   : > { %979 = vrot.lane.b32.xlu1 %v947_v62, %s6042_s15 }
  0x97   : > { %v1151_v49 = vpop.permute.xlu0 %1150  ;;  %v1147_v43 = vpop.permute.xlu1 %1146 }
  0x99   : > { %1939 = vrot.lane.b32.xlu0 %v6701_v12, %s6041_s28 }
  0x9a   : > { %981 = vrot.lane.b32.xlu1 %v950_v11, %s6042_s15  ;;  %v2006_v11 = vsel %vm902_vm3, %v1102_v22, %v2005_v38 }
  0x9b   : > { %v1035_v29 = vpop.permute.xlu0 %1034  ;;  %v1149_v15 = vpop.permute.xlu1 %1148 }
  0x9c   : > { %v1193_v62 = vsel %vm599_vm0, %v6278_v2, %v1035_v29  ;;  %v1656_v29 = vld [vmem:[#allocation2 + $0x48] sm:$0x1] }
  0x9d   : > { %852 = vrot.lane.b32.xlu0 %v6661_v20, %s6041_s28  ;;  %v1209_v44 = vsel %vm1015_vm2, %v1193_v62, %v1147_v43  ;;  %v2009_v43 = vsel %vm902_vm3, %v1105_v13, %v2008_v55  ;;  %v6740_v13 = vsel %vm902_vm3, %v912_v58, %v1816_v51  ;;  %v1819_v37 = vrot.slane %v1656_v29, 1 }
  0x9e   : > { %5667 = vmatmul.mubr.msk.f32.vlgmr.msra.gmra.mxu1 %vm1230_vm5, %v1209_v44  ;;  %1729 = vrot.lane.b32.xlu1 %v6278_v2, %s6041_s28  ;;  %v1001_v44 = vsel %vm599_vm0, %v6334_v40, %v827_v48  ;;  %v5263_v48 = vld [vmem:[%s8292_s4 + $0x30] sm:$0xff] }
  0x9f   : > { %v1037_v17 = vpop.permute.xlu0 %1036  ;;  %v954_v61 = vpop.permute.xlu1 %953  ;;  %5727 = vmatpush3.msra.mxu1 %v6666_v1 }
  0xa0   : > { %v1194_v2 = vsel %vm599_vm0, %v6280_v4, %v1037_v17  ;;  %v1017_v62 = vsel %vm1015_vm2, %v1000_v0, %v954_v61  ;;  %5728 = vmatprep.subr.mxu1 %v5267_v9  ;;  %v1688_v0 = vld [vmem:[#allocation3 + $0x48] sm:$0x1]  ;;  %v1690_v61 = vld [vmem:[#allocation3 + $0x58] sm:$0x1] }
  0xa1   : > { %2051 = vrot.lane.b32.xlu0 %v2006_v11, %s6042_s15  ;;  %v1210_v22 = vsel %vm1015_vm2, %v1194_v2, %v1149_v15  ;;  %5631 = vmatmul.mubr.msk.f32.vlgmr.msra.gmra.mxu0 %vm1230_vm5, %v1017_v62  ;;  %v2014_v29 = vrot.slane %v1690_v61, 1  ;;  %v1658_v2 = vld [vmem:[#allocation2 + $0x58] sm:$0x1] }
  0xa2   : > { %5669 = vmatprep.mubr.msk.f32.mxu1 %vm1230_vm5, %v1210_v22  ;;  %2053 = vrot.lane.b32.xlu1 %v2009_v43, %s6042_s15  ;;  %v1822_v62 = vrot.slane %v1658_v2, 1 }
  0xa3   : > { %v1039_v38 = vpop.permute.xlu0 %1038  ;;  %v1153_v55 = vpop.permute.xlu1 %1152  ;;  %5729 = vmatpush3.msra.mxu1 %v5267_v9  ;;  %5691 = vmatpush3.msra.mxu0 %v6666_v1  ;;  %v6756_v1 = vsel %vm902_vm3, %v915_v8, %v1819_v37  ;;  %v5264_v8 = vld [vmem:[%s8292_s4 + $0x38] sm:$0xff] }
  0xa4   : > { %v1195_v15 = vsel %vm599_vm0, %v6282_v5, %v1039_v38  ;;  %5730 = vmatprep.subr.mxu1 %v5266_v34  ;;  %5692 = vmatprep.subr.mxu0 %v5267_v9  ;;  %v1660_v38 = vld [vmem:[#allocation2 + $0x68] sm:$0x1] }
  0xa5   : > { %1941 = vrot.lane.b32.xlu0 %v6740_v13, %s6041_s28  ;;  %v1211_v58 = vsel %vm1015_vm2, %v1195_v15, %v1151_v49  ;;  %5731 = vmatpush3.msra.mxu1 %v5266_v34 }
  0xa6   : > { %5670 = vmatmul.mubr.msk.f32.gmra.mxu1 %vm1230_vm5, %v1211_v58  ;;  %1857 = vrot.lane.b32.xlu1 %v1811_v31, %s6042_s15  ;;  %v2011_v31 = vrot.slane %v1688_v0, 1 }
  0xa7   : > { %v1041_v11 = vpop.permute.xlu0 %1040  ;;  %v956_v51 = vpop.permute.xlu1 %955  ;;  %5732 = vmatprep.subr.mxu1 %v5265_v7  ;;  %5693 = vmatpush3.msra.mxu0 %v5267_v9 }
  0xa8   : > { %v1196_v49 = vsel %vm599_vm0, %v6341_v46, %v1041_v11  ;;  %v1018_v17 = vsel %vm1015_vm2, %v1001_v44, %v956_v51  ;;  %5733 = vmatpush3.msra.mxu1 %v5265_v7  ;;  %5694 = vmatprep.subr.mxu0 %v5266_v34  ;;  %v1692_v51 = vld [vmem:[#allocation3 + $0x68] sm:$0x1] }
  0xa9   : > { %1943 = vrot.lane.b32.xlu0 %v6756_v1, %s6041_s28  ;;  %v1212_v40 = vsel %vm1015_vm2, %v1196_v49, %v1153_v55  ;;  %5633 = vmatprep.mubr.msk.f32.mxu0 %vm1230_vm5, %v1018_v17 }
  0xaa   : > { %5672 = vmatprep.mubr.msk.f32.mxu1 %vm1230_vm5, %v1212_v40  ;;  %1859 = vrot.lane.b32.xlu1 %v6701_v12, %s6042_s15  ;;  %v2012_v12 = vsel %vm902_vm3, %v1108_v59, %v2011_v31  ;;  %v1823_v59 = vsel %vm902_vm3, %v918_v35, %v1822_v62  ;;  %v1662_v40 = vld [vmem:[#allocation2 + $0x78] sm:$0x1] }
  0xab   : > { %v1043_v9 = vpop.permute.xlu0 %1042  ;;  %v958_v43 = vpop.permute.xlu1 %957  ;;  %5734 = vmatprep.subr.mxu1 %v5264_v8  ;;  %5695 = vmatpush3.msra.mxu0 %v5266_v34  ;;  %v2015_v34 = vsel %vm902_vm3, %v1111_v26, %v2014_v29  ;;  %v1825_v26 = vrot.slane %v1660_v38, 1  ;;  %v1664_v29 = vld [vmem:[#allocation2 + $0x88] sm:$0x1] }
  0xac   : > { %5735 = vmatpush3.msra.mxu1 %v5264_v8  ;;  %5696 = vmatprep.subr.mxu0 %v5265_v7  ;;  %v1197_v55 = vsel %vm599_vm0, %v6452_v14, %v1043_v9  ;;  %v1696_v38 = vld [vmem:[#allocation3 + $0x88] sm:$0x1] }
  0xad   : > { %1731 = vrot.lane.b32.xlu0 %v6280_v4, %s6041_s28  ;;  %5736 = vmatprep.subr.mxu1 %v5263_v48  ;;  %v1826_v35 = vsel %vm902_vm3, %v921_v47, %v1825_v26  ;;  %v2017_v47 = vrot.slane %v1692_v51, 1  ;;  %v1698_v26 = vld [vmem:[#allocation3 + $0x98] sm:$0x1] }
  0xae   : > { %1733 = vrot.lane.b32.xlu1 %v6282_v5, %s6041_s28  ;;  %5737 = vmatpush3.msra.mxu1 %v5263_v48 }
  0xaf   : > { %v829_v22 = vpop.permute.xlu0 %828  ;;  %v831_v37 = vpop.permute.xlu1 %830  ;;  %5697 = vmatpush3.msra.mxu0 %v5265_v7  ;;  %v2018_v31 = vsel %vm902_vm3, %v1114_v30, %v2017_v47  ;;  %v1831_v30 = vrot.slane %v1664_v29, 1  ;;  %v1702_v29 = vld [vmem:[#allocation3 + $0xb8] sm:$0x1] }
  0xb0   : > { %v1002_v4 = vsel %vm599_vm0, %v6339_v45, %v829_v22  ;;  %5698 = vmatprep.subr.mxu0 %v5264_v8  ;;  %v1003_v58 = vsel %vm599_vm0, %v6353_v54, %v831_v37  ;;  %v1694_v54 = vld [vmem:[#allocation3 + $0x78] sm:$0x1] }
  0xb1   : > { %2055 = vrot.lane.b32.xlu0 %v2012_v12, %s6042_s15  ;;  %v1019_v5 = vsel %vm1015_vm2, %v1002_v4, %v958_v43  ;;  %5699 = vmatpush3.msra.mxu0 %v5264_v8  ;;  %v2020_v8 = vrot.slane %v1694_v54, 1 }
  0xb2   : > { %5634 = vmatmul.mubr.msk.f32.gmra.mxu0 %vm1230_vm5, %v1019_v5  ;;  %2057 = vrot.lane.b32.xlu1 %v2015_v34, %s6042_s15 }
  0xb3   : > { %v1155_v15 = vpop.permute.xlu0 %1154  ;;  %v1157_v45 = vpop.permute.xlu1 %1156  ;;  %5700 = vmatprep.subr.mxu0 %v5263_v48 }
  0xb4   : > { %v1213_v7 = vsel %vm1015_vm2, %v1197_v55, %v1155_v15  ;;  %5701 = vmatpush3.msra.mxu0 %v5263_v48  ;;  %v1828_v48 = vrot.slane %v1662_v40, 1  ;;  %v2026_v15 = vrot.slane %v1698_v26, 1 }
  0xb5   : > { %1945 = vrot.lane.b32.xlu0 %v1823_v59, %s6041_s28  ;;  %5673 = vmatmul.mubr.msk.f32.gmra.mxu1 %vm1230_vm5, %v1213_v7 }
  0xb6   : > { %1861 = vrot.lane.b32.xlu1 %v6740_v13, %s6042_s15 }
  0xb7   : > { %v1045_v44 = vpop.permute.xlu0 %1044  ;;  %v960_v11 = vpop.permute.xlu1 %959 }
  0xb8   : > { %v1198_v0 = vsel %vm599_vm0, %v6459_v16, %v1045_v44  ;;  %v1020_v49 = vsel %vm1015_vm2, %v1003_v58, %v960_v11 }
  0xb9   : > { %1947 = vrot.lane.b32.xlu0 %v1826_v35, %s6041_s28  ;;  %v1214_v17 = vsel %vm1015_vm2, %v1198_v0, %v1157_v45  ;;  %5636 = vmatprep.mubr.msk.f32.mxu0 %vm1230_vm5, %v1020_v49  ;;  %v1666_v45 = vld [vmem:[#allocation2 + $0x98] sm:$0x1]  ;;  %v1668_v0 = vld [vmem:[#allocation2 + $0xa8] sm:$0x1] }
  0xba   : > { %5675 = vmatprep.mubr.msk.f32.mxu1 %vm1230_vm5, %v1214_v17  ;;  %1863 = vrot.lane.b32.xlu1 %v6756_v1, %s6042_s15  ;;  %v2021_v1 = vsel %vm902_vm3, %v1117_v57, %v2020_v8  ;;  %v1834_v58 = vrot.slane %v1666_v45, 1  ;;  %v1837_v54 = vrot.slane %v1668_v0, 1  ;;  %v8320_v8 = vrot.slane %v6557_v52, 1 }
  0xbb   : > { %v1047_v13 = vpop.permute.xlu0 %1046  ;;  %v962_v61 = vpop.permute.xlu1 %961 }
  0xbc   : > { %v1199_v57 = vsel %vm599_vm0, %v6514_v63, %v1047_v13  ;;  %v1838_v40 = vsel %vm902_vm3, %v8320_v8, %v1837_v54  ;;  %v8325_v54 = vrot.slane %v6585_v32, 1 }
  0xbd   : > { %1735 = vrot.lane.b32.xlu0 %v6341_v46, %s6041_s28 }
  0xbe   : > { %1737 = vrot.lane.b32.xlu1 %v6452_v14, %s6041_s28  ;;  %v1829_v14 = vsel %vm902_vm3, %v924_v56, %v1828_v48  ;;  %v1832_v56 = vsel %vm902_vm3, %v927_v24, %v1831_v30  ;;  %v2023_v24 = vrot.slane %v1696_v38, 1  ;;  %v2032_v30 = vrot.slane %v1702_v29, 1  ;;  %v1672_v38 = vld [vmem:[#allocation2 + $0xc8] sm:$0x1] }
  0xbf   : > { %v833_v9 = vpop.permute.xlu0 %832  ;;  %v835_v43 = vpop.permute.xlu1 %834  ;;  %v1843_v26 = vrot.slane %v1672_v38, 1  ;;  %v1678_v38 = vld [vmem:[#allocation2 + $0xf8] sm:$0x1] }
  0xc0   : > { %v1004_v2 = vsel %vm599_vm0, %v6382_v18, %v833_v9  ;;  %v1005_v22 = vsel %vm599_vm0, %v6478_v23, %v835_v43  ;;  %v2024_v7 = vsel %vm902_vm3, %v1120_v33, %v2023_v24  ;;  %v1700_v9 = vld [vmem:[#allocation3 + $0xa8] sm:$0x1] }
  0xc1   : > { %2059 = vrot.lane.b32.xlu0 %v2018_v31, %s6042_s15  ;;  %v1021_v46 = vsel %vm1015_vm2, %v1004_v2, %v962_v61  ;;  %v2029_v2 = vrot.slane %v1700_v9, 1 }
  0xc2   : > { %5637 = vmatmul.mubr.msk.f32.gmra.mxu0 %vm1230_vm5, %v1021_v46  ;;  %2061 = vrot.lane.b32.xlu1 %v2021_v1, %s6042_s15 }
  0xc3   : > { %v1159_v12 = vpop.permute.xlu0 %1158  ;;  %v1161_v62 = vpop.permute.xlu1 %1160 }
  0xc4   : > { %v1215_v18 = vsel %vm1015_vm2, %v1199_v57, %v1159_v12  ;;  %v1670_v57 = vld [vmem:[#allocation2 + $0xb8] sm:$0x1]  ;;  %v8321_v12 = vrot.slane %v6551_v41, 1 }
  0xc5   : > { %1949 = vrot.lane.b32.xlu0 %v1829_v14, %s6041_s28  ;;  %5676 = vmatmul.mubr.msk.f32.gmra.mxu1 %vm1230_vm5, %v1215_v18  ;;  %v1840_v18 = vrot.slane %v1670_v57, 1  ;;  %v1708_v57 = vld [vmem:[#allocation3 + $0xe8] sm:$0x1] }
  0xc6   : > { %1865 = vrot.lane.b32.xlu1 %v1823_v59, %s6042_s15 }
  0xc7   : > { %v1049_v37 = vpop.permute.xlu0 %1048  ;;  %v964_v34 = vpop.permute.xlu1 %963 }
  0xc8   : > { %v1200_v4 = vsel %vm599_vm0, %v6516_v6, %v1049_v37  ;;  %v1022_v5 = vsel %vm1015_vm2, %v1005_v22, %v964_v34 }
  0xc9   : > { %1951 = vrot.lane.b32.xlu0 %v1832_v56, %s6041_s28  ;;  %v1216_v23 = vsel %vm1015_vm2, %v1200_v4, %v1161_v62  ;;  %5639 = vmatprep.mubr.msk.f32.mxu0 %vm1230_vm5, %v1022_v5  ;;  %v2030_v62 = vsel %vm902_vm3, %v8321_v12, %v2029_v2  ;;  %v8328_v2 = vrot.slane %v6628_v42, 1 }
  0xca   : > { %5678 = vmatprep.mubr.msk.f32.mxu1 %vm1230_vm5, %v1216_v23  ;;  %1867 = vrot.lane.b32.xlu1 %v1826_v35, %s6042_s15  ;;  %v8318_v35 = vrot.slane %v6549_v39, 1 }
  0xcb   : > { %v1051_v59 = vpop.permute.xlu0 %1050  ;;  %v966_v55 = vpop.permute.xlu1 %965 }
  0xcc   : > { %v2027_v51 = vsel %vm902_vm3, %v8318_v35, %v2026_v15  ;;  %v1201_v17 = vsel %vm599_vm0, %v6549_v39, %v1051_v59  ;;  %v8324_v15 = vrot.slane %v6591_v53, 1 }
  0xcd   : > { %1739 = vrot.lane.b32.xlu0 %v6459_v16, %s6041_s28 }
  0xce   : > { %1741 = vrot.lane.b32.xlu1 %v6514_v63, %s6041_s28  ;;  %v8319_v63 = vrot.slane %v6536_v27, 1  ;;  %v1844_v45 = vsel %vm902_vm3, %v8324_v15, %v1843_v26 }
  0xcf   : > { %v837_v44 = vpop.permute.xlu0 %836  ;;  %v839_v11 = vpop.permute.xlu1 %838 }
  0xd0   : > { %v1006_v49 = vsel %vm599_vm0, %v6496_v50, %v837_v44  ;;  %v1835_v33 = vsel %vm902_vm3, %v8319_v63, %v1834_v58  ;;  %v1007_v61 = vsel %vm599_vm0, %v6523_v19, %v839_v11  ;;  %v1704_v44 = vld [vmem:[#allocation3 + $0xc8] sm:$0x1] }
  0xd1   : > { %2063 = vrot.lane.b32.xlu0 %v2024_v7, %s6042_s15  ;;  %v1023_v16 = vsel %vm1015_vm2, %v1006_v49, %v966_v55  ;;  %v2035_v0 = vrot.slane %v1704_v44, 1 }
  0xd2   : > { %5640 = vmatmul.mubr.msk.f32.gmra.mxu0 %vm1230_vm5, %v1023_v16  ;;  %2065 = vrot.lane.b32.xlu1 %v2027_v51, %s6042_s15  ;;  %v1706_v51 = vld [vmem:[#allocation3 + $0xd8] sm:$0x1] }
  0xd3   : > { %v1163_v47 = vpop.permute.xlu0 %1162  ;;  %v1165_v13 = vpop.permute.xlu1 %1164  ;;  %v2038_v63 = vrot.slane %v1706_v51, 1  ;;  %v7006_v51 = vld [vmem:[#allocation3 + $0x100] sm:$0xff] }
  0xd4   : > { %v1217_v50 = vsel %vm1015_vm2, %v1201_v17, %v1163_v47  ;;  %v2036_v17 = vsel %vm902_vm3, %v8325_v54, %v2035_v0  ;;  %v5991_v0 = vld [vmem:[#allocation3 + $0x10] sm:$0xff] }
  0xd5   : > { %1953 = vrot.lane.b32.xlu0 %v1835_v33, %s6041_s28  ;;  %5679 = vmatmul.mubr.msk.f32.gmra.mxu1 %vm1230_vm5, %v1217_v50 }
  0xd6   : > { %1869 = vrot.lane.b32.xlu1 %v1829_v14, %s6042_s15 }
  0xd7   : > { %v1053_v31 = vpop.permute.xlu0 %1052  ;;  %v968_v48 = vpop.permute.xlu1 %967 }
  0xd8   : > { %v1202_v43 = vsel %vm599_vm0, %v6551_v41, %v1053_v31  ;;  %v1024_v1 = vsel %vm1015_vm2, %v1007_v61, %v968_v48  ;;  %v8326_v61 = vrot.slane %v6618_v36, 1 }
  0xd9   : > { %1955 = vrot.lane.b32.xlu0 %v1838_v40, %s6041_s28  ;;  %v1218_v19 = vsel %vm1015_vm2, %v1202_v43, %v1165_v13  ;;  %5642 = vmatprep.mubr.msk.f32.mxu0 %vm1230_vm5, %v1024_v1 }
  0xda   : > { %5681 = vmatprep.mubr.msk.f32.mxu1 %vm1230_vm5, %v1218_v19  ;;  %1871 = vrot.lane.b32.xlu1 %v1832_v56, %s6042_s15  ;;  %v8322_v56 = vrot.slane %v6583_v28, 1  ;;  %v2039_v8 = vsel %vm902_vm3, %v8326_v61, %v2038_v63  ;;  %v7009_v63 = vld [vmem:[#allocation3 + $0x20] sm:$0xff] }
  0xdb   : > { %v1055_v46 = vpop.permute.xlu0 %1054  ;;  %v970_v14 = vpop.permute.xlu1 %969  ;;  %v2972_v61 = vrot.slane %v7009_v63, 1 }
  0xdc   : > { %v2033_v34 = vsel %vm902_vm3, %v8322_v56, %v2032_v30  ;;  %v1203_v23 = vsel %vm599_vm0, %v6583_v28, %v1055_v46 }
  0xdd   : > { %1743 = vrot.lane.b32.xlu0 %v6516_v6, %s6041_s28 }
  0xde   : > { %1745 = vrot.lane.b32.xlu1 %v6549_v39, %s6041_s28  ;;  %v8323_v39 = vrot.slane %v6570_v10, 1 }
  0xdf   : > { %v841_v22 = vpop.permute.xlu0 %840  ;;  %v843_v37 = vpop.permute.xlu1 %842 }
  0xe0   : > { %v1008_v4 = vsel %vm599_vm0, %v6536_v27, %v841_v22  ;;  %v1841_v5 = vsel %vm902_vm3, %v8323_v39, %v1840_v18  ;;  %v1009_v55 = vsel %vm599_vm0, %v6557_v52, %v843_v37  ;;  %v1710_v18 = vld [vmem:[#allocation3 + $0xf8] sm:$0x1]  ;;  %v2041_v22 = vrot.slane %v1708_v57, 1 }
  0xe1   : > { %2067 = vrot.lane.b32.xlu0 %v2030_v62, %s6042_s15  ;;  %v1025_v6 = vsel %vm1015_vm2, %v1008_v4, %v970_v14  ;;  %v8329_v4 = vrot.slane %v6620_v60, 1  ;;  %v1852_v39 = vrot.slane %v1678_v38, 1  ;;  %v7072_v38 = vld [vmem:[#allocation3 + $0x30] sm:$0xff] }
  0xe2   : > { %5643 = vmatmul.mubr.msk.f32.gmra.mxu0 %vm1230_vm5, %v1025_v6  ;;  %2069 = vrot.lane.b32.xlu1 %v2033_v34, %s6042_s15  ;;  %v2044_v34 = vrot.slane %v1710_v18, 1  ;;  %v7055_v18 = vld [vmem:[%s8292_s4 + $0x80] sm:$0xff] }
  0xe3   : > { %v1167_v24 = vpop.permute.xlu0 %1166  ;;  %v1169_v59 = vpop.permute.xlu1 %1168  ;;  %v2042_v6 = vsel %vm902_vm3, %v8329_v4, %v2041_v22  ;;  %v2655_v4 = vld [vmem:[#allocation3 + $0x38] sm:$0x1] }
  0xe4   : > { %v1219_v27 = vsel %vm1015_vm2, %v1203_v23, %v1167_v24  ;;  %v2045_v23 = vsel %vm902_vm3, %v1141_v3, %v2044_v34  ;;  %v6978_v24 = vld [vmem:[#allocation2 + $0x100] sm:$0xff] }
  0xe5   : > { %1957 = vrot.lane.b32.xlu0 %v1841_v5, %s6041_s28  ;;  %5682 = vmatmul.mubr.msk.f32.gmra.mxu1 %vm1230_vm5, %v1219_v27  ;;  %v8330_v27 = vrot.slane %v6644_v25, 1  ;;  %v1854_v3 = vrot.slane %v6978_v24, 1 }
  0xe6   : > { %1873 = vrot.lane.b32.xlu1 %v1835_v33, %s6042_s15  ;;  %v1674_v33 = vld [vmem:[#allocation2 + $0xd8] sm:$0x1] }
  0xe7   : > { %v1057_v7 = vpop.permute.xlu0 %1056  ;;  %v972_v58 = vpop.permute.xlu1 %971  ;;  %v1846_v47 = vrot.slane %v1674_v33, 1  ;;  %v2653_v33 = vld [vmem:[#allocation3 + $0x28] sm:$0x1] }
  0xe8   : > { %v1204_v11 = vsel %vm599_vm0, %v6585_v32, %v1057_v7  ;;  %v1026_v35 = vsel %vm1015_vm2, %v1009_v55, %v972_v58  ;;  %v6989_v55 = vsel %vm902_vm3, %v8330_v27, %v1852_v39  ;;  %v2975_v27 = vrot.slane %v7072_v38, 1 }
  0xe9   : > { %1959 = vrot.lane.b32.xlu0 %v1844_v45, %s6041_s28  ;;  %v1220_v52 = vsel %vm1015_vm2, %v1204_v11, %v1169_v59  ;;  %5645 = vmatprep.mubr.msk.f32.mxu0 %vm1230_vm5, %v1026_v35  ;;  %v1680_v59 = vld [vmem:[#allocation2 + $0x108] sm:$0x1] }
  0xea   : > { %5684 = vmatprep.mubr.msk.f32.mxu1 %vm1230_vm5, %v1220_v52  ;;  %1875 = vrot.lane.b32.xlu1 %v1838_v40, %s6042_s15  ;;  %v1676_v40 = vld [vmem:[#allocation2 + $0xe8] sm:$0x1]  ;;  %v1855_v15 = vrot.slane %v1680_v59, 1 }
  0xeb   : > { %v1059_v49 = vpop.permute.xlu0 %1058  ;;  %v974_v16 = vpop.permute.xlu1 %973  ;;  %v1849_v9 = vrot.slane %v1676_v40, 1  ;;  %v1712_v52 = vld [vmem:[#allocation3 + $0x108] sm:$0x1]  ;;  %v7026_v40 = vld [vmem:[#allocation2 + $0x20] sm:$0xff] }
  0xec   : > { %v1205_v43 = vsel %vm599_vm0, %v6618_v36, %v1059_v49  ;;  %v7004_v11 = vsel %vm902_vm3, %v1854_v3, %v1855_v15 }
  0xed   : > { %1747 = vrot.lane.b32.xlu0 %v6551_v41, %s6041_s28  ;;  %v1850_v46 = vsel %vm902_vm3, %v8328_v2, %v1849_v9 }
  0xee   : > { %1749 = vrot.lane.b32.xlu1 %v6583_v28, %s6041_s28  ;;  %v8327_v28 = vrot.slane %v6604_v21, 1 }
  0xef   : > { %v845_v13 = vpop.permute.xlu0 %844  ;;  %v847_v50 = vpop.permute.xlu1 %846 }
  0xf0   : > { %v1010_v31 = vsel %vm599_vm0, %v6570_v10, %v845_v13  ;;  %v1847_v48 = vsel %vm902_vm3, %v8327_v28, %v1846_v47  ;;  %v1011_v19 = vsel %vm599_vm0, %v6591_v53, %v847_v50  ;;  %v2046_v47 = vrot.slane %v7006_v51, 1 }
  0xf1   : > { %2071 = vrot.lane.b32.xlu0 %v2036_v17, %s6042_s15  ;;  %v1027_v41 = vsel %vm1015_vm2, %v1010_v31, %v974_v16  ;;  %v2047_v13 = vrot.slane %v1712_v52, 1  ;;  %v2620_v31 = vld [vmem:[#allocation2 + $0x28] sm:$0x1] }
  0xf2   : > { %5646 = vmatmul.mubr.msk.f32.gmra.mxu0 %vm1230_vm5, %v1027_v41  ;;  %2073 = vrot.lane.b32.xlu1 %v2039_v8, %s6042_s15  ;;  %v2973_v8 = vrot.slane %v2653_v33, 1  ;;  %v2781_v9 = vrot.slane %v2620_v31, 1 }
  0xf3   : > { %v1171_v1 = vpop.permute.xlu0 %1170  ;;  %v1173_v29 = vpop.permute.xlu1 %1172  ;;  %v2048_v28 = vsel %vm902_vm3, %v2046_v47, %v2047_v13  ;;  %v5995_v13 = vld [vmem:[#allocation2 + $0x20] sm:$0xff] }
  0xf4   : > { %v1221_v10 = vsel %vm1015_vm2, %v1205_v43, %v1171_v1  ;;  %v2974_v1 = vsel %vm902_vm3, %v2972_v61, %v2973_v8 }
  0xf5   : > { %1961 = vrot.lane.b32.xlu0 %v1847_v48, %s6041_s28  ;;  %5685 = vmatmul.mubr.msk.f32.gmra.mxu1 %vm1230_vm5, %v1221_v10  ;;  %v2622_v10 = vld [vmem:[#allocation2 + $0x38] sm:$0x1] }
  0xf6   : > { %1877 = vrot.lane.b32.xlu1 %v1841_v5, %s6042_s15 }
  0xf7   : > { %v1061_v14 = vpop.permute.xlu0 %1060  ;;  %v976_v30 = vpop.permute.xlu1 %975 }
  0xf8   : > { %v1206_v12 = vsel %vm599_vm0, %v6620_v60, %v1061_v14  ;;  %v1028_v62 = vsel %vm1015_vm2, %v1011_v19, %v976_v30  ;;  %v2784_v14 = vrot.slane %v2622_v10, 1  ;;  %v5992_v30 = vld [vmem:[#allocation3 + $0x20] sm:$0xff] }
  0xf9   : > { %1963 = vrot.lane.b32.xlu0 %v1850_v46, %s6041_s28  ;;  %v1222_v53 = vsel %vm1015_vm2, %v1206_v12, %v1173_v29  ;;  %5648 = vmatprep.mubr.msk.f32.mxu0 %vm1230_vm5, %v1028_v62  ;;  %v7038_v29 = vld [vmem:[#allocation2 + $0x30] sm:$0xff] }
  0xfa   : > { %5687 = vmatprep.mubr.msk.f32.mxu1 %vm1230_vm5, %v1222_v53  ;;  %1879 = vrot.lane.b32.xlu1 %v1844_v45, %s6042_s15  ;;  %v5993_v53 = vld [vmem:[#allocation2 + $0x10] sm:$0xff] }
  0xfb   : > { %v1063_v37 = vpop.permute.xlu0 %1062  ;;  %v978_v56 = vpop.permute.xlu1 %977 }
  0xfc   : > { %v1207_v45 = vsel %vm599_vm0, %v6661_v20, %v1063_v37 }
  0xfd   : > { %1751 = vrot.lane.b32.xlu0 %v6585_v32, %s6041_s28 }
  0xfe   : > { %1753 = vrot.lane.b32.xlu1 %v6618_v36, %s6041_s28 }
  0xff   : > { %v849_v5 = vpop.permute.xlu0 %848  ;;  %v851_v26 = vpop.permute.xlu1 %850 }
 0x100   : > { %v1012_v32 = vsel %vm599_vm0, %v6604_v21, %v849_v5  ;;  %v1013_v44 = vsel %vm599_vm0, %v6628_v42, %v851_v26  ;;  %v7014_v42 = vld [vmem:[%s8292_s4 + $0x88] sm:$0xff]  ;;  %v7076_v26 = vld [vmem:[#allocation3 + $0x40] sm:$0xff] }
 0x101   : > { %2075 = vrot.lane.b32.xlu0 %v2042_v6, %s6042_s15  ;;  %v1029_v36 = vsel %vm1015_vm2, %v1012_v32, %v978_v56  ;;  %5798 = vmatprep.subr.mxu1 %v7014_v42  ;;  %v7070_v56 = vld [vmem:[%s8292_s4 + $0x78] sm:$0xff]  ;;  %v5994_v6 = vld [vmem:[#allocation3 + $0x30] sm:$0xff] }
 0x102   : > { %5649 = vmatmul.mubr.msk.f32.gmra.mxu0 %vm1230_vm5, %v1029_v36  ;;  %2077 = vrot.lane.b32.xlu1 %v2045_v23, %s6042_s15  ;;  %v2657_v23 = vld [vmem:[#allocation3 + $0x48] sm:$0x1]  ;;  %v7087_v36 = vld [vmem:[%s8292_s4 + $0x70] sm:$0xff] }
 0x103   : > { %v1175_v21 = vpop.permute.xlu0 %1174  ;;  %5762 = vmatprep.subr.mxu0 %v7014_v42 }
 0x104   : > { %v1223_v7 = vsel %vm1015_vm2, %v1207_v45, %v1175_v21  ;;  %v2050_v58 = vpop.permute.xlu1 %2049  ;;  %v2978_v45 = vrot.slane %v7076_v26, 1  ;;  %v2979_v21 = vrot.slane %v2657_v23, 1 }
 0x105   : > { %1965 = vrot.lane.b32.xlu0 %v6989_v55, %s6041_s28  ;;  %5688 = vmatmul.mubr.msk.f32.gmra.mxu1 %vm1230_vm5, %v1223_v7  ;;  %v7095_v7 = vld [vmem:[#allocation2 + $0x40] sm:$0xff] }
 0x106   : > { %1881 = vrot.lane.b32.xlu1 %v1847_v48, %s6042_s15  ;;  %v2780_v48 = vrot.slane %v7026_v40, 1  ;;  %v2980_v33 = vsel %vm902_vm3, %v2978_v45, %v2979_v21 }
 0x107   : > { %v1938_v35 = vpop.permute.xlu0 %1937 }
 0x108   : > { %v2097_v49 = vsel %vm599_vm0, %v5991_v0, %v1938_v35  ;;  %v980_v16 = vpop.permute.xlu1 %979  ;;  %v7047_v2 = vsel %vm902_vm3, %v2780_v48, %v2781_v9  ;;  %v7110_v35 = vld [vmem:[%s8292_s4 + $0x60] sm:$0xff]  ;;  %v2786_v0 = vrot.slane %v7095_v7, 1 }
 0x109   : > { %1967 = vrot.lane.b32.xlu0 %v7004_v11, %s6041_s28  ;;  %v1030_v54 = vsel %vm1015_vm2, %v1013_v44, %v980_v16  ;;  %v2113_v17 = vsel %vm1015_vm2, %v2097_v49, %v2050_v58  ;;  %v2624_v58 = vld [vmem:[#allocation2 + $0x48] sm:$0x1]  ;;  %v5996_v48 = vld [vmem:[#allocation3 + $0x40] sm:$0xff] }
 0x10a   : > { %5738 = vmatprep.mubr.msk.f32.mxu1 %vm1230_vm5, %v2113_v17  ;;  %1883 = vrot.lane.b32.xlu1 %v1850_v46, %s6042_s15  ;;  %v2783_v46 = vrot.slane %v7038_v29, 1  ;;  %v7101_v44 = vld [vmem:[%s8292_s4 + $0x68] sm:$0xff]  ;;  %v2787_v49 = vrot.slane %v2624_v58, 1  ;;  %v2626_v17 = vld [vmem:[#allocation2 + $0x58] sm:$0x1] }
 0x10b   : > { %v1940_v50 = vpop.permute.xlu0 %1939  ;;  %5651 = vmatprep.mubr.msk.f32.mxu0 %vm1230_vm5, %v1030_v54  ;;  %v7118_v54 = vld [vmem:[#allocation2 + $0x50] sm:$0xff] }
 0x10c   : > { %v982_v41 = vpop.permute.xlu1 %981  ;;  %v2098_v57 = vsel %vm599_vm0, %v5992_v30, %v1940_v50  ;;  %v7064_v37 = vsel %vm902_vm3, %v2783_v46, %v2784_v14  ;;  %v7129_v31 = vsel %vm902_vm3, %v2786_v0, %v2787_v49  ;;  %v7146_v46 = vld [vmem:[#allocation3 + $0x50] sm:$0xff]  ;;  %v2659_v14 = vld [vmem:[#allocation3 + $0x58] sm:$0x1]  ;;  %v6000_v0 = vld [vmem:[#allocation3 + $0x60] sm:$0xff] }
 0x10d   : > { %1755 = vrot.lane.b32.xlu0 %v6620_v60, %s6041_s28  ;;  %v5998_v30 = vld [vmem:[#allocation3 + $0x50] sm:$0xff] }
 0x10e   : > { %1757 = vrot.lane.b32.xlu1 %v6661_v20, %s6041_s28 }
 0x10f   : > { %v853_v43 = vpop.permute.xlu0 %852 }
 0x110   : > { %v1014_v19 = vsel %vm599_vm0, %v6644_v25, %v853_v43  ;;  %v1730_v60 = vpop.permute.xlu1 %1729 }
 0x111   : > { %2079 = vrot.lane.b32.xlu0 %v2048_v28, %s6042_s15  ;;  %v1031_v20 = vsel %vm1015_vm2, %v1014_v19, %v982_v41  ;;  %v1905_v22 = vsel %vm599_vm0, %v5993_v53, %v1730_v60  ;;  %v2789_v41 = vrot.slane %v7118_v54, 1  ;;  %v2790_v28 = vrot.slane %v2626_v17, 1  ;;  %v5997_v19 = vld [vmem:[#allocation2 + $0x30] sm:$0xff] }
 0x112   : > { %5652 = vmatmul.mubr.msk.f32.gmra.mxu0 %vm1230_vm5, %v1031_v20  ;;  %3020 = vrot.lane.b32.xlu1 %v2974_v1, %s6042_s15  ;;  %v2981_v53 = vrot.slane %v7146_v46, 1  ;;  %v6001_v17 = vld [vmem:[#allocation2 + $0x50] sm:$0xff] }
 0x113   : > { %v2052_v12 = vpop.permute.xlu0 %2051  ;;  %v7143_v20 = vsel %vm902_vm3, %v2789_v41, %v2790_v28  ;;  %v2663_v41 = vld [vmem:[#allocation3 + $0x78] sm:$0x1]  ;;  %v6002_v28 = vld [vmem:[#allocation3 + $0x70] sm:$0xff] }
 0x114   : > { %v2114_v25 = vsel %vm1015_vm2, %v2098_v57, %v2052_v12  ;;  %v2054_v62 = vpop.permute.xlu1 %2053 }
 0x115   : > { %2908 = vrot.lane.b32.xlu0 %v7047_v2, %s6041_s28  ;;  %5739 = vmatmul.mubr.msk.f32.vlgmr.msra.gmra.mxu1 %vm1230_vm5, %v2114_v25  ;;  %v7150_v25 = vld [vmem:[#allocation3 + $0x60] sm:$0xff] }
 0x116   : > { %1885 = vrot.lane.b32.xlu1 %v6989_v55, %s6042_s15  ;;  %5799 = vmatpush3.msra.mxu1 %v7014_v42  ;;  %v2976_v55 = vrot.slane %v2655_v4, 1 }
 0x117   : > { %v1942_v34 = vpop.permute.xlu0 %1941  ;;  %5800 = vmatprep.subr.mxu1 %v7055_v18 }
 0x118   : > { %v2099_v39 = vsel %vm599_vm0, %v5994_v6, %v1942_v34  ;;  %v1858_v5 = vpop.permute.xlu1 %1857  ;;  %5801 = vmatpush3.msra.mxu1 %v7055_v18  ;;  %v2977_v52 = vsel %vm902_vm3, %v2975_v27, %v2976_v55  ;;  %v7164_v6 = vld [vmem:[#allocation2 + $0x60] sm:$0xff]  ;;  %v7177_v27 = vld [vmem:[#allocation2 + $0x70] sm:$0xff]  ;;  %v2630_v55 = vld [vmem:[#allocation2 + $0x78] sm:$0x1] }
 0x119   : > { %2910 = vrot.lane.b32.xlu0 %v7064_v37, %s6041_s28  ;;  %v1921_v59 = vsel %vm1015_vm2, %v1905_v22, %v1858_v5  ;;  %v2115_v32 = vsel %vm1015_vm2, %v2099_v39, %v2054_v62  ;;  %5802 = vmatprep.subr.mxu1 %v7070_v56  ;;  %v2661_v62 = vld [vmem:[#allocation3 + $0x68] sm:$0x1]  ;;  %v2982_v22 = vrot.slane %v2659_v14, 1  ;;  %v2792_v23 = vrot.slane %v7164_v6, 1 }
 0x11a   : > { %5741 = vmatprep.mubr.msk.f32.mxu1 %vm1230_vm5, %v2115_v32  ;;  %1887 = vrot.lane.b32.xlu1 %v7004_v11, %s6042_s15  ;;  %v2985_v4 = vrot.slane %v2661_v62, 1  ;;  %v2628_v39 = vld [vmem:[#allocation2 + $0x68] sm:$0x1] }
 0x11b   : > { %v1944_v15 = vpop.permute.xlu0 %1943  ;;  %5702 = vmatprep.mubr.msk.f32.mxu0 %vm1230_vm5, %v1921_v59  ;;  %5803 = vmatpush3.msra.mxu1 %v7070_v56  ;;  %v2793_v59 = vrot.slane %v2628_v39, 1 }
 0x11c   : > { %v1860_v11 = vpop.permute.xlu1 %1859  ;;  %5804 = vmatprep.subr.mxu1 %v7087_v36  ;;  %v2100_v9 = vsel %vm599_vm0, %v5996_v48, %v1944_v15  ;;  %v5999_v15 = vld [vmem:[#allocation2 + $0x40] sm:$0xff] }
 0x11d   : > { %1759 = vrot.lane.b32.xlu0 %v7006_v51, %s6041_s28  ;;  %5805 = vmatpush3.msra.mxu1 %v7087_v36 }
 0x11e   : > { %2700 = vrot.lane.b32.xlu1 %v7009_v63, %s6041_s28  ;;  %5806 = vmatprep.subr.mxu1 %v7101_v44 }
 0x11f   : > { %v1732_v16 = vpop.permute.xlu0 %1731  ;;  %5807 = vmatpush3.msra.mxu1 %v7101_v44 }
 0x120   : > { %v1906_v50 = vsel %vm599_vm0, %v5995_v13, %v1732_v16  ;;  %v1734_v61 = vpop.permute.xlu1 %1733  ;;  %5808 = vmatprep.subr.mxu1 %v7110_v35 }
 0x121   : > { %v1922_v8 = vsel %vm1015_vm2, %v1906_v50, %v1860_v11  ;;  %3022 = vrot.lane.b32.xlu0 %v2977_v52, %s6042_s15  ;;  %5809 = vmatpush3.msra.mxu1 %v7110_v35  ;;  %v1907_v60 = vsel %vm599_vm0, %v5997_v19, %v1734_v61  ;;  %v2795_v11 = vrot.slane %v7177_v27, 1  ;;  %v2796_v52 = vrot.slane %v2630_v55, 1 }
 0x122   : > { %5703 = vmatmul.mubr.msk.f32.vlgmr.msra.gmra.mxu0 %vm1230_vm5, %v1922_v8  ;;  %3024 = vrot.lane.b32.xlu1 %v2980_v33, %s6042_s15  ;;  %v7200_v8 = vld [vmem:[#allocation3 + $0x70] sm:$0xff] }
 0x123   : > { %v2056_v43 = vpop.permute.xlu0 %2055  ;;  %5763 = vmatpush3.msra.mxu0 %v7014_v42  ;;  %v7198_v50 = vsel %vm902_vm3, %v2795_v11, %v2796_v52  ;;  %v2987_v19 = vrot.slane %v7200_v8, 1 }
 0x124   : > { %v2116_v1 = vsel %vm1015_vm2, %v2100_v9, %v2056_v43  ;;  %v2058_v10 = vpop.permute.xlu1 %2057  ;;  %5764 = vmatprep.subr.mxu0 %v7055_v18  ;;  %v7203_v43 = vld [vmem:[#allocation3 + $0x80] sm:$0xff] }
 0x125   : > { %2912 = vrot.lane.b32.xlu0 %v7129_v31, %s6041_s28  ;;  %5742 = vmatmul.mubr.msk.f32.gmra.mxu1 %vm1230_vm5, %v2116_v1  ;;  %v2665_v1 = vld [vmem:[#allocation3 + $0x88] sm:$0x1]  ;;  %v2990_v14 = vrot.slane %v7203_v43, 1 }
 0x126   : > { %2828 = vrot.lane.b32.xlu1 %v7047_v2, %s6042_s15  ;;  %5765 = vmatpush3.msra.mxu0 %v7055_v18 }
 0x127   : > { %v1946_v42 = vpop.permute.xlu0 %1945  ;;  %5766 = vmatprep.subr.mxu0 %v7070_v56 }
 0x128   : > { %v2101_v57 = vsel %vm599_vm0, %v5998_v30, %v1946_v42  ;;  %v1862_v12 = vpop.permute.xlu1 %1861  ;;  %5767 = vmatpush3.msra.mxu0 %v7070_v56  ;;  %v2984_v56 = vrot.slane %v7150_v25, 1  ;;  %v2991_v30 = vrot.slane %v2665_v1, 1 }
 0x129   : > { %2914 = vrot.lane.b32.xlu0 %v7143_v20, %s6041_s28  ;;  %v1923_v2 = vsel %vm1015_vm2, %v1907_v60, %v1862_v12  ;;  %v2117_v18 = vsel %vm1015_vm2, %v2101_v57, %v2058_v10  ;;  %5768 = vmatprep.subr.mxu0 %v7087_v36  ;;  %v2988_v60 = vrot.slane %v2663_v41, 1  ;;  %v7215_v57 = vld [vmem:[#allocation2 + $0x80] sm:$0xff]  ;;  %v2632_v12 = vld [vmem:[#allocation2 + $0x88] sm:$0x1] }
 0x12a   : > { %5744 = vmatprep.mubr.msk.f32.mxu1 %vm1230_vm5, %v2117_v18  ;;  %2830 = vrot.lane.b32.xlu1 %v7064_v37, %s6042_s15  ;;  %v2983_v37 = vsel %vm902_vm3, %v2981_v53, %v2982_v22  ;;  %v2799_v18 = vrot.slane %v2632_v12, 1  ;;  %v2992_v22 = vsel %vm902_vm3, %v2990_v14, %v2991_v30 }
 0x12b   : > { %v1948_v34 = vpop.permute.xlu0 %1947  ;;  %5705 = vmatprep.mubr.msk.f32.mxu0 %vm1230_vm5, %v1923_v2  ;;  %5769 = vmatpush3.msra.mxu0 %v7087_v36  ;;  %v2986_v36 = vsel %vm902_vm3, %v2984_v56, %v2985_v4  ;;  %v2798_v2 = vrot.slane %v7215_v57, 1  ;;  %v2634_v56 = vld [vmem:[#allocation2 + $0x98] sm:$0x1]  ;;  %v6003_v4 = vld [vmem:[#allocation2 + $0x60] sm:$0xff] }
 0x12c   : > { %v1864_v5 = vpop.permute.xlu1 %1863  ;;  %5770 = vmatprep.subr.mxu0 %v7101_v44 }
 0x12d   : > { %2702 = vrot.lane.b32.xlu0 %v7072_v38, %s6041_s28  ;;  %5771 = vmatpush3.msra.mxu0 %v7101_v44  ;;  %v7186_v44 = vsel %vm902_vm3, %v2792_v23, %v2793_v59  ;;  %v7232_v23 = vsel %vm902_vm3, %v2798_v2, %v2799_v18  ;;  %v6007_v2 = vld [vmem:[#allocation2 + $0x80] sm:$0xff] }
 0x12e   : > { %2704 = vrot.lane.b32.xlu1 %v7076_v26, %s6041_s28  ;;  %5772 = vmatprep.subr.mxu0 %v7110_v35 }
 0x12f   : > { %v1736_v32 = vpop.permute.xlu0 %1735  ;;  %5773 = vmatpush3.msra.mxu0 %v7110_v35  ;;  %v2102_v35 = vsel %vm599_vm0, %v6000_v0, %v1948_v34  ;;  %v7224_v34 = vld [vmem:[#allocation2 + $0x90] sm:$0xff] }
 0x130   : > { %v1908_v45 = vsel %vm599_vm0, %v5999_v15, %v1736_v32  ;;  %v1738_v21 = vpop.permute.xlu1 %1737  ;;  %v2801_v59 = vrot.slane %v7224_v34, 1  ;;  %v2802_v32 = vrot.slane %v2634_v56, 1 }
 0x131   : > { %3026 = vrot.lane.b32.xlu0 %v2983_v37, %s6042_s15  ;;  %v1924_v58 = vsel %vm1015_vm2, %v1908_v45, %v1864_v5  ;;  %v1909_v13 = vsel %vm599_vm0, %v6001_v17, %v1738_v21 }
 0x132   : > { %5706 = vmatmul.mubr.msk.f32.gmra.mxu0 %vm1230_vm5, %v1924_v58  ;;  %3028 = vrot.lane.b32.xlu1 %v2986_v36, %s6042_s15  ;;  %v6004_v36 = vld [vmem:[#allocation3 + $0x80] sm:$0xff]  ;;  %v6005_v58 = vld [vmem:[#allocation2 + $0x70] sm:$0xff]  ;;  %v7244_v52 = vsel %vm902_vm3, %v2801_v59, %v2802_v32 }
 0x133   : > { %v2060_v49 = vpop.permute.xlu0 %2059 }
 0x134   : > { %v2118_v16 = vsel %vm1015_vm2, %v2102_v35, %v2060_v49  ;;  %v2062_v33 = vpop.permute.xlu1 %2061  ;;  %v7246_v35 = vld [vmem:[#allocation3 + $0x90] sm:$0xff]  ;;  %v2667_v49 = vld [vmem:[#allocation3 + $0x98] sm:$0x1] }
 0x135   : > { %2916 = vrot.lane.b32.xlu0 %v7186_v44, %s6041_s28  ;;  %5745 = vmatmul.mubr.msk.f32.gmra.mxu1 %vm1230_vm5, %v2118_v16  ;;  %v6006_v16 = vld [vmem:[#allocation3 + $0x90] sm:$0xff] }
 0x136   : > { %2832 = vrot.lane.b32.xlu1 %v7129_v31, %s6042_s15 }
 0x137   : > { %v1950_v61 = vpop.permute.xlu0 %1949 }
 0x138   : > { %v2103_v48 = vsel %vm599_vm0, %v6002_v28, %v1950_v61  ;;  %v1866_v9 = vpop.permute.xlu1 %1865  ;;  %v2669_v61 = vld [vmem:[#allocation3 + $0xa8] sm:$0x1]  ;;  %v2993_v28 = vrot.slane %v7246_v35, 1 }
 0x139   : > { %2918 = vrot.lane.b32.xlu0 %v7198_v50, %s6041_s28  ;;  %v1925_v10 = vsel %vm1015_vm2, %v1909_v13, %v1866_v9  ;;  %v2119_v31 = vsel %vm1015_vm2, %v2103_v48, %v2062_v33  ;;  %v7249_v13 = vld [vmem:[#allocation3 + $0xa0] sm:$0xff]  ;;  %v2994_v48 = vrot.slane %v2667_v49, 1 }
 0x13a   : > { %5747 = vmatprep.mubr.msk.f32.mxu1 %vm1230_vm5, %v2119_v31  ;;  %2834 = vrot.lane.b32.xlu1 %v7143_v20, %s6042_s15  ;;  %v2989_v20 = vsel %vm902_vm3, %v2987_v19, %v2988_v60  ;;  %v2996_v1 = vrot.slane %v7249_v13, 1  ;;  %v7261_v31 = vld [vmem:[#allocation2 + $0xa0] sm:$0xff]  ;;  %v2636_v19 = vld [vmem:[#allocation2 + $0xa8] sm:$0x1] }
 0x13b   : > { %v1952_v42 = vpop.permute.xlu0 %1951  ;;  %5708 = vmatprep.mubr.msk.f32.mxu0 %vm1230_vm5, %v1925_v10  ;;  %v2997_v10 = vrot.slane %v2669_v61, 1  ;;  %v2805_v14 = vrot.slane %v2636_v19, 1 }
 0x13c   : > { %v1868_v62 = vpop.permute.xlu1 %1867  ;;  %v2104_v55 = vsel %vm599_vm0, %v6004_v36, %v1952_v42  ;;  %v2804_v42 = vrot.slane %v7261_v31, 1 }
 0x13d   : > { %2706 = vrot.lane.b32.xlu0 %v7146_v46, %s6041_s28  ;;  %v2998_v12 = vsel %vm902_vm3, %v2996_v1, %v2997_v10  ;;  %v7307_v1 = vld [vmem:[#allocation2 + $0xc0] sm:$0xff]  ;;  %v2640_v10 = vld [vmem:[#allocation2 + $0xc8] sm:$0x1] }
 0x13e   : > { %2708 = vrot.lane.b32.xlu1 %v7150_v25, %s6041_s28  ;;  %v7278_v56 = vsel %vm902_vm3, %v2804_v42, %v2805_v14  ;;  %v2811_v42 = vrot.slane %v2640_v10, 1  ;;  %v7346_v10 = vld [vmem:[#allocation3 + $0xe0] sm:$0xff] }
 0x13f   : > { %v1740_v53 = vpop.permute.xlu0 %1739 }
 0x140   : > { %v1910_v39 = vsel %vm599_vm0, %v6003_v4, %v1740_v53  ;;  %v1742_v5 = vpop.permute.xlu1 %1741 }
 0x141   : > { %3030 = vrot.lane.b32.xlu0 %v2989_v20, %s6042_s15  ;;  %v1926_v37 = vsel %vm1015_vm2, %v1910_v39, %v1868_v62  ;;  %v1911_v11 = vsel %vm599_vm0, %v6005_v58, %v1742_v5  ;;  %v7270_v62 = vld [vmem:[#allocation2 + $0xb0] sm:$0xff]  ;;  %v2638_v20 = vld [vmem:[#allocation2 + $0xb8] sm:$0x1]  ;;  %v6008_v5 = vld [vmem:[#allocation3 + $0xa0] sm:$0xff] }
 0x142   : > { %5709 = vmatmul.mubr.msk.f32.gmra.mxu0 %vm1230_vm5, %v1926_v37  ;;  %3032 = vrot.lane.b32.xlu1 %v2992_v22, %s6042_s15  ;;  %v2807_v4 = vrot.slane %v7270_v62, 1  ;;  %v2808_v39 = vrot.slane %v2638_v20, 1  ;;  %v7292_v58 = vld [vmem:[#allocation3 + $0xb0] sm:$0xff]  ;;  %v2642_v20 = vld [vmem:[#allocation2 + $0xd8] sm:$0x1] }
 0x143   : > { %v2064_v15 = vpop.permute.xlu0 %2063 }
 0x144   : > { %v2120_v45 = vsel %vm1015_vm2, %v2104_v55, %v2064_v15  ;;  %v2066_v21 = vpop.permute.xlu1 %2065  ;;  %v6009_v55 = vld [vmem:[#allocation2 + $0x90] sm:$0xff] }
 0x145   : > { %2920 = vrot.lane.b32.xlu0 %v7232_v23, %s6041_s28  ;;  %5748 = vmatmul.mubr.msk.f32.gmra.mxu1 %vm1230_vm5, %v2120_v45  ;;  %v7290_v45 = vsel %vm902_vm3, %v2807_v4, %v2808_v39 }
 0x146   : > { %2836 = vrot.lane.b32.xlu1 %v7186_v44, %s6042_s15 }
 0x147   : > { %v1954_v0 = vpop.permute.xlu0 %1953 }
 0x148   : > { %v2105_v33 = vsel %vm599_vm0, %v6006_v16, %v1954_v0  ;;  %v1870_v17 = vpop.permute.xlu1 %1869  ;;  %v6010_v0 = vld [vmem:[#allocation3 + $0xb0] sm:$0xff] }
 0x149   : > { %2922 = vrot.lane.b32.xlu0 %v7244_v52, %s6041_s28  ;;  %v1927_v41 = vsel %vm1015_vm2, %v1911_v11, %v1870_v17  ;;  %v2121_v44 = vsel %vm1015_vm2, %v2105_v33, %v2066_v21  ;;  %v2671_v11 = vld [vmem:[#allocation3 + $0xb8] sm:$0x1]  ;;  %v7295_v33 = vld [vmem:[#allocation3 + $0xc0] sm:$0xff]  ;;  %v2673_v17 = vld [vmem:[#allocation3 + $0xc8] sm:$0x1] }
 0x14a   : > { %5750 = vmatprep.mubr.msk.f32.mxu1 %vm1230_vm5, %v2121_v44  ;;  %2838 = vrot.lane.b32.xlu1 %v7198_v50, %s6042_s15  ;;  %v2995_v50 = vsel %vm902_vm3, %v2993_v28, %v2994_v48  ;;  %v3000_v44 = vrot.slane %v2671_v11, 1  ;;  %v3002_v48 = vrot.slane %v7295_v33, 1 }
 0x14b   : > { %v1956_v9 = vpop.permute.xlu0 %1955  ;;  %5711 = vmatprep.mubr.msk.f32.mxu0 %vm1230_vm5, %v1927_v41  ;;  %v2999_v41 = vrot.slane %v7292_v58, 1 }
 0x14c   : > { %v1872_v60 = vpop.permute.xlu1 %1871  ;;  %v2106_v37 = vsel %vm599_vm0, %v6008_v5, %v1956_v9  ;;  %v3003_v9 = vrot.slane %v2673_v17, 1 }
 0x14d   : > { %2710 = vrot.lane.b32.xlu0 %v7200_v8, %s6041_s28 }
 0x14e   : > { %2712 = vrot.lane.b32.xlu1 %v7203_v43, %s6041_s28 }
 0x14f   : > { %v1744_v30 = vpop.permute.xlu0 %1743 }
 0x150   : > { %v1912_v18 = vsel %vm599_vm0, %v6007_v2, %v1744_v30  ;;  %v1746_v53 = vpop.permute.xlu1 %1745  ;;  %v3004_v30 = vsel %vm902_vm3, %v3002_v48, %v3003_v9  ;;  %v6011_v2 = vld [vmem:[#allocation2 + $0xa0] sm:$0xff] }
 0x151   : > { %3034 = vrot.lane.b32.xlu0 %v2995_v50, %s6042_s15  ;;  %v1928_v22 = vsel %vm1015_vm2, %v1912_v18, %v1872_v60  ;;  %v1913_v15 = vsel %vm599_vm0, %v6009_v55, %v1746_v53  ;;  %v2810_v50 = vrot.slane %v7307_v1, 1 }
 0x152   : > { %5712 = vmatmul.mubr.msk.f32.gmra.mxu0 %vm1230_vm5, %v1928_v22  ;;  %3036 = vrot.lane.b32.xlu1 %v2998_v12, %s6042_s15  ;;  %v7317_v12 = vld [vmem:[#allocation2 + $0xd0] sm:$0xff] }
 0x153   : > { %v2068_v59 = vpop.permute.xlu0 %2067  ;;  %v7327_v5 = vsel %vm902_vm3, %v2810_v50, %v2811_v42 }
 0x154   : > { %v2122_v32 = vsel %vm1015_vm2, %v2106_v37, %v2068_v59  ;;  %v2070_v36 = vpop.permute.xlu1 %2069  ;;  %v2813_v37 = vrot.slane %v7317_v12, 1  ;;  %v2814_v59 = vrot.slane %v2642_v20, 1  ;;  %v7359_v20 = vld [vmem:[#allocation2 + $0xe0] sm:$0xff] }
 0x155   : > { %2924 = vrot.lane.b32.xlu0 %v7278_v56, %s6041_s28  ;;  %5751 = vmatmul.mubr.msk.f32.gmra.mxu1 %vm1230_vm5, %v2122_v32  ;;  %v6012_v32 = vld [vmem:[#allocation3 + $0xc0] sm:$0xff] }
 0x156   : > { %2840 = vrot.lane.b32.xlu1 %v7232_v23, %s6042_s15  ;;  %v7340_v17 = vsel %vm902_vm3, %v2813_v37, %v2814_v59  ;;  %v7368_v37 = vld [vmem:[#allocation2 + $0xf0] sm:$0xff]  ;;  %v2646_v59 = vld [vmem:[#allocation2 + $0xf8] sm:$0x1] }
 0x157   : > { %v1958_v21 = vpop.permute.xlu0 %1957 }
 0x158   : > { %v2107_v49 = vsel %vm599_vm0, %v6010_v0, %v1958_v21  ;;  %v1874_v16 = vpop.permute.xlu1 %1873  ;;  %v6013_v0 = vld [vmem:[#allocation2 + $0xb0] sm:$0xff] }
 0x159   : > { %2926 = vrot.lane.b32.xlu0 %v7290_v45, %s6041_s28  ;;  %v1929_v61 = vsel %vm1015_vm2, %v1913_v15, %v1874_v16  ;;  %v2123_v23 = vsel %vm1015_vm2, %v2107_v49, %v2070_v36 }
 0x15a   : > { %5753 = vmatprep.mubr.msk.f32.mxu1 %vm1230_vm5, %v2123_v23  ;;  %2842 = vrot.lane.b32.xlu1 %v7244_v52, %s6042_s15  ;;  %v3001_v52 = vsel %vm902_vm3, %v2999_v41, %v3000_v44  ;;  %v7343_v23 = vld [vmem:[#allocation3 + $0xd0] sm:$0xff]  ;;  %v2675_v41 = vld [vmem:[#allocation3 + $0xd8] sm:$0x1] }
 0x15b   : > { %v1960_v28 = vpop.permute.xlu0 %1959  ;;  %5714 = vmatprep.mubr.msk.f32.mxu0 %vm1230_vm5, %v1929_v61  ;;  %v6014_v44 = vld [vmem:[#allocation3 + $0xd0] sm:$0xff]  ;;  %v3006_v50 = vrot.slane %v2675_v41, 1 }
 0x15c   : > { %v1876_v19 = vpop.permute.xlu1 %1875  ;;  %v2108_v36 = vsel %vm599_vm0, %v6012_v32, %v1960_v28  ;;  %v6015_v32 = vld [vmem:[#allocation2 + $0xc0] sm:$0xff] }
 0x15d   : > { %2714 = vrot.lane.b32.xlu0 %v7246_v35, %s6041_s28 }
 0x15e   : > { %v5668_v60 = vpop.f32.mrf.mxu1  ;;  %2716 = vrot.lane.b32.xlu1 %v7249_v13, %s6041_s28 }
 0x15f   : > { %1634 = vst.msk [vmem:[#allocation7 + $0x8] sm:$0xff] %vm1015_vm2, %v5668_v60  ;;  %v1748_v14 = vpop.permute.xlu0 %1747 }
 0x160   : > { %v1914_v18 = vsel %vm599_vm0, %v6011_v2, %v1748_v14  ;;  %v1538_v53 = vpop.f32.mrf.mxu1  ;;  %v1750_v22 = vpop.permute.xlu1 %1749  ;;  %v3008_v14 = vrot.slane %v7346_v10, 1  ;;  %v2644_v2 = vld [vmem:[#allocation2 + $0xe8] sm:$0x1] }
 0x161   : > { %1633 = vst.msk [vmem:[#allocation7] sm:$0xff] %vm1015_vm2, %v1538_v53  ;;  %3038 = vrot.lane.b32.xlu0 %v3001_v52, %s6042_s15  ;;  %v1930_v4 = vsel %vm1015_vm2, %v1914_v18, %v1876_v19  ;;  %v5632_v39 = vpop.f32.mrf.mxu0  ;;  %v1915_v49 = vsel %vm599_vm0, %v6013_v0, %v1750_v22  ;;  %v2677_v19 = vld [vmem:[#allocation3 + $0xe8] sm:$0x1]  ;;  %v3005_v52 = vrot.slane %v7343_v23, 1  ;;  %v2816_v53 = vrot.slane %v7359_v20, 1 }
 0x162   : > { %5715 = vmatmul.mubr.msk.f32.gmra.mxu0 %vm1230_vm5, %v1930_v4  ;;  %1618 = vst.msk [vmem:[#allocation6 + $0x8] sm:$0xff] %vm1015_vm2, %v5632_v39  ;;  %3040 = vrot.lane.b32.xlu1 %v3004_v30, %s6042_s15  ;;  %v3009_v30 = vrot.slane %v2677_v19, 1  ;;  %v2817_v22 = vrot.slane %v2644_v2, 1  ;;  %v2819_v0 = vrot.slane %v7368_v37, 1  ;;  %v6017_v19 = vld [vmem:[#allocation2 + $0xd0] sm:$0xff] }
 0x163   : > { %v2072_v55 = vpop.permute.xlu0 %2071  ;;  %v1345_v15 = vpop.f32.mrf.mxu0 }
 0x164   : > { %v2124_v21 = vsel %vm1015_vm2, %v2108_v36, %v2072_v55  ;;  %1617 = vst.msk [vmem:[#allocation6] sm:$0xff] %vm1015_vm2, %v1345_v15  ;;  %v2074_v11 = vpop.permute.xlu1 %2073  ;;  %v3010_v39 = vsel %vm902_vm3, %v3008_v14, %v3009_v30  ;;  %v2679_v14 = vld [vmem:[#allocation3 + $0xf8] sm:$0x1]  ;;  %v6018_v30 = vld [vmem:[#allocation3 + $0xf0] sm:$0xff] }
 0x165   : > { %2928 = vrot.lane.b32.xlu0 %v7327_v5, %s6041_s28  ;;  %5754 = vmatmul.mubr.msk.f32.gmra.mxu1 %vm1230_vm5, %v2124_v21 }
 0x166   : > { %v5671_v16 = vpop.f32.mrf.mxu1  ;;  %2844 = vrot.lane.b32.xlu1 %v7278_v56, %s6042_s15 }
 0x167   : > { %1636 = vst.msk [vmem:[#allocation7 + $0x18] sm:$0xff] %vm1015_vm2, %v5671_v16  ;;  %v1962_v61 = vpop.permute.xlu0 %1961  ;;  %v6016_v16 = vld [vmem:[#allocation3 + $0xe0] sm:$0xff] }
 0x168   : > { %v2109_v28 = vsel %vm599_vm0, %v6014_v44, %v1962_v61  ;;  %v1548_v48 = vpop.f32.mrf.mxu1  ;;  %v1878_v9 = vpop.permute.xlu1 %1877 }
 0x169   : > { %1635 = vst.msk [vmem:[#allocation7 + $0x10] sm:$0xff] %vm1015_vm2, %v1548_v48  ;;  %2930 = vrot.lane.b32.xlu0 %v7340_v17, %s6041_s28  ;;  %v1931_v56 = vsel %vm1015_vm2, %v1915_v49, %v1878_v9  ;;  %v2125_v60 = vsel %vm1015_vm2, %v2109_v28, %v2074_v11  ;;  %v7376_v11 = vsel %vm902_vm3, %v2816_v53, %v2817_v22  ;;  %v2820_v49 = vrot.slane %v2646_v59, 1  ;;  %v2648_v53 = vld [vmem:[#allocation2 + $0x108] sm:$0x1] }
 0x16a   : > { %5756 = vmatprep.mubr.msk.f32.mxu1 %vm1230_vm5, %v2125_v60  ;;  %2846 = vrot.lane.b32.xlu1 %v7290_v45, %s6042_s15  ;;  %v3007_v45 = vsel %vm902_vm3, %v3005_v52, %v3006_v50 }
 0x16b   : > { %v1964_v42 = vpop.permute.xlu0 %1963  ;;  %5717 = vmatprep.mubr.msk.f32.mxu0 %vm1230_vm5, %v1931_v56  ;;  %v7391_v60 = vsel %vm902_vm3, %v2819_v0, %v2820_v49  ;;  %v6019_v0 = vld [vmem:[#allocation2 + $0xe0] sm:$0xff] }
 0x16c   : > { %v1880_v18 = vpop.permute.xlu1 %1879  ;;  %v2110_v61 = vsel %vm599_vm0, %v6016_v16, %v1964_v42  ;;  %v7393_v42 = vld [vmem:[#allocation3 + $0xf0] sm:$0xff] }
 0x16d   : > { %2718 = vrot.lane.b32.xlu0 %v7292_v58, %s6041_s28  ;;  %v3011_v22 = vrot.slane %v7393_v42, 1 }
 0x16e   : > { %2720 = vrot.lane.b32.xlu1 %v7295_v33, %s6041_s28 }
 0x16f   : > { %v1752_v4 = vpop.permute.xlu0 %1751 }
 0x170   : > { %v1916_v36 = vsel %vm599_vm0, %v6015_v32, %v1752_v4  ;;  %v1754_v55 = vpop.permute.xlu1 %1753  ;;  %v3012_v4 = vrot.slane %v2679_v14, 1  ;;  %v2823_v32 = vrot.slane %v2648_v53, 1 }
 0x171   : > { %3042 = vrot.lane.b32.xlu0 %v3007_v45, %s6042_s15  ;;  %v1932_v15 = vsel %vm1015_vm2, %v1916_v36, %v1880_v18  ;;  %v1917_v56 = vsel %vm599_vm0, %v6017_v19, %v1754_v55  ;;  %v7408_v36 = vld [vmem:[#allocation2 + $0x110] sm:$0xff]  ;;  %v2650_v55 = vld [vmem:[#allocation2 + $0x118] sm:$0x1] }
 0x172   : > { %v5635_v21 = vpop.f32.mrf.mxu0  ;;  %5718 = vmatmul.mubr.msk.f32.gmra.mxu0 %vm1230_vm5, %v1932_v15  ;;  %3044 = vrot.lane.b32.xlu1 %v3010_v39, %s6042_s15  ;;  %v3013_v15 = vsel %vm902_vm3, %v3011_v22, %v3012_v4  ;;  %v2681_v4 = vld [vmem:[#allocation3 + $0x108] sm:$0x1] }
 0x173   : > { %1620 = vst.msk [vmem:[#allocation6 + $0x18] sm:$0xff] %vm1015_vm2, %v5635_v21  ;;  %v2076_v41 = vpop.permute.xlu0 %2075 }
 0x174   : > { %v2126_v44 = vsel %vm1015_vm2, %v2110_v61, %v2076_v41  ;;  %v1355_v28 = vpop.f32.mrf.mxu0  ;;  %v2078_v48 = vpop.permute.xlu1 %2077  ;;  %v2825_v61 = vrot.slane %v7408_v36, 1  ;;  %v2826_v41 = vrot.slane %v2650_v55, 1 }
 0x175   : > { %1619 = vst.msk [vmem:[#allocation6 + $0x10] sm:$0xff] %vm1015_vm2, %v1355_v28  ;;  %2932 = vrot.lane.b32.xlu0 %v7376_v11, %s6041_s28  ;;  %v5674_v9 = vpop.f32.mrf.mxu1  ;;  %5757 = vmatmul.mubr.msk.f32.gmra.mxu1 %vm1230_vm5, %v2126_v44  ;;  %v7422_v28 = vld [vmem:[#allocation3 + $0x110] sm:$0xff] }
 0x176   : > { %1638 = vst.msk [vmem:[#allocation7 + $0x28] sm:$0xff] %vm1015_vm2, %v5674_v9  ;;  %2848 = vrot.lane.b32.xlu1 %v7327_v5, %s6042_s15  ;;  %v2827_v14 = vsel %vm902_vm3, %v2825_v61, %v2826_v41 }
 0x177   : > { %v1966_v52 = vpop.permute.xlu0 %1965  ;;  %v1558_v50 = vpop.f32.mrf.mxu1 }
 0x178   : > { %v2111_v2 = vsel %vm599_vm0, %v6018_v30, %v1966_v52  ;;  %1637 = vst.msk [vmem:[#allocation7 + $0x20] sm:$0xff] %vm1015_vm2, %v1558_v50  ;;  %v1882_v18 = vpop.permute.xlu1 %1881  ;;  %v3017_v30 = vrot.slane %v7422_v28, 1 }
 0x179   : > { %2934 = vrot.lane.b32.xlu0 %v7391_v60, %s6041_s28  ;;  %v1933_v45 = vsel %vm1015_vm2, %v1917_v56, %v1882_v18  ;;  %v2127_v5 = vsel %vm1015_vm2, %v2111_v2, %v2078_v48  ;;  %v2683_v48 = vld [vmem:[#allocation3 + $0x118] sm:$0x1] }
 0x17a   : > { %5759 = vmatprep.mubr.msk.f32.mxu1 %vm1230_vm5, %v2127_v5  ;;  %5720 = vmatprep.mubr.msk.f32.mxu0 %vm1230_vm5, %v1933_v45  ;;  %v3018_v2 = vrot.slane %v2683_v48, 1  ;;  %v6020_v45 = vld [vmem:[#allocation2 + $0xf0] sm:$0xff] }
 0x17b   : > { %v1968_v39 = vpop.permute.xlu0 %1967  ;;  %2850 = vrot.lane.b32.xlu1 %v7340_v17, %s6042_s15  ;;  %v7417_v17 = vsel %vm902_vm3, %v1854_v3, %v2823_v32 }
 0x17c   : > { %v1884_v59 = vpop.permute.xlu1 %1883  ;;  %v2112_v19 = vsel %vm599_vm0, %v7006_v51, %v1968_v39  ;;  %v3019_v32 = vsel %vm902_vm3, %v3017_v30, %v3018_v2 }
 0x17d   : > { %2722 = vrot.lane.b32.xlu0 %v7343_v23, %s6041_s28 }
 0x17f   : > { %v1756_v21 = vpop.permute.xlu0 %1755  ;;  %2726 = vrot.lane.b32.xlu1 %v7393_v42, %s6041_s28 }
 0x180   : > { %v1918_v49 = vsel %vm599_vm0, %v6019_v0, %v1756_v21  ;;  %v1758_v16 = vpop.permute.xlu1 %1757  ;;  %v3015_v21 = vrot.slane %v2681_v4, 1 }
 0x181   : > { %3046 = vrot.lane.b32.xlu0 %v3013_v15, %s6042_s15  ;;  %v1934_v44 = vsel %vm1015_vm2, %v1918_v49, %v1884_v59  ;;  %v1919_v5 = vsel %vm599_vm0, %v6020_v45, %v1758_v16 }
 0x182   : > { %v5638_v9 = vpop.f32.mrf.mxu0  ;;  %5721 = vmatmul.mubr.msk.f32.gmra.mxu0 %vm1230_vm5, %v1934_v44 }
 0x183   : > { %1622 = vst.msk [vmem:[#allocation6 + $0x28] sm:$0xff] %vm1015_vm2, %v5638_v9  ;;  %v2080_v3 = vpop.permute.xlu0 %2079  ;;  %2936 = vrot.lane.b32.xlu1 %v7417_v17, %s6041_s28 }
 0x184   : > { %v2128_v56 = vsel %vm1015_vm2, %v2112_v19, %v2080_v3  ;;  %v1365_v52 = vpop.f32.mrf.mxu0  ;;  %v3021_v50 = vpop.permute.xlu1 %3020 }
 0x185   : > { %1621 = vst.msk [vmem:[#allocation6 + $0x20] sm:$0xff] %vm1015_vm2, %v1365_v52  ;;  %2724 = vrot.lane.b32.xlu0 %v7346_v10, %s6041_s28  ;;  %v5677_v18 = vpop.f32.mrf.mxu1  ;;  %5760 = vmatmul.mubr.msk.f32.gmra.mxu1 %vm1230_vm5, %v2128_v56 }
 0x186   : > { %1640 = vst.msk [vmem:[#allocation7 + $0x38] sm:$0xff] %vm1015_vm2, %v5677_v18 }
 0x187   : > { %v2909_v53 = vpop.permute.xlu0 %2908  ;;  %v1568_v22 = vpop.f32.mrf.mxu1  ;;  %2938 = vrot.lane.b32.xlu1 %v2827_v14, %s6041_s28 }
 0x188   : > { %v3068_v39 = vsel %vm599_vm0, %v7009_v63, %v2909_v53  ;;  %1639 = vst.msk [vmem:[#allocation7 + $0x30] sm:$0xff] %vm1015_vm2, %v1568_v22  ;;  %v1886_v59 = vpop.permute.xlu1 %1885 }
 0x189   : > { %2852 = vrot.lane.b32.xlu0 %v7376_v11, %s6042_s15  ;;  %v1935_v55 = vsel %vm1015_vm2, %v1919_v5, %v1886_v59  ;;  %v3084_v15 = vsel %vm1015_vm2, %v3068_v39, %v3021_v50  ;;  %v3016_v11 = vsel %vm902_vm3, %v2046_v47, %v3015_v21 }
 0x18a   : > { %5810 = vmatprep.mubr.msk.f32.mxu1 %vm1230_vm5, %v3084_v15  ;;  %5723 = vmatprep.mubr.msk.f32.mxu0 %vm1230_vm5, %v1935_v55 }
 0x18b   : > { %v2911_v0 = vpop.permute.xlu0 %2910  ;;  %3050 = vrot.lane.b32.xlu1 %v3019_v32, %s6042_s15 }
 0x18c   : > { %v1888_v63 = vpop.permute.xlu1 %1887 }
 0x18d   : > { %2854 = vrot.lane.b32.xlu0 %v7391_v60, %s6042_s15  ;;  %v3069_v60 = vsel %vm599_vm0, %v7072_v38, %v2911_v0 }
 0x18f   : > { %v1760_v49 = vpop.permute.xlu0 %1759  ;;  %2730 = vrot.lane.b32.xlu1 %v7422_v28, %s6041_s28 }
 0x190   : > { %v1920_v16 = vsel %vm599_vm0, %v6978_v24, %v1760_v49  ;;  %v2701_v61 = vpop.permute.xlu1 %2700 }
 0x191   : > { %3048 = vrot.lane.b32.xlu0 %v3016_v11, %s6042_s15  ;;  %v1936_v41 = vsel %vm1015_vm2, %v1920_v16, %v1888_v63  ;;  %v2876_v38 = vsel %vm599_vm0, %v7026_v40, %v2701_v61 }
 0x192   : > { %v5641_v44 = vpop.f32.mrf.mxu0  ;;  %5724 = vmatmul.mubr.msk.f32.gmra.mxu0 %vm1230_vm5, %v1936_v41 }
 0x193   : > { %1624 = vst.msk [vmem:[#allocation6 + $0x38] sm:$0xff] %vm1015_vm2, %v5641_v44  ;;  %v3023_v47 = vpop.permute.xlu0 %3022  ;;  %2858 = vrot.lane.b32.xlu1 %v2827_v14, %s6042_s15 }
 0x194   : > { %v3085_v48 = vsel %vm1015_vm2, %v3069_v60, %v3023_v47  ;;  %v1375_v9 = vpop.f32.mrf.mxu0  ;;  %v3025_v24 = vpop.permute.xlu1 %3024 }
 0x195   : > { %1623 = vst.msk [vmem:[#allocation6 + $0x30] sm:$0xff] %vm1015_vm2, %v1375_v9  ;;  %2728 = vrot.lane.b32.xlu0 %v7006_v51, %s6041_s28  ;;  %v5680_v19 = vpop.f32.mrf.mxu1  ;;  %5811 = vmatmul.mubr.msk.f32.vlgmr.msra.gmra.mxu1 %vm1230_vm5, %v3085_v48  ;;  %s6043_s28 = smov 64  }
 0x196   : > { %1642 = vst.msk [vmem:[#allocation7 + $0x48] sm:$0xff] %vm1015_vm2, %v5680_v19 }
 0x197   : > { %v2913_v3 = vpop.permute.xlu0 %2912  ;;  %v1578_v56 = vpop.f32.mrf.mxu1 }
 0x198   : > { %v3070_v52 = vsel %vm599_vm0, %v7076_v26, %v2913_v3  ;;  %1641 = vst.msk [vmem:[#allocation7 + $0x40] sm:$0xff] %vm1015_vm2, %v1578_v56  ;;  %v2829_v50 = vpop.permute.xlu1 %2828 }
 0x199   : > { %2856 = vrot.lane.b32.xlu0 %v7417_v17, %s6042_s15  ;;  %v2892_v51 = vsel %vm1015_vm2, %v2876_v38, %v2829_v50  ;;  %v3086_v14 = vsel %vm1015_vm2, %v3070_v52, %v3025_v24 }
 0x19a   : > { %5813 = vmatprep.mubr.msk.f32.mxu1 %vm1230_vm5, %v3086_v14  ;;  %5774 = vmatprep.mubr.msk.f32.mxu0 %vm1230_vm5, %v2892_v51 }
 0x19b   : > { %v2915_v40 = vpop.permute.xlu0 %2914 }
 0x19c   : > { %v2831_v30 = vpop.permute.xlu1 %2830  ;;  %v3071_v17 = vsel %vm599_vm0, %v7146_v46, %v2915_v40 }
 0x19f   : > { %v2703_v2 = vpop.permute.xlu0 %2702 }
 0x1a0   : > { %v2877_v26 = vsel %vm599_vm0, %v7038_v29, %v2703_v2  ;;  %v2705_v18 = vpop.permute.xlu1 %2704 }
 0x1a1   : > { %v2893_v45 = vsel %vm1015_vm2, %v2877_v26, %v2831_v30  ;;  %v2878_v29 = vsel %vm599_vm0, %v7095_v7, %v2705_v18 }
 0x1a2   : > { %v5644_v5 = vpop.f32.mrf.mxu0  ;;  %5775 = vmatmul.mubr.msk.f32.vlgmr.msra.gmra.mxu0 %vm1230_vm5, %v2893_v45 }
 0x1a3   : > { %1626 = vst.msk [vmem:[#allocation6 + $0x48] sm:$0xff] %vm1015_vm2, %v5644_v5  ;;  %v3027_v53 = vpop.permute.xlu0 %3026 }
 0x1a4   : > { %v3087_v22 = vsel %vm1015_vm2, %v3071_v17, %v3027_v53  ;;  %v1385_v4 = vpop.f32.mrf.mxu0  ;;  %v3029_v39 = vpop.permute.xlu1 %3028 }
 0x1a5   : > { %1625 = vst.msk [vmem:[#allocation6 + $0x40] sm:$0xff] %vm1015_vm2, %v1385_v4  ;;  %v5683_v59 = vpop.f32.mrf.mxu1  ;;  %5814 = vmatmul.mubr.msk.f32.gmra.mxu1 %vm1230_vm5, %v3087_v22 }
 0x1a6   : > { %1644 = vst.msk [vmem:[#allocation7 + $0x58] sm:$0xff] %vm1015_vm2, %v5683_v59 }
 0x1a7   : > { %v2917_v32 = vpop.permute.xlu0 %2916  ;;  %v1588_v55 = vpop.f32.mrf.mxu1 }
 0x1a8   : > { %v3072_v46 = vsel %vm599_vm0, %v7150_v25, %v2917_v32  ;;  %1643 = vst.msk [vmem:[#allocation7 + $0x50] sm:$0xff] %vm1015_vm2, %v1588_v55  ;;  %v2833_v15 = vpop.permute.xlu1 %2832 }
 0x1a9   : > { %v2894_v21 = vsel %vm1015_vm2, %v2878_v29, %v2833_v15  ;;  %v3088_v0 = vsel %vm1015_vm2, %v3072_v46, %v3029_v39 }
 0x1aa   : > { %5816 = vmatprep.mubr.msk.f32.mxu1 %vm1230_vm5, %v3088_v0  ;;  %5777 = vmatprep.mubr.msk.f32.mxu0 %vm1230_vm5, %v2894_v21 }
 0x1ab   : > { %v2919_v63 = vpop.permute.xlu0 %2918 }
 0x1ac   : > { %v2835_v7 = vpop.permute.xlu1 %2834  ;;  %v3073_v41 = vsel %vm599_vm0, %v7200_v8, %v2919_v63 }
 0x1af   : > { %v2707_v11 = vpop.permute.xlu0 %2706 }
 0x1b0   : > { %v2879_v49 = vsel %vm599_vm0, %v7118_v54, %v2707_v11  ;;  %v2709_v16 = vpop.permute.xlu1 %2708 }
 0x1b1   : > { %v2895_v25 = vsel %vm1015_vm2, %v2879_v49, %v2835_v7  ;;  %v2880_v54 = vsel %vm599_vm0, %v7164_v6, %v2709_v16 }
 0x1b2   : > { %v5647_v61 = vpop.f32.mrf.mxu0  ;;  %5778 = vmatmul.mubr.msk.f32.gmra.mxu0 %vm1230_vm5, %v2895_v25 }
 0x1b3   : > { %1628 = vst.msk [vmem:[#allocation6 + $0x58] sm:$0xff] %vm1015_vm2, %v5647_v61  ;;  %v3031_v44 = vpop.permute.xlu0 %3030 }
 0x1b4   : > { %v3089_v60 = vsel %vm1015_vm2, %v3073_v41, %v3031_v44  ;;  %v1395_v47 = vpop.f32.mrf.mxu0  ;;  %v3033_v48 = vpop.permute.xlu1 %3032 }
 0x1b5   : > { %1627 = vst.msk [vmem:[#allocation6 + $0x50] sm:$0xff] %vm1015_vm2, %v1395_v47  ;;  %v5686_v9 = vpop.f32.mrf.mxu1  ;;  %5817 = vmatmul.mubr.msk.f32.gmra.mxu1 %vm1230_vm5, %v3089_v60 }
 0x1b6   : > { %1646 = vst.msk [vmem:[#allocation7 + $0x68] sm:$0xff] %vm1015_vm2, %v5686_v9 }
 0x1b7   : > { %v2921_v24 = vpop.permute.xlu0 %2920  ;;  %v1598_v19 = vpop.f32.mrf.mxu1 }
 0x1b8   : > { %v3074_v8 = vsel %vm599_vm0, %v7203_v43, %v2921_v24  ;;  %1645 = vst.msk [vmem:[#allocation7 + $0x60] sm:$0xff] %vm1015_vm2, %v1598_v19  ;;  %v2837_v38 = vpop.permute.xlu1 %2836 }
 0x1b9   : > { %v2896_v3 = vsel %vm1015_vm2, %v2880_v54, %v2837_v38  ;;  %v3090_v56 = vsel %vm1015_vm2, %v3074_v8, %v3033_v48  ;;  %v2523_v38 = vld [vmem:[#allocation6 + $0x8] sm:$0xff] }
 0x1ba   : > { %5819 = vmatprep.mubr.msk.f32.mxu1 %vm1230_vm5, %v3090_v56  ;;  %5780 = vmatprep.mubr.msk.f32.mxu0 %vm1230_vm5, %v2896_v3 }
 0x1bb   : > { %v2923_v52 = vpop.permute.xlu0 %2922 }
 0x1bc   : > { %v2839_v6 = vpop.permute.xlu1 %2838  ;;  %v3075_v30 = vsel %vm599_vm0, %v7246_v35, %v2923_v52 }
 0x1bf   : > { %v2711_v50 = vpop.permute.xlu0 %2710 }
 0x1c0   : > { %v2881_v51 = vsel %vm599_vm0, %v7177_v27, %v2711_v50  ;;  %v2713_v14 = vpop.permute.xlu1 %2712 }
 0x1c1   : > { %v2897_v43 = vsel %vm1015_vm2, %v2881_v51, %v2839_v6  ;;  %v2882_v27 = vsel %vm599_vm0, %v7215_v57, %v2713_v14  ;;  %v2522_v51 = vld [vmem:[#allocation6] sm:$0xff] }
 0x1c2   : > { %v5650_v40 = vpop.f32.mrf.mxu0  ;;  %5781 = vmatmul.mubr.msk.f32.gmra.mxu0 %vm1230_vm5, %v2897_v43 }
 0x1c3   : > { %1630 = vst.msk [vmem:[#allocation6 + $0x68] sm:$0xff] %vm1015_vm2, %v5650_v40  ;;  %v3035_v2 = vpop.permute.xlu0 %3034  ;;  %v2573_v40 = vld [vmem:[#allocation7 + $0x18] sm:$0xff] }
 0x1c4   : > { %v3091_v26 = vsel %vm1015_vm2, %v3075_v30, %v3035_v2  ;;  %v1405_v18 = vpop.f32.mrf.mxu0  ;;  %v3037_v45 = vpop.permute.xlu1 %3036  ;;  %v8331_v30 = vmov 0.0  }
 0x1c5   : > { %1629 = vst.msk [vmem:[#allocation6 + $0x60] sm:$0xff] %vm1015_vm2, %v1405_v18  ;;  %v5689_v5 = vpop.f32.mrf.mxu1  ;;  %5820 = vmatmul.mubr.msk.f32.gmra.mxu1 %vm1230_vm5, %v3091_v26 }
 0x1c6   : > { %1648 = vst.msk [vmem:[#allocation7 + $0x78] sm:$0xff] %vm1015_vm2, %v5689_v5 }
 0x1c7   : > { %v2925_v17 = vpop.permute.xlu0 %2924  ;;  %v1608_v53 = vpop.f32.mrf.mxu1  ;;  %3725 = vst.msk [vmem:[#allocation4 + $0x8] sm:$0x1] %vm3724_vm6, %v8331_v30 }
 0x1c8   : > { %v3076_v35 = vsel %vm599_vm0, %v7249_v13, %v2925_v17  ;;  %1647 = vst.msk [vmem:[#allocation7 + $0x70] sm:$0xff] %vm1015_vm2, %v1608_v53  ;;  %v2841_v22 = vpop.permute.xlu1 %2840 }
 0x1c9   : > { %v2898_v4 = vsel %vm1015_vm2, %v2882_v27, %v2841_v22  ;;  %v3092_v39 = vsel %vm1015_vm2, %v3076_v35, %v3037_v45  ;;  %v2572_v45 = vld [vmem:[#allocation7 + $0x10] sm:$0xff] }
 0x1ca   : > { %5822 = vmatprep.mubr.msk.f32.mxu1 %vm1230_vm5, %v3092_v39  ;;  %5783 = vmatprep.mubr.msk.f32.mxu0 %vm1230_vm5, %v2898_v4  ;;  %v3862_v39 = vld [vmem:[#allocation5] sm:$0xff] }
 0x1cb   : > { %v2927_v59 = vpop.permute.xlu0 %2926  ;;  %3878 = vrot.lane.b32.xlu0 %v3862_v39, %s6042_s15  ;;  %v2529_v39 = vld [vmem:[#allocation6 + $0x38] sm:$0xff] }
 0x1cc   : > { %v2843_v57 = vpop.permute.xlu1 %2842  ;;  %v3077_v15 = vsel %vm599_vm0, %v7292_v58, %v2927_v59  ;;  %v2570_v58 = vld [vmem:[#allocation7] sm:$0xff] }
 0x1cf   : > { %v2715_v29 = vpop.permute.xlu0 %2714 }
 0x1d0   : > { %v2883_v32 = vsel %vm599_vm0, %v7224_v34, %v2715_v29  ;;  %v2717_v55 = vpop.permute.xlu1 %2716  ;;  %v2571_v34 = vld [vmem:[#allocation7 + $0x8] sm:$0xff] }
 0x1d1   : > { %v2899_v13 = vsel %vm1015_vm2, %v2883_v32, %v2843_v57  ;;  %v2884_v49 = vsel %vm599_vm0, %v7261_v31, %v2717_v55  ;;  %v3847_v57 = vld [vmem:[#allocation4 + $0x8] sm:$0x1] }
 0x1d2   : > { %v5653_v46 = vpop.f32.mrf.mxu0  ;;  %5784 = vmatmul.mubr.msk.f32.gmra.mxu0 %vm1230_vm5, %v2899_v13  ;;  %v3919_v13 = vrot.slane %v3847_v57, 1 }
 0x1d3   : > { %1632 = vst.msk [vmem:[#allocation6 + $0x78] sm:$0xff] %vm1015_vm2, %v5653_v46  ;;  %v3039_v21 = vpop.permute.xlu0 %3038 }
 0x1d4   : > { %v3093_v0 = vsel %vm1015_vm2, %v3077_v15, %v3039_v21  ;;  %v1415_v63 = vpop.f32.mrf.mxu0  ;;  %v3041_v7 = vpop.permute.xlu1 %3040  ;;  %v2525_v15 = vld [vmem:[#allocation6 + $0x18] sm:$0xff] }
 0x1d5   : > { %1631 = vst.msk [vmem:[#allocation6 + $0x70] sm:$0xff] %vm1015_vm2, %v1415_v63  ;;  %v5740_v11 = vpop.f32.mrf.mxu1  ;;  %5823 = vmatmul.mubr.msk.f32.gmra.mxu1 %vm1230_vm5, %v3093_v0 }
 0x1d6   : > { %v2587_v16 = vadd.f32 %v5740_v11, %v2571_v34  ;;  %v2524_v34 = vld [vmem:[#allocation6 + $0x10] sm:$0xff] }
 0x1d7   : > { %v2929_v25 = vpop.permute.xlu0 %2928  ;;  %v2443_v61 = vpop.f32.mrf.mxu1 }
 0x1d8   : > { %2603 = vst.msk [vmem:[#allocation7 + $0x8] sm:$0xff] %vm1015_vm2, %v2587_v16  ;;  %v3078_v41 = vsel %vm599_vm0, %v7295_v33, %v2929_v25  ;;  %v2586_v44 = vadd.f32 %v2570_v58, %v2443_v61  ;;  %v2845_v60 = vpop.permute.xlu1 %2844  ;;  %v2575_v25 = vld [vmem:[#allocation7 + $0x28] sm:$0xff] }
 0x1d9   : > { %v2900_v47 = vsel %vm1015_vm2, %v2884_v49, %v2845_v60  ;;  %v3094_v48 = vsel %vm1015_vm2, %v3078_v41, %v3041_v7 }
 0x1da   : > { %2602 = vst.msk [vmem:[#allocation7] sm:$0xff] %vm1015_vm2, %v2586_v44  ;;  %5825 = vmatprep.mubr.msk.f32.mxu1 %vm1230_vm5, %v3094_v48  ;;  %5786 = vmatprep.mubr.msk.f32.mxu0 %vm1230_vm5, %v2900_v47  ;;  %v2574_v44 = vld [vmem:[#allocation7 + $0x20] sm:$0xff] }
 0x1db   : > { %v2931_v31 = vpop.permute.xlu0 %2930 }
 0x1dc   : > { %v2847_v9 = vpop.permute.xlu1 %2846  ;;  %v3079_v3 = vsel %vm599_vm0, %v7343_v23, %v2931_v31 }
 0x1df   : > { %v2719_v54 = vpop.permute.xlu0 %2718 }
 0x1e0   : > { %v2885_v24 = vsel %vm599_vm0, %v7270_v62, %v2719_v54  ;;  %v2721_v19 = vpop.permute.xlu1 %2720 }
 0x1e1   : > { %v2901_v33 = vsel %vm1015_vm2, %v2885_v24, %v2847_v9  ;;  %v2886_v23 = vsel %vm599_vm0, %v7307_v1, %v2721_v19 }
 0x1e2   : > { %v5704_v8 = vpop.f32.mrf.mxu0  ;;  %5787 = vmatmul.mubr.msk.f32.gmra.mxu0 %vm1230_vm5, %v2901_v33 }
 0x1e3   : > { %v2539_v56 = vadd.f32 %v5704_v8, %v2523_v38  ;;  %v3043_v52 = vpop.permute.xlu0 %3042 }
 0x1e4   : > { %v3095_v6 = vsel %vm1015_vm2, %v3079_v3, %v3043_v52  ;;  %v2250_v50 = vpop.f32.mrf.mxu0  ;;  %v3045_v14 = vpop.permute.xlu1 %3044  ;;  %v2527_v3 = vld [vmem:[#allocation6 + $0x28] sm:$0xff] }
 0x1e5   : > { %2555 = vst.msk [vmem:[#allocation6 + $0x8] sm:$0xff] %vm1015_vm2, %v2539_v56  ;;  %v2538_v62 = vadd.f32 %v2522_v51, %v2250_v50  ;;  %v5743_v43 = vpop.f32.mrf.mxu1  ;;  %5826 = vmatmul.mubr.msk.f32.gmra.mxu1 %vm1230_vm5, %v3095_v6 }
 0x1e6   : > { %v2589_v2 = vadd.f32 %v5743_v43, %v2573_v40 }
 0x1e7   : > { %2554 = vst.msk [vmem:[#allocation6] sm:$0xff] %vm1015_vm2, %v2538_v62  ;;  %v2933_v26 = vpop.permute.xlu0 %2932  ;;  %v2453_v18 = vpop.f32.mrf.mxu1 }
 0x1e8   : > { %2605 = vst.msk [vmem:[#allocation7 + $0x18] sm:$0xff] %vm1015_vm2, %v2589_v2  ;;  %v3080_v5 = vsel %vm599_vm0, %v7346_v10, %v2933_v26  ;;  %v2588_v27 = vadd.f32 %v2572_v45, %v2453_v18  ;;  %v2849_v17 = vpop.permute.xlu1 %2848  ;;  %v7589_v10 = vld [vmem:[#allocation4] sm:$0xff] }
 0x1e9   : > { %v2902_v53 = vsel %vm1015_vm2, %v2886_v23, %v2849_v17  ;;  %v3096_v35 = vsel %vm1015_vm2, %v3080_v5, %v3045_v14  ;;  %v3918_v55 = vrot.slane %v7589_v10, 1  ;;  %v2526_v14 = vld [vmem:[#allocation6 + $0x20] sm:$0xff]  ;;  %v2577_v23 = vld [vmem:[#allocation7 + $0x38] sm:$0xff]  ;;  %v2576_v18 = vld [vmem:[#allocation7 + $0x30] sm:$0xff] }
 0x1ea   : > { %2604 = vst.msk [vmem:[#allocation7 + $0x10] sm:$0xff] %vm1015_vm2, %v2588_v27  ;;  %5828 = vmatprep.mubr.msk.f32.mxu1 %vm1230_vm5, %v3096_v35  ;;  %5789 = vmatprep.mubr.msk.f32.mxu0 %vm1230_vm5, %v2902_v53  ;;  %v6022_v17 = vld [vmem:[#allocation2 + $0x100] sm:$0xff] }
 0x1eb   : > { %v2935_v1 = vpop.permute.xlu0 %2934  ;;  %v3920_v63 = vsel %vm902_vm3, %v3918_v55, %v3919_v13  ;;  %v2579_v55 = vld [vmem:[#allocation7 + $0x48] sm:$0xff] }
 0x1ec   : > { %v3081_v21 = vsel %vm599_vm0, %v7393_v42, %v2935_v1  ;;  %3942 = vrot.lane.b32.xlu0 %v3920_v63, %s6043_s28 }
 0x1ed   : > { %v2851_v22 = vpop.permute.xlu1 %2850 }
 0x1ef   : > { %v2723_v4 = vpop.permute.xlu0 %2722 }
 0x1f0   : > { %v2887_v59 = vsel %vm599_vm0, %v7317_v12, %v2723_v4 }
 0x1f1   : > { %v2903_v29 = vsel %vm1015_vm2, %v2887_v59, %v2851_v22  ;;  %v2727_v32 = vpop.permute.xlu1 %2726 }
 0x1f2   : > { %v5707_v46 = vpop.f32.mrf.mxu0  ;;  %5790 = vmatmul.mubr.msk.f32.gmra.mxu0 %vm1230_vm5, %v2903_v29  ;;  %v2889_v24 = vsel %vm599_vm0, %v7368_v37, %v2727_v32 }
 0x1f3   : > { %v2541_v0 = vadd.f32 %v5707_v46, %v2525_v15  ;;  %v3047_v12 = vpop.permute.xlu0 %3046  ;;  %v2578_v15 = vld [vmem:[#allocation7 + $0x40] sm:$0xff] }
 0x1f4   : > { %v3097_v7 = vsel %vm1015_vm2, %v3081_v21, %v3047_v12  ;;  %v2260_v11 = vpop.f32.mrf.mxu0  ;;  %v2531_v12 = vld [vmem:[#allocation6 + $0x48] sm:$0xff] }
 0x1f5   : > { %2557 = vst.msk [vmem:[#allocation6 + $0x18] sm:$0xff] %vm1015_vm2, %v2541_v0  ;;  %v2540_v49 = vadd.f32 %v2524_v34, %v2260_v11  ;;  %v5746_v16 = vpop.f32.mrf.mxu1  ;;  %5829 = vmatmul.mubr.msk.f32.gmra.mxu1 %vm1230_vm5, %v3097_v7  ;;  %v2937_v61 = vpop.permute.xlu1 %2936  ;;  %v2530_v11 = vld [vmem:[#allocation6 + $0x40] sm:$0xff] }
 0x1f6   : > { %v2591_v42 = vadd.f32 %v5746_v16, %v2575_v25  ;;  %v2581_v16 = vld [vmem:[#allocation7 + $0x58] sm:$0xff] }
 0x1f7   : > { %2556 = vst.msk [vmem:[#allocation6 + $0x10] sm:$0xff] %vm1015_vm2, %v2540_v49  ;;  %v2725_v58 = vpop.permute.xlu0 %2724  ;;  %v2463_v41 = vpop.f32.mrf.mxu1 }
 0x1f8   : > { %2607 = vst.msk [vmem:[#allocation7 + $0x28] sm:$0xff] %vm1015_vm2, %v2591_v42  ;;  %v2590_v60 = vadd.f32 %v2574_v44, %v2463_v41  ;;  %v2888_v48 = vsel %vm599_vm0, %v7359_v20, %v2725_v58  ;;  %v6021_v20 = vld [vmem:[#allocation3 + $0x100] sm:$0xff]  ;;  %v2533_v44 = vld [vmem:[#allocation6 + $0x58] sm:$0xff] }
 0x1f9   : > { %v2939_v47 = vpop.permute.xlu1 %2938  ;;  %v3082_v56 = vsel %vm599_vm0, %v6021_v20, %v2937_v61  ;;  %v2580_v42 = vld [vmem:[#allocation7 + $0x50] sm:$0xff] }
 0x1fa   : > { %2606 = vst.msk [vmem:[#allocation7 + $0x20] sm:$0xff] %vm1015_vm2, %v2590_v60  ;;  %v3083_v8 = vsel %vm599_vm0, %v7422_v28, %v2939_v47 }
 0x1fb   : > { %v2853_v31 = vpop.permute.xlu0 %2852 }
 0x1fc   : > { %v2904_v9 = vsel %vm1015_vm2, %v2888_v48, %v2853_v31  ;;  %v2532_v48 = vld [vmem:[#allocation6 + $0x50] sm:$0xff] }
 0x1fd   : > { %5792 = vmatprep.mubr.msk.f32.mxu0 %vm1230_vm5, %v2904_v9  ;;  %v3051_v54 = vpop.permute.xlu1 %3050 }
 0x1fe   : > { %v3099_v62 = vsel %vm1015_vm2, %v3083_v8, %v3051_v54  ;;  %v2583_v54 = vld [vmem:[#allocation7 + $0x68] sm:$0xff] }
 0x1ff   : > { %v2855_v19 = vpop.permute.xlu0 %2854 }
 0x200   : > { %v2905_v33 = vsel %vm1015_vm2, %v2889_v24, %v2855_v19 }
 0x201   : > { %5793 = vmatmul.mubr.msk.f32.gmra.mxu0 %vm1230_vm5, %v2905_v33  ;;  %v2731_v37 = vpop.permute.xlu1 %2730  ;;  %v2582_v33 = vld [vmem:[#allocation7 + $0x60] sm:$0xff] }
 0x202   : > { %v5710_v38 = vpop.f32.mrf.mxu0  ;;  %v2891_v5 = vsel %vm599_vm0, %v7408_v36, %v2731_v37  ;;  %v2528_v36 = vld [vmem:[#allocation6 + $0x30] sm:$0xff] }
 0x203   : > { %v2543_v52 = vadd.f32 %v5710_v38, %v2527_v3  ;;  %v3049_v6 = vpop.permute.xlu0 %3048  ;;  %v2535_v3 = vld [vmem:[#allocation6 + $0x68] sm:$0xff] }
 0x204   : > { %v3098_v50 = vsel %vm1015_vm2, %v3082_v56, %v3049_v6  ;;  %v2270_v51 = vpop.f32.mrf.mxu0 }
 0x205   : > { %2559 = vst.msk [vmem:[#allocation6 + $0x28] sm:$0xff] %vm1015_vm2, %v2543_v52  ;;  %v2542_v43 = vadd.f32 %v2526_v14, %v2270_v51  ;;  %v5749_v40 = vpop.f32.mrf.mxu1  ;;  %5831 = vmatprep.mubr.msk.f32.mxu1 %vm1230_vm5, %v3098_v50  ;;  %v2859_v27 = vpop.permute.xlu1 %2858  ;;  %v2534_v52 = vld [vmem:[#allocation6 + $0x60] sm:$0xff]  ;;  %v2585_v51 = vld [vmem:[#allocation7 + $0x78] sm:$0xff] }
 0x206   : > { %v2593_v28 = vadd.f32 %v5749_v40, %v2577_v23  ;;  %5832 = vmatmul.mubr.msk.f32.gmra.mxu1 %vm1230_vm5, %v3099_v62  ;;  %v2907_v22 = vsel %vm1015_vm2, %v2891_v5, %v2859_v27  ;;  %v2584_v62 = vld [vmem:[#allocation7 + $0x70] sm:$0xff]  ;;  %v2537_v23 = vld [vmem:[#allocation6 + $0x78] sm:$0xff]  ;;  %v3542_v5 = vld [vmem:[#allocation7 + $0x8] sm:$0xff] }
 0x207   : > { %2558 = vst.msk [vmem:[#allocation6 + $0x20] sm:$0xff] %vm1015_vm2, %v2542_v43  ;;  %v2729_v2 = vpop.permute.xlu0 %2728  ;;  %v2473_v26 = vpop.f32.mrf.mxu1 }
 0x208   : > { %2609 = vst.msk [vmem:[#allocation7 + $0x38] sm:$0xff] %vm1015_vm2, %v2593_v28  ;;  %v2592_v45 = vadd.f32 %v2576_v18, %v2473_v26  ;;  %v2890_v53 = vsel %vm599_vm0, %v6022_v17, %v2729_v2  ;;  %v2536_v26 = vld [vmem:[#allocation6 + $0x70] sm:$0xff] }
 0x20a   : > { %2608 = vst.msk [vmem:[#allocation7 + $0x30] sm:$0xff] %vm1015_vm2, %v2592_v45 }
 0x20b   : > { %v2857_v35 = vpop.permute.xlu0 %2856 }
 0x20c   : > { %v2906_v1 = vsel %vm1015_vm2, %v2890_v53, %v2857_v35  ;;  %v3541_v53 = vld [vmem:[#allocation7] sm:$0xff] }
 0x20d   : > { %5795 = vmatprep.mubr.msk.f32.mxu0 %vm1230_vm5, %v2906_v1  ;;  %v7653_v1 = vld [vmem:[%s8293_s5] ss:$0 sm:$0xff] }
 0x20e   : > { %5796 = vmatmul.mubr.msk.f32.gmra.mxu0 %vm1230_vm5, %v2907_v22  ;;  %vm3995_vm5 = vcmask 785408  }
 0x212   : > { %v5713_v4 = vpop.f32.mrf.mxu0 }
 0x213   : > { %v2545_v59 = vadd.f32 %v5713_v4, %v2529_v39 }
 0x214   : > { %v2280_v57 = vpop.f32.mrf.mxu0 }
 0x215   : > { %2561 = vst.msk [vmem:[#allocation6 + $0x38] sm:$0xff] %vm1015_vm2, %v2545_v59  ;;  %v2544_v29 = vadd.f32 %v2528_v36, %v2280_v57  ;;  %v5752_v32 = vpop.f32.mrf.mxu1 }
 0x216   : > { %v2595_v13 = vadd.f32 %v5752_v32, %v2579_v55 }
 0x217   : > { %2560 = vst.msk [vmem:[#allocation6 + $0x30] sm:$0xff] %vm1015_vm2, %v2544_v29  ;;  %v2483_v46 = vpop.f32.mrf.mxu1  ;;  %v3494_v29 = vld [vmem:[#allocation6 + $0x8] sm:$0xff] }
 0x218   : > { %2611 = vst.msk [vmem:[#allocation7 + $0x48] sm:$0xff] %vm1015_vm2, %v2595_v13  ;;  %v2594_v21 = vadd.f32 %v2578_v15, %v2483_v46  ;;  %v3493_v15 = vld [vmem:[#allocation6] sm:$0xff] }
 0x21a   : > { %2610 = vst.msk [vmem:[#allocation7 + $0x40] sm:$0xff] %vm1015_vm2, %v2594_v21 }
 0x222   : > { %v5716_v0 = vpop.f32.mrf.mxu0 }
 0x223   : > { %v2547_v63 = vadd.f32 %v5716_v0, %v2531_v12 }
 0x224   : > { %v2290_v7 = vpop.f32.mrf.mxu0 }
 0x225   : > { %2563 = vst.msk [vmem:[#allocation6 + $0x48] sm:$0xff] %vm1015_vm2, %v2547_v63  ;;  %v2546_v34 = vadd.f32 %v2530_v11, %v2290_v7  ;;  %v5755_v49 = vpop.f32.mrf.mxu1  ;;  %v3544_v63 = vld [vmem:[#allocation7 + $0x18] sm:$0xff] }
 0x226   : > { %v2597_v25 = vadd.f32 %v5755_v49, %v2581_v16  ;;  %v3543_v49 = vld [vmem:[#allocation7 + $0x10] sm:$0xff] }
 0x227   : > { %2562 = vst.msk [vmem:[#allocation6 + $0x40] sm:$0xff] %vm1015_vm2, %v2546_v34  ;;  %v2493_v61 = vpop.f32.mrf.mxu1 }
 0x228   : > { %2613 = vst.msk [vmem:[#allocation7 + $0x58] sm:$0xff] %vm1015_vm2, %v2597_v25  ;;  %v2596_v58 = vadd.f32 %v2580_v42, %v2493_v61  ;;  %v3994_v25 = vld [vmem:[%s8294_s6 + $0x58] sm:$0xff]  ;;  %v3993_v61 = vld [vmem:[%s8294_s6 + $0x50] sm:$0xff] }
 0x229   : > { %5834 = vmatprep.subr.mxu0 %v3994_v25 }
 0x22a   : > { %2612 = vst.msk [vmem:[#allocation7 + $0x50] sm:$0xff] %vm1015_vm2, %v2596_v58  ;;  %5835 = vmatpush3.msra.mxu0 %v3994_v25  ;;  %v3992_v58 = vld [vmem:[%s8294_s6 + $0x48] sm:$0xff] }
 0x22b   : > { %5836 = vmatprep.subr.mxu0 %v3993_v61 }
 0x22c   : > { %5837 = vmatpush3.msra.mxu0 %v3993_v61 }
 0x22d   : > { %5838 = vmatprep.subr.mxu0 %v3992_v58 }
 0x22e   : > { %5839 = vmatpush3.msra.mxu0 %v3992_v58  ;;  %v5357_v58 = vld [vmem:[%s8294_s6 + $0xa8] sm:$0xff] }
 0x232   : > { %v5719_v41 = vpop.f32.mrf.mxu0 }
 0x233   : > { %v2549_v60 = vadd.f32 %v5719_v41, %v2533_v44  ;;  %v3991_v41 = vld [vmem:[%s8294_s6 + $0x40] sm:$0xff] }
 0x234   : > { %v2300_v47 = vpop.f32.mrf.mxu0  ;;  %5840 = vmatprep.subr.mxu0 %v3991_v41 }
 0x235   : > { %2565 = vst.msk [vmem:[#allocation6 + $0x58] sm:$0xff] %vm1015_vm2, %v2549_v60  ;;  %v2548_v31 = vadd.f32 %v2532_v48, %v2300_v47  ;;  %v5758_v9 = vpop.f32.mrf.mxu1  ;;  %5841 = vmatpush3.msra.mxu0 %v3991_v41 }
 0x236   : > { %v2599_v24 = vadd.f32 %v5758_v9, %v2583_v54  ;;  %v3990_v54 = vld [vmem:[%s8294_s6 + $0x38] sm:$0xff] }
 0x237   : > { %2564 = vst.msk [vmem:[#allocation6 + $0x50] sm:$0xff] %vm1015_vm2, %v2548_v31  ;;  %v2503_v19 = vpop.f32.mrf.mxu1  ;;  %5842 = vmatprep.subr.mxu0 %v3990_v54 }
 0x238   : > { %2615 = vst.msk [vmem:[#allocation7 + $0x68] sm:$0xff] %vm1015_vm2, %v2599_v24  ;;  %v2598_v8 = vadd.f32 %v2582_v33, %v2503_v19  ;;  %v3989_v19 = vld [vmem:[%s8294_s6 + $0x30] sm:$0xff]  ;;  %5843 = vmatpush3.msra.mxu0 %v3990_v54 }
 0x239   : > { %5844 = vmatprep.subr.mxu0 %v3989_v19 }
 0x23a   : > { %2614 = vst.msk [vmem:[#allocation7 + $0x60] sm:$0xff] %vm1015_vm2, %v2598_v8  ;;  %5845 = vmatpush3.msra.mxu0 %v3989_v19 }
 0x242   : > { %v5722_v38 = vpop.f32.mrf.mxu0 }
 0x243   : > { %v2551_v20 = vadd.f32 %v5722_v38, %v2535_v3 }
 0x244   : > { %v2310_v56 = vpop.f32.mrf.mxu0 }
 0x245   : > { %2567 = vst.msk [vmem:[#allocation6 + $0x68] sm:$0xff] %vm1015_vm2, %v2551_v20  ;;  %v2550_v6 = vadd.f32 %v2534_v52, %v2310_v56  ;;  %v5761_v50 = vpop.f32.mrf.mxu1  ;;  %v3496_v56 = vld [vmem:[#allocation6 + $0x18] sm:$0xff] }
 0x246   : > { %v2601_v14 = vadd.f32 %v5761_v50, %v2585_v51  ;;  %v3988_v50 = vld [vmem:[%s8294_s6 + $0x28] sm:$0xff]  ;;  %v3987_v51 = vld [vmem:[%s8294_s6 + $0x20] sm:$0xff] }
 0x247   : > { %2566 = vst.msk [vmem:[#allocation6 + $0x60] sm:$0xff] %vm1015_vm2, %v2550_v6  ;;  %v2513_v37 = vpop.f32.mrf.mxu1  ;;  %5846 = vmatprep.subr.mxu0 %v3988_v50 }
 0x248   : > { %2617 = vst.msk [vmem:[#allocation7 + $0x78] sm:$0xff] %vm1015_vm2, %v2601_v14  ;;  %v2600_v43 = vadd.f32 %v2584_v62, %v2513_v37  ;;  %v3495_v62 = vld [vmem:[#allocation6 + $0x10] sm:$0xff]  ;;  %5847 = vmatpush3.msra.mxu0 %v3988_v50 }
 0x249   : > { %5848 = vmatprep.subr.mxu0 %v3987_v51 }
 0x24a   : > { %2616 = vst.msk [vmem:[#allocation7 + $0x70] sm:$0xff] %vm1015_vm2, %v2600_v43  ;;  %5849 = vmatpush3.msra.mxu0 %v3987_v51  ;;  %v5355_v51 = vld [vmem:[%s8294_s6 + $0x98] sm:$0xff] }
 0x252   : > { %v5725_v40 = vpop.f32.mrf.mxu0 }
 0x253   : > { %v2553_v28 = vadd.f32 %v5725_v40, %v2537_v23 }
 0x254   : > { %v2320_v2 = vpop.f32.mrf.mxu0 }
 0x255   : > { %2569 = vst.msk [vmem:[#allocation6 + $0x78] sm:$0xff] %vm1015_vm2, %v2553_v28  ;;  %v2552_v18 = vadd.f32 %v2536_v26, %v2320_v2  ;;  %v5812_v45 = vpop.f32.mrf.mxu1  ;;  %v3546_v28 = vld [vmem:[#allocation7 + $0x28] sm:$0xff] }
 0x256   : > { %v3558_v27 = vadd.f32 %v5812_v45, %v3542_v5  ;;  %v3545_v45 = vld [vmem:[#allocation7 + $0x20] sm:$0xff] }
 0x257   : > { %2568 = vst.msk [vmem:[#allocation6 + $0x70] sm:$0xff] %vm1015_vm2, %v2552_v18  ;;  %v3414_v17 = vpop.f32.mrf.mxu1 }
 0x258   : > { %3574 = vst.msk [vmem:[#allocation7 + $0x8] sm:$0xff] %vm1015_vm2, %v3558_v27  ;;  %v3557_v35 = vadd.f32 %v3541_v53, %v3414_v17  ;;  %v3986_v17 = vld [vmem:[%s8294_s6 + $0x18] sm:$0xff] }
 0x259   : > { %5850 = vmatprep.subr.mxu0 %v3986_v17 }
 0x25a   : > { %3573 = vst.msk [vmem:[#allocation7] sm:$0xff] %vm1015_vm2, %v3557_v35  ;;  %v3879_v35 = vpop.permute.xlu0 %3878  ;;  %5851 = vmatpush3.msra.mxu0 %v3986_v17 }
 0x25f   : > { %v3606_v22 = vld [vmem:[#allocation7 + $0x8] sm:$0xff] }
 0x260   : > { %vm3676_vm7 = vcmp.gt.f32.partialorder %v3606_v22, 0.0  ;;  %v3692_v4 = vmul.f32 %v7653_v1, %v3606_v22 }
 0x261   : > { %v3605_v39 = vld [vmem:[#allocation7] sm:$0xff] }
 0x262   : > { %v3708_v59 = vsel %vm3676_vm7, %v3606_v22, %v3692_v4  ;;  %vm3675_vm8 = vcmp.gt.f32.partialorder %v3605_v39, 0.0  ;;  %v3691_v57 = vmul.f32 %v7653_v1, %v3605_v39  ;;  %v5776_v36 = vpop.f32.mrf.mxu0  ;;  %v3985_v22 = vld [vmem:[%s8294_s6 + $0x10] sm:$0xff] }
 0x263   : > { %v3749_v32 = vrot.slane %v3708_v59, 7  ;;  %v3510_v55 = vadd.f32 %v5776_v36, %v3494_v29  ;;  %5852 = vmatprep.subr.mxu0 %v3985_v22  ;;  %v3983_v36 = vld [vmem:[%s8294_s6] sm:$0xff] }
 0x264   : > { %v3707_v13 = vsel %vm3675_vm8, %v3605_v39, %v3691_v57  ;;  %v3221_v46 = vpop.f32.mrf.mxu0  ;;  %v3984_v39 = vld [vmem:[%s8294_s6 + $0x8] sm:$0xff]  ;;  %v3966_v57 = vsel %vm1015_vm2, %v7589_v10, %v3879_v35  ;;  %5853 = vmatpush3.msra.mxu0 %v3985_v22 }
 0x265   : > { %v3748_v21 = vrot.slane %v3707_v13, 7  ;;  %3526 = vst.msk [vmem:[#allocation6 + $0x8] sm:$0xff] %vm1015_vm2, %v3510_v55  ;;  %v3509_v0 = vadd.f32 %v3493_v15, %v3221_v46  ;;  %v5815_v12 = vpop.f32.mrf.mxu1  ;;  %v3781_v7 = vsel %vm659_vm4, 0.0, %v3749_v32  ;;  %5854 = vmatprep.subr.mxu0 %v3984_v39  ;;  %v3943_v55 = vpop.permute.xlu0 %3942 }
 0x266   : > { %3800 = vst.msk [vmem:[#allocation4 + $0x28] sm:$0x1] %vm3724_vm6, %v3749_v32  ;;  %v3560_v11 = vadd.f32 %v5815_v12, %v3544_v63  ;;  %5855 = vmatpush3.msra.mxu0 %v3984_v39  ;;  %v3975_v10 = vsel %vm3974_vm13, %v3966_v57, %v3943_v55  ;;  %v5358_v12 = vld [vmem:[%s8294_s6 + $0xb0] sm:$0xff] }
 0x267   : > { %3799 = vst.msk [vmem:[#allocation4 + $0x20] sm:$0xff] %vm1015_vm2, %v3781_v7  ;;  %3525 = vst.msk [vmem:[#allocation6] sm:$0xff] %vm1015_vm2, %v3509_v0  ;;  %v3424_v34 = vpop.f32.mrf.mxu1  ;;  %v3780_v16 = vsel %vm659_vm4, 0.0, %v3748_v21  ;;  %5856 = vmatprep.subr.mxu0 %v3983_v36  ;;  %v5359_v0 = vld [vmem:[%s8294_s6 + $0xb8] sm:$0xff]  ;;  %5858 = vmatprep.mubr.msk.f32.mxu0 %vm3995_vm5, %v3975_v10 }
 0x268   : > { %3798 = vst.msk [vmem:[#allocation4 + $0x18] sm:$0x1] %vm3724_vm6, %v3748_v21  ;;  %v3559_v42 = vadd.f32 %v3543_v49, %v3424_v34  ;;  %5857 = vmatpush3.msra.mxu0 %v3983_v36  ;;  %5870 = vmatprep.subr.mxu1 %v5359_v0 }
 0x269   : > { %3576 = vst.msk [vmem:[#allocation7 + $0x18] sm:$0xff] %vm1015_vm2, %v3560_v11  ;;  %3797 = vst.msk [vmem:[#allocation4 + $0x10] sm:$0xff] %vm1015_vm2, %v3780_v16  ;;  %v3498_v16 = vld [vmem:[#allocation6 + $0x28] sm:$0xff]  ;;  %5871 = vmatpush3.msra.mxu1 %v5359_v0  ;;  %v3499_v0 = vld [vmem:[#allocation6 + $0x30] sm:$0xff] }
 0x26a   : > { %3575 = vst.msk [vmem:[#allocation7 + $0x10] sm:$0xff] %vm1015_vm2, %v3559_v42  ;;  %v3497_v42 = vld [vmem:[#allocation6 + $0x20] sm:$0xff]  ;;  %5872 = vmatprep.subr.mxu1 %v5358_v12 }
 0x26b   : > { %5873 = vmatpush3.msra.mxu1 %v5358_v12 }
 0x26c   : > { %v3590_v44 = vld [vmem:[#allocation6 + $0x8] sm:$0xff]  ;;  %5874 = vmatprep.subr.mxu1 %v5357_v58 }
 0x26d   : > { %v3644_v60 = vmul.f32 %v7653_v1, %v3590_v44  ;;  %vm3622_vm9 = vcmp.gt.f32.partialorder %v3590_v44, 0.0  ;;  %5875 = vmatpush3.msra.mxu1 %v5357_v58 }
 0x26e   : > { %v3589_v47 = vld [vmem:[#allocation6] sm:$0xff] }
 0x26f   : > { %v3643_v48 = vmul.f32 %v7653_v1, %v3589_v47  ;;  %v3660_v9 = vsel %vm3622_vm9, %v3590_v44, %v3644_v60  ;;  %vm3621_vm10 = vcmp.gt.f32.partialorder %v3589_v47, 0.0  ;;  %v7741_v60 = vld [vmem:[#allocation4 + $0x20] sm:$0xff] }
 0x270   : > { %v3608_v31 = vld [vmem:[#allocation7 + $0x18] sm:$0xff]  ;;  %3831 = vst.msk [vmem:[#allocation5 + $0x10] sm:$0xff] %vm1015_vm2, %v3660_v9 }
 0x271   : > { %vm3678_vm11 = vcmp.gt.f32.partialorder %v3608_v31, 0.0  ;;  %v3694_v24 = vmul.f32 %v7653_v1, %v3608_v31  ;;  %v3607_v33 = vld [vmem:[#allocation7 + $0x10] sm:$0xff]  ;;  %v3659_v8 = vsel %vm3621_vm10, %v3589_v47, %v3643_v48  ;;  %v3849_v47 = vld [vmem:[#allocation4 + $0x28] sm:$0x1] }
 0x272   : > { %vm3677_vm12 = vcmp.gt.f32.partialorder %v3607_v33, 0.0  ;;  %v3693_v3 = vmul.f32 %v7653_v1, %v3607_v33  ;;  %v5779_v20 = vpop.f32.mrf.mxu0  ;;  %3830 = vst.msk [vmem:[#allocation5 + $0x8] sm:$0xff] %vm1015_vm2, %v3659_v8  ;;  %v5356_v48 = vld [vmem:[%s8294_s6 + $0xa0] sm:$0xff] }
 0x273   : > { %v3710_v38 = vsel %vm3678_vm11, %v3608_v31, %v3694_v24  ;;  %v3512_v6 = vadd.f32 %v5779_v20, %v3496_v56  ;;  %v3548_v24 = vld [vmem:[#allocation7 + $0x38] sm:$0xff]  ;;  %v3547_v8 = vld [vmem:[#allocation7 + $0x30] sm:$0xff]  ;;  %v3921_v20 = vrot.slane %v7741_v60, 1  ;;  %v3922_v56 = vrot.slane %v3849_v47, 1  ;;  %5876 = vmatprep.subr.mxu1 %v5356_v48  ;;  %v3549_v47 = vld [vmem:[#allocation7 + $0x40] sm:$0xff] }
 0x274   : > { %v3751_v52 = vrot.slane %v3710_v38, 7  ;;  %v3709_v14 = vsel %vm3677_vm12, %v3607_v33, %v3693_v3  ;;  %v3231_v37 = vpop.f32.mrf.mxu0  ;;  %5877 = vmatpush3.msra.mxu1 %v5356_v48 }
 0x275   : > { %v3750_v43 = vrot.slane %v3709_v14, 7  ;;  %3528 = vst.msk [vmem:[#allocation6 + $0x18] sm:$0xff] %vm1015_vm2, %v3512_v6  ;;  %v3511_v40 = vadd.f32 %v3495_v62, %v3231_v37  ;;  %v5818_v23 = vpop.f32.mrf.mxu1  ;;  %5878 = vmatprep.subr.mxu1 %v5355_v51  ;;  %v5354_v37 = vld [vmem:[%s8294_s6 + $0x90] sm:$0xff]  ;;  %v3923_v62 = vsel %vm902_vm3, %v3921_v20, %v3922_v56 }
 0x276   : > { %3804 = vst.msk [vmem:[#allocation4 + $0x48] sm:$0x1] %vm3724_vm6, %v3751_v52  ;;  %v3783_v2 = vsel %vm659_vm4, 0.0, %v3751_v52  ;;  %v3562_v26 = vadd.f32 %v5818_v23, %v3546_v28  ;;  %v4437_v52 = vld [vmem:[#allocation4 + $0x28] sm:$0x1]  ;;  %5879 = vmatpush3.msra.mxu1 %v5355_v51 }
 0x277   : > { %3803 = vst.msk [vmem:[#allocation4 + $0x40] sm:$0xff] %vm1015_vm2, %v3783_v2  ;;  %3527 = vst.msk [vmem:[#allocation6 + $0x10] sm:$0xff] %vm1015_vm2, %v3511_v40  ;;  %v3434_v18 = vpop.f32.mrf.mxu1  ;;  %v4453_v5 = vld [vmem:[#allocation5 + $0x10] sm:$0xff]  ;;  %v3782_v27 = vsel %vm659_vm4, 0.0, %v3750_v43  ;;  %v4510_v14 = vrot.slane %v4437_v52, 1  ;;  %v5353_v2 = vld [vmem:[%s8294_s6 + $0x88] sm:$0xff]  ;;  %5880 = vmatprep.subr.mxu1 %v5354_v37 }
 0x278   : > { %3802 = vst.msk [vmem:[#allocation4 + $0x38] sm:$0x1] %vm3724_vm6, %v3750_v43  ;;  %v3561_v53 = vadd.f32 %v3545_v45, %v3434_v18  ;;  %4469 = vrot.lane.b32.xlu0 %v4453_v5, %s6042_s15  ;;  %3880 = vrot.lane.b32.xlu1 %v4453_v5, %s6042_s15 }
 0x279   : > { %3578 = vst.msk [vmem:[#allocation7 + $0x28] sm:$0xff] %vm1015_vm2, %v3562_v26  ;;  %3801 = vst.msk [vmem:[#allocation4 + $0x30] sm:$0xff] %vm1015_vm2, %v3782_v27  ;;  %v4149_v4 = vld [vmem:[#allocation5 + $0x8] sm:$0xff]  ;;  %v4511_v45 = vsel %vm902_vm3, %v3921_v20, %v4510_v14  ;;  %5881 = vmatpush3.msra.mxu1 %v5354_v37  ;;  %v5352_v27 = vld [vmem:[%s8294_s6 + $0x80] sm:$0xff] }
 0x27a   : > { %3577 = vst.msk [vmem:[#allocation7 + $0x20] sm:$0xff] %vm1015_vm2, %v3561_v53  ;;  %5882 = vmatprep.subr.mxu1 %v5353_v2 }
 0x27b   : > { %5883 = vmatpush3.msra.mxu1 %v5353_v2 }
 0x27c   : > { %v3592_v59 = vld [vmem:[#allocation6 + $0x18] sm:$0xff]  ;;  %4165 = vrot.lane.b32.xlu1 %v4149_v4, %s6042_s15  ;;  %5884 = vmatprep.subr.mxu1 %v5352_v27 }
 0x27d   : > { %v3646_v29 = vmul.f32 %v7653_v1, %v3592_v59  ;;  %vm3624_vm14 = vcmp.gt.f32.partialorder %v3592_v59, 0.0  ;;  %v3851_v40 = vld [vmem:[#allocation4 + $0x48] sm:$0x1]  ;;  %5885 = vmatpush3.msra.mxu1 %v5352_v27  ;;  %v3502_v27 = vld [vmem:[#allocation6 + $0x48] sm:$0xff] }
 0x27e   : > { %v3591_v32 = vld [vmem:[#allocation6 + $0x10] sm:$0xff]  ;;  %v3925_v5 = vrot.slane %v3851_v40, 1  ;;  %v4439_v39 = vld [vmem:[#allocation4 + $0x48] sm:$0x1] }
 0x27f   : > { %v3645_v13 = vmul.f32 %v7653_v1, %v3591_v32  ;;  %v3662_v15 = vsel %vm3624_vm14, %v3592_v59, %v3646_v29  ;;  %vm3623_vm15 = vcmp.gt.f32.partialorder %v3591_v32, 0.0  ;;  %v7768_v28 = vld [vmem:[#allocation4 + $0x40] sm:$0xff]  ;;  %v5351_v59 = vld [vmem:[%s8294_s6 + $0x78] sm:$0xff]  ;;  %v4513_v12 = vrot.slane %v4439_v39, 1 }
 0x280   : > { %v3610_v46 = vld [vmem:[#allocation7 + $0x28] sm:$0xff]  ;;  %3833 = vst.msk [vmem:[#allocation5 + $0x20] sm:$0xff] %vm1015_vm2, %v3662_v15  ;;  %v3924_v35 = vrot.slane %v7768_v28, 1  ;;  %5886 = vmatprep.subr.mxu1 %v5351_v59 }
 0x281   : > { %vm3680_vm1 = vcmp.gt.f32.partialorder %v3610_v46, 0.0  ;;  %v3696_v21 = vmul.f32 %v7653_v1, %v3610_v46  ;;  %v3609_v63 = vld [vmem:[#allocation7 + $0x20] sm:$0xff]  ;;  %v3661_v7 = vsel %vm3623_vm15, %v3591_v32, %v3645_v13  ;;  %v3500_v13 = vld [vmem:[#allocation6 + $0x38] sm:$0xff]  ;;  %5887 = vmatpush3.msra.mxu1 %v5351_v59 }
 0x282   : > { %vm3679_vm7 = vcmp.gt.f32.partialorder %v3609_v63, 0.0  ;;  %v3695_v34 = vmul.f32 %v7653_v1, %v3609_v63  ;;  %v5782_v49 = vpop.f32.mrf.mxu0  ;;  %3832 = vst.msk [vmem:[#allocation5 + $0x18] sm:$0xff] %vm1015_vm2, %v3661_v7  ;;  %v4514_v48 = vsel %vm902_vm3, %v3924_v35, %v4513_v12 }
 0x283   : > { %v3712_v11 = vsel %vm3680_vm1, %v3610_v46, %v3696_v21  ;;  %v3514_v61 = vadd.f32 %v5782_v49, %v3498_v16  ;;  %v5350_v46 = vld [vmem:[%s8294_s6 + $0x70] sm:$0xff]  ;;  %v3926_v21 = vsel %vm902_vm3, %v3924_v35, %v3925_v5  ;;  %v5349_v49 = vld [vmem:[%s8294_s6 + $0x68] sm:$0xff] }
 0x284   : > { %v3753_v25 = vrot.slane %v3712_v11, 7  ;;  %v3711_v41 = vsel %vm3679_vm7, %v3609_v63, %v3695_v34  ;;  %v3241_v44 = vpop.f32.mrf.mxu0  ;;  %v7793_v11 = vld [vmem:[#allocation4 + $0x10] sm:$0xff]  ;;  %v4134_v34 = vld [vmem:[#allocation4 + $0x18] sm:$0x1]  ;;  %5888 = vmatprep.subr.mxu1 %v5350_v46 }
 0x285   : > { %v3752_v31 = vrot.slane %v3711_v41, 7  ;;  %3530 = vst.msk [vmem:[#allocation6 + $0x28] sm:$0xff] %vm1015_vm2, %v3514_v61  ;;  %v3513_v9 = vadd.f32 %v3497_v42, %v3241_v44  ;;  %v5821_v54 = vpop.f32.mrf.mxu1  ;;  %v3550_v42 = vld [vmem:[#allocation7 + $0x48] sm:$0xff]  ;;  %5889 = vmatpush3.msra.mxu1 %v5350_v46  ;;  %v3552_v46 = vld [vmem:[#allocation7 + $0x58] sm:$0xff] }
 0x286   : > { %3808 = vst.msk [vmem:[#allocation4 + $0x68] sm:$0x1] %vm3724_vm6, %v3753_v25  ;;  %v3785_v19 = vsel %vm659_vm4, 0.0, %v3753_v25  ;;  %v3564_v33 = vadd.f32 %v5821_v54, %v3548_v24  ;;  %v4206_v54 = vrot.slane %v4134_v34, 1  ;;  %5890 = vmatprep.subr.mxu1 %v5349_v49 }
 0x287   : > { %3807 = vst.msk [vmem:[#allocation4 + $0x60] sm:$0xff] %vm1015_vm2, %v3785_v19  ;;  %3529 = vst.msk [vmem:[#allocation6 + $0x20] sm:$0xff] %vm1015_vm2, %v3513_v9  ;;  %v3444_v38 = vpop.f32.mrf.mxu1  ;;  %v4454_v3 = vld [vmem:[#allocation5 + $0x20] sm:$0xff]  ;;  %v3784_v6 = vsel %vm659_vm4, 0.0, %v3752_v31  ;;  %v4205_v9 = vrot.slane %v7793_v11, 1  ;;  %5891 = vmatpush3.msra.mxu1 %v5349_v49 }
 0x288   : > { %3806 = vst.msk [vmem:[#allocation4 + $0x58] sm:$0x1] %vm3724_vm6, %v3752_v31  ;;  %v3563_v50 = vadd.f32 %v3547_v8, %v3444_v38  ;;  %4471 = vrot.lane.b32.xlu1 %v4454_v3, %s6042_s15  ;;  %3882 = vrot.lane.b32.xlu0 %v4454_v3, %s6042_s15  ;;  %v5348_v19 = vld [vmem:[%s8294_s6 + $0x60] sm:$0xff]  ;;  %v7819_v38 = vld [vmem:[#allocation4 + $0x30] sm:$0xff]  ;;  %v4136_v3 = vld [vmem:[#allocation4 + $0x38] sm:$0x1] }
 0x289   : > { %3580 = vst.msk [vmem:[#allocation7 + $0x38] sm:$0xff] %vm1015_vm2, %v3564_v33  ;;  %3805 = vst.msk [vmem:[#allocation4 + $0x50] sm:$0xff] %vm1015_vm2, %v3784_v6  ;;  %v4150_v43 = vld [vmem:[#allocation5 + $0x18] sm:$0xff]  ;;  %5892 = vmatprep.subr.mxu1 %v5348_v19  ;;  %v4207_v8 = vsel %vm902_vm3, %v4205_v9, %v4206_v54  ;;  %v4208_v6 = vrot.slane %v7819_v38, 1 }
 0x28a   : > { %3579 = vst.msk [vmem:[#allocation7 + $0x30] sm:$0xff] %vm1015_vm2, %v3563_v50  ;;  %5893 = vmatpush3.msra.mxu1 %v5348_v19  ;;  %v4209_v50 = vrot.slane %v4136_v3, 1 }
 0x28b   : > { %5942 = vmatprep.subr.mxu1 %v8331_v30 }
 0x28c   : > { %v3594_v23 = vld [vmem:[#allocation6 + $0x28] sm:$0xff]  ;;  %3944 = vrot.lane.b32.xlu1 %v3923_v62, %s6043_s28  ;;  %4167 = vrot.lane.b32.xlu0 %v4150_v43, %s6042_s15 }
 0x28d   : > { %v3648_v26 = vmul.f32 %v7653_v1, %v3594_v23  ;;  %vm3626_vm8 = vcmp.gt.f32.partialorder %v3594_v23, 0.0 }
 0x28e   : > { %v3593_v18 = vld [vmem:[#allocation6 + $0x20] sm:$0xff]  ;;  %v7828_v40 = vld [vmem:[#allocation4 + $0x60] sm:$0xff] }
 0x28f   : > { %v3647_v17 = vmul.f32 %v7653_v1, %v3593_v18  ;;  %v3664_v22 = vsel %vm3626_vm8, %v3594_v23, %v3648_v26  ;;  %vm3625_vm9 = vcmp.gt.f32.partialorder %v3593_v18, 0.0  ;;  %v3853_v23 = vld [vmem:[#allocation4 + $0x68] sm:$0x1]  ;;  %v4138_v39 = vld [vmem:[#allocation4 + $0x58] sm:$0x1] }
 0x290   : > { %v3612_v53 = vld [vmem:[#allocation7 + $0x38] sm:$0xff]  ;;  %4533 = vrot.lane.b32.xlu0 %v4511_v45, %s6043_s28  ;;  %3835 = vst.msk [vmem:[#allocation5 + $0x30] sm:$0xff] %vm1015_vm2, %v3664_v22  ;;  %v3927_v22 = vrot.slane %v7828_v40, 1 }
 0x291   : > { %vm3682_vm10 = vcmp.gt.f32.partialorder %v3612_v53, 0.0  ;;  %v3698_v4 = vmul.f32 %v7653_v1, %v3612_v53  ;;  %v3611_v57 = vld [vmem:[#allocation7 + $0x30] sm:$0xff]  ;;  %v3663_v36 = vsel %vm3625_vm9, %v3593_v18, %v3647_v17  ;;  %v4210_v17 = vsel %vm902_vm3, %v4208_v6, %v4209_v50 }
 0x292   : > { %vm3681_vm11 = vcmp.gt.f32.partialorder %v3611_v57, 0.0  ;;  %v3697_v32 = vmul.f32 %v7653_v1, %v3611_v57  ;;  %v5785_v55 = vpop.f32.mrf.mxu0  ;;  %3834 = vst.msk [vmem:[#allocation5 + $0x28] sm:$0xff] %vm1015_vm2, %v3663_v36  ;;  %v3501_v36 = vld [vmem:[#allocation6 + $0x40] sm:$0xff] }
 0x293   : > { %v3714_v29 = vsel %vm3682_vm10, %v3612_v53, %v3698_v4  ;;  %v3516_v10 = vadd.f32 %v5785_v55, %v3500_v13  ;;  %v3928_v4 = vrot.slane %v3853_v23, 1 }
 0x294   : > { %v3755_v15 = vrot.slane %v3714_v29, 7  ;;  %v3713_v63 = vsel %vm3681_vm11, %v3611_v57, %v3697_v32  ;;  %3946 = vrot.lane.b32.xlu0 %v3926_v21, %s6043_s28  ;;  %v3251_v7 = vpop.f32.mrf.mxu0  ;;  %v7836_v29 = vld [vmem:[#allocation4 + $0x50] sm:$0xff]  ;;  %v3551_v21 = vld [vmem:[#allocation7 + $0x50] sm:$0xff] }
 0x295   : > { %v3754_v16 = vrot.slane %v3713_v63, 7  ;;  %3532 = vst.msk [vmem:[#allocation6 + $0x38] sm:$0xff] %vm1015_vm2, %v3516_v10  ;;  %v3515_v25 = vadd.f32 %v3499_v0, %v3251_v7  ;;  %v5824_v61 = vpop.f32.mrf.mxu1  ;;  %v4212_v0 = vrot.slane %v4138_v39, 1  ;;  %v3929_v63 = vsel %vm902_vm3, %v3927_v22, %v3928_v4 }
 0x296   : > { %3812 = vst.msk [vmem:[#allocation4 + $0x88] sm:$0x1] %vm3724_vm6, %v3755_v15  ;;  %v3787_v58 = vsel %vm659_vm4, 0.0, %v3755_v15  ;;  %v3566_v41 = vadd.f32 %v5824_v61, %v3550_v42  ;;  %v4211_v34 = vrot.slane %v7836_v29, 1 }
 0x297   : > { %3811 = vst.msk [vmem:[#allocation4 + $0x80] sm:$0xff] %vm1015_vm2, %v3787_v58  ;;  %3531 = vst.msk [vmem:[#allocation6 + $0x30] sm:$0xff] %vm1015_vm2, %v3515_v25  ;;  %v3454_v44 = vpop.f32.mrf.mxu1  ;;  %v7805_v31 = vld [vmem:[#allocation5 + $0x30] sm:$0xff]  ;;  %v3786_v24 = vsel %vm659_vm4, 0.0, %v3754_v16 }
 0x298   : > { %3810 = vst.msk [vmem:[#allocation4 + $0x78] sm:$0x1] %vm3724_vm6, %v3754_v16  ;;  %v3565_v33 = vadd.f32 %v3549_v47, %v3454_v44  ;;  %4535 = vrot.lane.b32.xlu0 %v4514_v48, %s6043_s28  ;;  %3884 = vrot.lane.b32.xlu1 %v7805_v31, %s6042_s15 }
 0x299   : > { %3582 = vst.msk [vmem:[#allocation7 + $0x48] sm:$0xff] %vm1015_vm2, %v3566_v41  ;;  %3809 = vst.msk [vmem:[#allocation4 + $0x70] sm:$0xff] %vm1015_vm2, %v3786_v24  ;;  %v4151_v37 = vld [vmem:[#allocation5 + $0x28] sm:$0xff]  ;;  %v4213_v41 = vsel %vm902_vm3, %v4211_v34, %v4212_v0 }
 0x29a   : > { %3581 = vst.msk [vmem:[#allocation7 + $0x40] sm:$0xff] %vm1015_vm2, %v3565_v33 }
 0x29c   : > { %v3596_v20 = vld [vmem:[#allocation6 + $0x38] sm:$0xff]  ;;  %4229 = vrot.lane.b32.xlu1 %v4207_v8, %s6043_s28 }
 0x29d   : > { %v3650_v56 = vmul.f32 %v7653_v1, %v3596_v20  ;;  %vm3628_vm12 = vcmp.gt.f32.partialorder %v3596_v20, 0.0  ;;  %v3855_v16 = vld [vmem:[#allocation4 + $0x88] sm:$0x1] }
 0x29e   : > { %v3595_v52 = vld [vmem:[#allocation6 + $0x30] sm:$0xff]  ;;  %v3931_v58 = vrot.slane %v3855_v16, 1 }
 0x29f   : > { %v3649_v51 = vmul.f32 %v7653_v1, %v3595_v52  ;;  %v3666_v62 = vsel %vm3628_vm12, %v3596_v20, %v3650_v56  ;;  %vm3627_vm14 = vcmp.gt.f32.partialorder %v3595_v52, 0.0  ;;  %v7850_v49 = vld [vmem:[#allocation4 + $0x80] sm:$0xff]  ;;  %v4140_v47 = vld [vmem:[#allocation4 + $0x78] sm:$0x1] }
 0x2a0   : > { %v3614_v14 = vld [vmem:[#allocation7 + $0x48] sm:$0xff]  ;;  %4169 = vrot.lane.b32.xlu1 %v4151_v37, %s6042_s15  ;;  %3837 = vst.msk [vmem:[#allocation5 + $0x40] sm:$0xff] %vm1015_vm2, %v3666_v62  ;;  %v3930_v42 = vrot.slane %v7850_v49, 1  ;;  %v7863_v9 = vld [vmem:[#allocation4 + $0x70] sm:$0xff]  ;;  %v4215_v33 = vrot.slane %v4140_v47, 1  ;;  %v3504_v62 = vld [vmem:[#allocation6 + $0x58] sm:$0xff] }
 0x2a1   : > { %vm3684_vm15 = vcmp.gt.f32.partialorder %v3614_v14, 0.0  ;;  %v3700_v43 = vmul.f32 %v7653_v1, %v3614_v14  ;;  %v3613_v2 = vld [vmem:[#allocation7 + $0x40] sm:$0xff]  ;;  %v3665_v26 = vsel %vm3627_vm14, %v3595_v52, %v3649_v51  ;;  %v4214_v20 = vrot.slane %v7863_v9, 1 }
 0x2a2   : > { %vm3683_vm1 = vcmp.gt.f32.partialorder %v3613_v2, 0.0  ;;  %v3699_v45 = vmul.f32 %v7653_v1, %v3613_v2  ;;  %v5788_v5 = vpop.f32.mrf.mxu0  ;;  %3836 = vst.msk [vmem:[#allocation5 + $0x38] sm:$0xff] %vm1015_vm2, %v3665_v26  ;;  %v3932_v19 = vsel %vm902_vm3, %v3930_v42, %v3931_v58 }
 0x2a3   : > { %v3716_v18 = vsel %vm3684_vm15, %v3614_v14, %v3700_v43  ;;  %v3518_v35 = vadd.f32 %v5788_v5, %v3502_v27 }
 0x2a4   : > { %v3757_v53 = vrot.slane %v3716_v18, 7  ;;  %v3715_v59 = vsel %vm3683_vm1, %v3613_v2, %v3699_v45  ;;  %4231 = vrot.lane.b32.xlu1 %v4210_v17, %s6043_s28  ;;  %v3261_v57 = vpop.f32.mrf.mxu0  ;;  %v4216_v2 = vsel %vm902_vm3, %v4214_v20, %v4215_v33  ;;  %v3503_v45 = vld [vmem:[#allocation6 + $0x50] sm:$0xff] }
 0x2a5   : > { %v3756_v32 = vrot.slane %v3715_v59, 7  ;;  %3534 = vst.msk [vmem:[#allocation6 + $0x48] sm:$0xff] %vm1015_vm2, %v3518_v35  ;;  %v3517_v55 = vadd.f32 %v3501_v36, %v3261_v57  ;;  %v5827_v13 = vpop.f32.mrf.mxu1  ;;  %v3553_v59 = vld [vmem:[#allocation7 + $0x60] sm:$0xff] }
 0x2a6   : > { %3816 = vst.msk [vmem:[#allocation4 + $0xa8] sm:$0x1] %vm3724_vm6, %v3757_v53  ;;  %v3789_v15 = vsel %vm659_vm4, 0.0, %v3757_v53  ;;  %v3568_v10 = vadd.f32 %v5827_v13, %v3552_v46  ;;  %v3554_v53 = vld [vmem:[#allocation7 + $0x68] sm:$0xff] }
 0x2a7   : > { %3815 = vst.msk [vmem:[#allocation4 + $0xa0] sm:$0xff] %vm1015_vm2, %v3789_v15  ;;  %3533 = vst.msk [vmem:[#allocation6 + $0x40] sm:$0xff] %vm1015_vm2, %v3517_v55  ;;  %v3464_v12 = vpop.f32.mrf.mxu1  ;;  %v7847_v7 = vld [vmem:[#allocation5 + $0x40] sm:$0xff]  ;;  %v3788_v25 = vsel %vm659_vm4, 0.0, %v3756_v32 }
 0x2a8   : > { %3814 = vst.msk [vmem:[#allocation4 + $0x98] sm:$0x1] %vm3724_vm6, %v3756_v32  ;;  %v3567_v61 = vadd.f32 %v3551_v21, %v3464_v12  ;;  %3948 = vrot.lane.b32.xlu1 %v3929_v63, %s6043_s28  ;;  %3886 = vrot.lane.b32.xlu0 %v7847_v7, %s6042_s15  ;;  %v7898_v12 = vld [vmem:[%s8294_s6 + $0x118] sm:$0xff] }
 0x2a9   : > { %3584 = vst.msk [vmem:[#allocation7 + $0x58] sm:$0xff] %vm1015_vm2, %v3568_v10  ;;  %3813 = vst.msk [vmem:[#allocation4 + $0x90] sm:$0xff] %vm1015_vm2, %v3788_v25  ;;  %v4152_v44 = vld [vmem:[#allocation5 + $0x38] sm:$0xff]  ;;  %5906 = vmatprep.subr.mxu0 %v7898_v12 }
 0x2aa   : > { %3583 = vst.msk [vmem:[#allocation7 + $0x50] sm:$0xff] %vm1015_vm2, %v3567_v61  ;;  %v3506_v25 = vld [vmem:[#allocation6 + $0x68] sm:$0xff] }
 0x2ac   : > { %v3598_v48 = vld [vmem:[#allocation6 + $0x48] sm:$0xff]  ;;  %4233 = vrot.lane.b32.xlu1 %v4213_v41, %s6043_s28  ;;  %4171 = vrot.lane.b32.xlu0 %v4152_v44, %s6042_s15 }
 0x2ad   : > { %v3652_v54 = vmul.f32 %v7653_v1, %v3598_v48  ;;  %vm3630_vm7 = vcmp.gt.f32.partialorder %v3598_v48, 0.0 }
 0x2ae   : > { %v3597_v24 = vld [vmem:[#allocation6 + $0x40] sm:$0xff]  ;;  %v7906_v33 = vld [vmem:[#allocation4 + $0xa0] sm:$0xff] }
 0x2af   : > { %v3651_v8 = vmul.f32 %v7653_v1, %v3597_v24  ;;  %v3668_v56 = vsel %vm3630_vm7, %v3598_v48, %v3652_v54  ;;  %vm3629_vm8 = vcmp.gt.f32.partialorder %v3597_v24, 0.0  ;;  %v3505_v54 = vld [vmem:[#allocation6 + $0x60] sm:$0xff] }
 0x2b0   : > { %v3616_v3 = vld [vmem:[#allocation7 + $0x58] sm:$0xff]  ;;  %3950 = vrot.lane.b32.xlu1 %v3932_v19, %s6043_s28  ;;  %3839 = vst.msk [vmem:[#allocation5 + $0x50] sm:$0xff] %vm1015_vm2, %v3668_v56 }
 0x2b1   : > { %vm3686_vm9 = vcmp.gt.f32.partialorder %v3616_v3, 0.0  ;;  %v3702_v52 = vmul.f32 %v7653_v1, %v3616_v3  ;;  %v3615_v6 = vld [vmem:[#allocation7 + $0x50] sm:$0xff]  ;;  %v3667_v50 = vsel %vm3629_vm8, %v3597_v24, %v3651_v8  ;;  %v3857_v8 = vld [vmem:[#allocation4 + $0xa8] sm:$0x1] }
 0x2b2   : > { %vm3685_vm10 = vcmp.gt.f32.partialorder %v3615_v6, 0.0  ;;  %v3701_v14 = vmul.f32 %v7653_v1, %v3615_v6  ;;  %v5791_v37 = vpop.f32.mrf.mxu0  ;;  %3838 = vst.msk [vmem:[#allocation5 + $0x48] sm:$0xff] %vm1015_vm2, %v3667_v50 }
 0x2b3   : > { %v3718_v51 = vsel %vm3686_vm9, %v3616_v3, %v3702_v52  ;;  %v3520_v23 = vadd.f32 %v5791_v37, %v3504_v62  ;;  %v3556_v52 = vld [vmem:[#allocation7 + $0x78] sm:$0xff] }
 0x2b4   : > { %v3759_v43 = vrot.slane %v3718_v51, 7  ;;  %v3717_v26 = vsel %vm3685_vm10, %v3615_v6, %v3701_v14  ;;  %4235 = vrot.lane.b32.xlu1 %v4216_v2, %s6043_s28  ;;  %v3271_v18 = vpop.f32.mrf.mxu0  ;;  %v3933_v51 = vrot.slane %v7906_v33, 1  ;;  %v3934_v14 = vrot.slane %v3857_v8, 1 }
 0x2b5   : > { %v3758_v5 = vrot.slane %v3717_v26, 7  ;;  %3536 = vst.msk [vmem:[#allocation6 + $0x58] sm:$0xff] %vm1015_vm2, %v3520_v23  ;;  %v3519_v27 = vadd.f32 %v3503_v45, %v3271_v18  ;;  %v5830_v17 = vpop.f32.mrf.mxu1 }
 0x2b6   : > { %3820 = vst.msk [vmem:[#allocation4 + $0xc8] sm:$0x1] %vm3724_vm6, %v3759_v43  ;;  %v3791_v35 = vsel %vm659_vm4, 0.0, %v3759_v43  ;;  %v3570_v4 = vadd.f32 %v5830_v17, %v3554_v53  ;;  %v3555_v43 = vld [vmem:[#allocation7 + $0x70] sm:$0xff]  ;;  %v3935_v18 = vsel %vm902_vm3, %v3933_v51, %v3934_v14  ;;  %v3508_v53 = vld [vmem:[#allocation6 + $0x78] sm:$0xff] }
 0x2b7   : > { %3819 = vst.msk [vmem:[#allocation4 + $0xc0] sm:$0xff] %vm1015_vm2, %v3791_v35  ;;  %3535 = vst.msk [vmem:[#allocation6 + $0x50] sm:$0xff] %vm1015_vm2, %v3519_v27  ;;  %v3474_v39 = vpop.f32.mrf.mxu1  ;;  %v7884_v57 = vld [vmem:[#allocation5 + $0x50] sm:$0xff]  ;;  %v3790_v36 = vsel %vm659_vm4, 0.0, %v3758_v5 }
 0x2b8   : > { %3818 = vst.msk [vmem:[#allocation4 + $0xb8] sm:$0x1] %vm3724_vm6, %v3758_v5  ;;  %v3569_v32 = vadd.f32 %v3553_v59, %v3474_v39  ;;  %3888 = vrot.lane.b32.xlu0 %v7884_v57, %s6042_s15 }
 0x2b9   : > { %3586 = vst.msk [vmem:[#allocation7 + $0x68] sm:$0xff] %vm1015_vm2, %v3570_v4  ;;  %3817 = vst.msk [vmem:[#allocation4 + $0xb0] sm:$0xff] %vm1015_vm2, %v3790_v36  ;;  %v4153_v55 = vld [vmem:[#allocation5 + $0x48] sm:$0xff]  ;;  %v3507_v36 = vld [vmem:[#allocation6 + $0x70] sm:$0xff] }
 0x2ba   : > { %3585 = vst.msk [vmem:[#allocation7 + $0x60] sm:$0xff] %vm1015_vm2, %v3569_v32 }
 0x2bc   : > { %v3600_v13 = vld [vmem:[#allocation6 + $0x58] sm:$0xff]  ;;  %4173 = vrot.lane.b32.xlu0 %v4153_v55, %s6042_s15 }
 0x2bd   : > { %v3654_v46 = vmul.f32 %v7653_v1, %v3600_v13  ;;  %vm3632_vm11 = vcmp.gt.f32.partialorder %v3600_v13, 0.0 }
 0x2be   : > { %v3599_v15 = vld [vmem:[#allocation6 + $0x50] sm:$0xff] }
 0x2bf   : > { %v3653_v10 = vmul.f32 %v7653_v1, %v3599_v15  ;;  %v3670_v0 = vsel %vm3632_vm11, %v3600_v13, %v3654_v46  ;;  %vm3631_vm12 = vcmp.gt.f32.partialorder %v3599_v15, 0.0 }
 0x2c0   : > { %v3618_v21 = vld [vmem:[#allocation7 + $0x68] sm:$0xff]  ;;  %3841 = vst.msk [vmem:[#allocation5 + $0x60] sm:$0xff] %vm1015_vm2, %v3670_v0 }
 0x2c1   : > { %vm3688_vm14 = vcmp.gt.f32.partialorder %v3618_v21, 0.0  ;;  %v3704_v63 = vmul.f32 %v7653_v1, %v3618_v21  ;;  %v3617_v34 = vld [vmem:[#allocation7 + $0x60] sm:$0xff]  ;;  %v5794_v16 = vpop.f32.mrf.mxu0  ;;  %v3669_v61 = vsel %vm3631_vm12, %v3599_v15, %v3653_v10  ;;  %v4142_v0 = vld [vmem:[#allocation4 + $0x98] sm:$0x1] }
 0x2c2   : > { %vm3687_vm15 = vcmp.gt.f32.partialorder %v3617_v34, 0.0  ;;  %v3703_v41 = vmul.f32 %v7653_v1, %v3617_v34  ;;  %v3522_v44 = vadd.f32 %v5794_v16, %v3506_v25  ;;  %3840 = vst.msk [vmem:[#allocation5 + $0x58] sm:$0xff] %vm1015_vm2, %v3669_v61  ;;  %v7937_v16 = vld [vmem:[#allocation4 + $0xc0] sm:$0xff]  ;;  %v3859_v25 = vld [vmem:[#allocation4 + $0xc8] sm:$0x1] }
 0x2c3   : > { %v3720_v58 = vsel %vm3688_vm14, %v3618_v21, %v3704_v63  ;;  %v3281_v48 = vpop.f32.mrf.mxu0  ;;  %v7935_v21 = vld [vmem:[#allocation4 + $0x90] sm:$0xff]  ;;  %v3936_v8 = vrot.slane %v7937_v16, 1 }
 0x2c4   : > { %v3761_v47 = vrot.slane %v3720_v58, 7  ;;  %v3719_v24 = vsel %vm3687_vm15, %v3617_v34, %v3703_v41  ;;  %3538 = vst.msk [vmem:[#allocation6 + $0x68] sm:$0xff] %vm1015_vm2, %v3522_v44  ;;  %v3521_v19 = vadd.f32 %v3505_v54, %v3281_v48  ;;  %v4217_v41 = vrot.slane %v7935_v21, 1 }
 0x2c5   : > { %v3760_v3 = vrot.slane %v3719_v24, 7  ;;  %v4218_v44 = vrot.slane %v4142_v0, 1 }
 0x2c6   : > { %3824 = vst.msk [vmem:[#allocation4 + $0xe8] sm:$0x1] %vm3724_vm6, %v3761_v47  ;;  %v3793_v20 = vsel %vm659_vm4, 0.0, %v3761_v47  ;;  %v5833_v56 = vpop.f32.mrf.mxu1 }
 0x2c7   : > { %3537 = vst.msk [vmem:[#allocation6 + $0x60] sm:$0xff] %vm1015_vm2, %v3521_v19  ;;  %3823 = vst.msk [vmem:[#allocation4 + $0xe0] sm:$0xff] %vm1015_vm2, %v3793_v20  ;;  %v3572_v6 = vadd.f32 %v5833_v56, %v3556_v52  ;;  %v7913_v50 = vld [vmem:[#allocation5 + $0x60] sm:$0xff]  ;;  %v3792_v37 = vsel %vm659_vm4, 0.0, %v3760_v3  ;;  %v7954_v52 = vld [vmem:[#allocation4 + $0xb0] sm:$0xff] }
 0x2c8   : > { %3822 = vst.msk [vmem:[#allocation4 + $0xd8] sm:$0x1] %vm3724_vm6, %v3760_v3  ;;  %3890 = vrot.lane.b32.xlu0 %v7913_v50, %s6042_s15  ;;  %v3484_v62 = vpop.f32.mrf.mxu1  ;;  %v3937_v3 = vrot.slane %v3859_v25, 1 }
 0x2c9   : > { %3821 = vst.msk [vmem:[#allocation4 + $0xd0] sm:$0xff] %vm1015_vm2, %v3792_v37  ;;  %3588 = vst.msk [vmem:[#allocation7 + $0x78] sm:$0xff] %vm1015_vm2, %v3572_v6  ;;  %v3571_v23 = vadd.f32 %v3555_v43, %v3484_v62  ;;  %v4154_v2 = vld [vmem:[#allocation5 + $0x58] sm:$0xff]  ;;  %v4219_v37 = vsel %vm902_vm3, %v4217_v41, %v4218_v44  ;;  %v4447_v44 = vld [vmem:[#allocation4 + $0xc8] sm:$0x1] }
 0x2ca   : > { %4175 = vrot.lane.b32.xlu1 %v4154_v2, %s6042_s15  ;;  %v4144_v6 = vld [vmem:[#allocation4 + $0xb8] sm:$0x1] }
 0x2cb   : > { %v3602_v26 = vld [vmem:[#allocation6 + $0x68] sm:$0xff]  ;;  %3587 = vst.msk [vmem:[#allocation7 + $0x70] sm:$0xff] %vm1015_vm2, %v3571_v23  ;;  %v6023_v23 = vld [vmem:[%s8293_s5] ss:$0 sm:$0xff] }
 0x2cc   : > { %v3656_v45 = vmul.f32 %v7653_v1, %v3602_v26  ;;  %3952 = vrot.lane.b32.xlu0 %v3935_v18, %s6043_s28  ;;  %vm3634_vm1 = vcmp.gt.f32.partialorder %v3602_v26, 0.0 }
 0x2cd   : > { %v3861_v54 = vld [vmem:[#allocation4 + $0xe8] sm:$0x1] }
 0x2ce   : > { %v3601_v5 = vld [vmem:[#allocation6 + $0x60] sm:$0xff]  ;;  %v5797_v17 = vpop.f32.mrf.mxu0  ;;  %v3672_v35 = vsel %vm3634_vm1, %v3602_v26, %v3656_v45  ;;  %v7946_v48 = vld [vmem:[#allocation4 + $0xe0] sm:$0xff]  ;;  %v3940_v43 = vrot.slane %v3861_v54, 1  ;;  %v3938_v45 = vsel %vm902_vm3, %v3936_v8, %v3937_v3  ;;  %v4525_v54 = vrot.slane %v4447_v44, 1 }
 0x2cf   : > { %v3655_v27 = vmul.f32 %v7653_v1, %v3601_v5  ;;  %vm3633_vm7 = vcmp.gt.f32.partialorder %v3601_v5, 0.0  ;;  %v3524_v4 = vadd.f32 %v5797_v17, %v3508_v53  ;;  %3843 = vst.msk [vmem:[#allocation5 + $0x70] sm:$0xff] %vm1015_vm2, %v3672_v35  ;;  %v3939_v62 = vrot.slane %v7946_v48, 1  ;;  %v4146_v26 = vld [vmem:[#allocation4 + $0xd8] sm:$0x1] }
 0x2d0   : > { %v3620_v39 = vld [vmem:[#allocation7 + $0x78] sm:$0xff]  ;;  %v3291_v59 = vpop.f32.mrf.mxu0 }
 0x2d1   : > { %v3671_v32 = vsel %vm3633_vm7, %v3601_v5, %v3655_v27  ;;  %vm3690_vm8 = vcmp.gt.f32.partialorder %v3620_v39, 0.0  ;;  %v3706_v55 = vmul.f32 %v7653_v1, %v3620_v39  ;;  %3540 = vst.msk [vmem:[#allocation6 + $0x78] sm:$0xff] %vm1015_vm2, %v3524_v4  ;;  %v3523_v13 = vadd.f32 %v3507_v36, %v3291_v59  ;;  %v4441_v36 = vld [vmem:[#allocation4 + $0x68] sm:$0x1] }
 0x2d2   : > { %3842 = vst.msk [vmem:[#allocation5 + $0x68] sm:$0xff] %vm1015_vm2, %v3671_v32  ;;  %v3619_v46 = vld [vmem:[#allocation7 + $0x70] sm:$0xff]  ;;  %v4220_v5 = vrot.slane %v7954_v52, 1  ;;  %v4221_v27 = vrot.slane %v4144_v6, 1  ;;  %v3941_v53 = vsel %vm902_vm3, %v3939_v62, %v3940_v43  ;;  %v4224_v4 = vrot.slane %v4146_v26, 1  ;;  %v5377_v26 = vld [vmem:[%s8294_s6 + $0x108] sm:$0xff] }
 0x2d3   : > { %v3722_v15 = vsel %vm3690_vm8, %v3620_v39, %v3706_v55  ;;  %vm3689_vm9 = vcmp.gt.f32.partialorder %v3619_v46, 0.0  ;;  %v3705_v10 = vmul.f32 %v7653_v1, %v3619_v46  ;;  %3539 = vst.msk [vmem:[#allocation6 + $0x70] sm:$0xff] %vm1015_vm2, %v3523_v13  ;;  %v4516_v55 = vrot.slane %v4441_v36, 1  ;;  %v5371_v36 = vld [vmem:[%s8294_s6 + $0xd8] sm:$0xff] }
 0x2d4   : > { %v3763_v63 = vrot.slane %v3722_v15, 7  ;;  %v4222_v39 = vsel %vm902_vm3, %v4220_v5, %v4221_v27  ;;  %v5376_v27 = vld [vmem:[%s8294_s6 + $0x100] sm:$0xff] }
 0x2d5   : > { %v3721_v34 = vsel %vm3689_vm9, %v3619_v46, %v3705_v10  ;;  %v4517_v0 = vsel %vm902_vm3, %v3927_v22, %v4516_v55 }
 0x2d6   : > { %3828 = vst.msk [vmem:[#allocation4 + $0x108] sm:$0x1] %vm3724_vm6, %v3763_v63  ;;  %v3762_v61 = vrot.slane %v3721_v34, 7  ;;  %v7940_v58 = vld [vmem:[#allocation5 + $0x70] sm:$0xff]  ;;  %v3795_v47 = vsel %vm659_vm4, 0.0, %v3763_v63 }
 0x2d7   : > { %3892 = vrot.lane.b32.xlu0 %v7940_v58, %s6042_s15  ;;  %3827 = vst.msk [vmem:[#allocation4 + $0x100] sm:$0xff] %vm1015_vm2, %v3795_v47  ;;  %v4443_v63 = vld [vmem:[#allocation4 + $0x88] sm:$0x1] }
 0x2d8   : > { %3826 = vst.msk [vmem:[#allocation4 + $0xf8] sm:$0x1] %vm3724_vm6, %v3762_v61  ;;  %v3604_v24 = vld [vmem:[#allocation6 + $0x78] sm:$0xff]  ;;  %v3794_v20 = vsel %vm659_vm4, 0.0, %v3762_v61  ;;  %v4519_v61 = vrot.slane %v4443_v63, 1  ;;  %vm4882_vm6 = vcmask 1041408  }
 0x2d9   : > { %v4155_v19 = vld [vmem:[#allocation5 + $0x68] sm:$0xff]  ;;  %v3658_v56 = vmul.f32 %v7653_v1, %v3604_v24  ;;  %3825 = vst.msk [vmem:[#allocation4 + $0xf0] sm:$0xff] %vm1015_vm2, %v3794_v20  ;;  %vm3636_vm10 = vcmp.gt.f32.partialorder %v3604_v24, 0.0  ;;  %v7963_v1 = vld [vmem:[#allocation4 + $0xd0] sm:$0xff] }
 0x2da   : > { %4177 = vrot.lane.b32.xlu1 %v4155_v19, %s6042_s15  ;;  %v3603_v14 = vld [vmem:[#allocation6 + $0x70] sm:$0xff]  ;;  %v4223_v35 = vrot.slane %v7963_v1, 1  ;;  %v4445_v34 = vld [vmem:[#allocation4 + $0xa8] sm:$0x1] }
 0x2db   : > { %v3657_v2 = vmul.f32 %v6023_v23, %v3603_v14  ;;  %4237 = vrot.lane.b32.xlu0 %v4219_v37, %s6043_s28  ;;  %vm3635_vm4 = vcmp.gt.f32.partialorder %v3603_v14, 0.0  ;;  %v3674_v18 = vsel %vm3636_vm10, %v3604_v24, %v3658_v56  ;;  %v4449_v47 = vld [vmem:[#allocation4 + $0xe8] sm:$0x1] }
 0x2dc   : > { %3845 = vst.msk [vmem:[#allocation5 + $0x80] sm:$0xff] %vm1015_vm2, %v3674_v18  ;;  %v4225_v59 = vsel %vm902_vm3, %v4223_v35, %v4224_v4  ;;  %v5374_v35 = vld [vmem:[%s8294_s6 + $0xf0] sm:$0xff]  ;;  %v5373_v4 = vld [vmem:[%s8294_s6 + $0xe8] sm:$0xff] }
 0x2dd   : > { %v3673_v17 = vsel %vm3635_vm4, %v3603_v14, %v3657_v2  ;;  %v4451_v6 = vld [vmem:[#allocation4 + $0x108] sm:$0x1] }
 0x2de   : > { %3954 = vrot.lane.b32.xlu1 %v3938_v45, %s6043_s28  ;;  %3844 = vst.msk [vmem:[#allocation5 + $0x78] sm:$0xff] %vm1015_vm2, %v3673_v17  ;;  %v8014_v56 = vld [vmem:[#allocation4 + $0x100] sm:$0xff] }
 0x2df   : > { %3956 = vrot.lane.b32.xlu0 %v3941_v53, %s6043_s28  ;;  %v4148_v46 = vld [vmem:[#allocation4 + $0xf8] sm:$0x1]  ;;  %v4530_v14 = vrot.slane %v8014_v56, 1 }
 0x2e0   : > { %v7980_v13 = vld [vmem:[#allocation4 + $0xf0] sm:$0xff]  ;;  %v4227_v10 = vrot.slane %v4148_v46, 1 }
 0x2e1   : > { %v4226_v15 = vrot.slane %v7980_v13, 1 }
 0x2e2   : > { %4239 = vrot.lane.b32.xlu1 %v4222_v39, %s6043_s28 }
 0x2e3   : > { %4241 = vrot.lane.b32.xlu0 %v4225_v59, %s6043_s28  ;;  %v4228_v25 = vsel %vm902_vm3, %v4226_v15, %v4227_v10  ;;  %v5372_v59 = vld [vmem:[%s8294_s6 + $0xe0] sm:$0xff]  ;;  %v5370_v15 = vld [vmem:[%s8294_s6 + $0xd0] sm:$0xff]  ;;  %v5369_v10 = vld [vmem:[%s8294_s6 + $0xc8] sm:$0xff] }
 0x2e5   : > { %v4156_v32 = vld [vmem:[#allocation5 + $0x78] sm:$0xff] }
 0x2e6   : > { %4179 = vrot.lane.b32.xlu1 %v4156_v32, %s6042_s15 }
 0x2e7   : > { %4473 = vrot.lane.b32.xlu0 %v7805_v31, %s6042_s15  ;;  %v4522_v31 = vrot.slane %v4445_v34, 1 }
 0x2e9   : > { %v4523_v22 = vsel %vm902_vm3, %v3933_v51, %v4522_v31 }
 0x2ea   : > { %4475 = vrot.lane.b32.xlu1 %v7847_v7, %s6042_s15  ;;  %v3881_v41 = vpop.permute.xlu1 %3880  ;;  %v4520_v7 = vsel %vm902_vm3, %v3930_v42, %v4519_v61  ;;  %v4470_v24 = vpop.permute.xlu0 %4469  ;;  %v4526_v42 = vsel %vm902_vm3, %v3936_v8, %v4525_v54 }
 0x2eb   : > { %4537 = vrot.lane.b32.xlu0 %v4517_v0, %s6043_s28  ;;  %v3967_v37 = vsel %vm1015_vm2, %v7741_v60, %v3881_v41  ;;  %v4557_v18 = vsel %vm1015_vm2, %v7741_v60, %v4470_v24 }
 0x2ee   : > { %4243 = vrot.lane.b32.xlu1 %v4228_v25, %s6043_s28  ;;  %v4166_v19 = vpop.permute.xlu1 %4165 }
 0x2ef   : > { %4477 = vrot.lane.b32.xlu0 %v7884_v57, %s6042_s15  ;;  %v4528_v57 = vrot.slane %v4449_v47, 1  ;;  %v4253_v32 = vsel %vm1015_vm2, %v7793_v11, %v4166_v19  ;;  %v5368_v11 = vld [vmem:[%s8294_s6 + $0xc0] sm:$0xff] }
 0x2f1   : > { %v4529_v20 = vsel %vm902_vm3, %v3939_v62, %v4528_v57  ;;  %v5378_v62 = vld [vmem:[%s8294_s6 + $0x110] sm:$0xff] }
 0x2f2   : > { %4539 = vrot.lane.b32.xlu1 %v4520_v7, %s6043_s28 }
 0x2f3   : > { %4541 = vrot.lane.b32.xlu0 %v4523_v22, %s6043_s28 }
 0x2f6   : > { %4479 = vrot.lane.b32.xlu1 %v7913_v50, %s6042_s15  ;;  %v4460_v50 = vld [vmem:[#allocation5 + $0x80] sm:$0xff] }
 0x2f7   : > { %4481 = vrot.lane.b32.xlu0 %v7940_v58, %s6042_s15  ;;  %v4531_v58 = vrot.slane %v4451_v6, 1 }
 0x2f9   : > { %v4532_v2 = vsel %vm902_vm3, %v4530_v14, %v4531_v58  ;;  %vm6044_vm3 = vmmov 0  }
 0x2fa   : > { %v3883_v3 = vpop.permute.xlu0 %3882  ;;  %4543 = vrot.lane.b32.xlu1 %v4526_v42, %s6043_s28  ;;  %v8011_v51 = vpop.permute.xlu1 %4471 }
 0x2fb   : > { %4545 = vrot.lane.b32.xlu0 %v4529_v20, %s6043_s28  ;;  %v3968_v60 = vsel %vm1015_vm2, %v7768_v28, %v3883_v3 }
 0x2fe   : > { %v4168_v8 = vpop.permute.xlu0 %4167  ;;  %4483 = vrot.lane.b32.xlu1 %v4460_v50, %s6042_s15  ;;  %v3945_v43 = vpop.permute.xlu1 %3944  ;;  %s5408_s15 = sshll.u32 %s8333_s30, 6 }
 0x2ff   : > { %v3976_v23 = vsel %vm3974_vm13, %v3967_v37, %v3945_v43  ;;  %v4254_v63 = vsel %vm1015_vm2, %v7819_v38, %v4168_v8  ;;  %s487_s23 = scalar_lea.vmem %s8302_s14, %s5408_s15 }
 0x300   : > { %5859 = vmatmul.mubr.msk.f32.vlgmr.msra.gmra.mxu0 %vm3995_vm5, %v3976_v23 }
 0x301   : > { %5907 = vmatpush3.msra.mxu0 %v7898_v12  ;;  %v5375_v12 = vld [vmem:[%s8294_s6 + $0xf8] sm:$0xff] }
 0x302   : > { %v4534_v45 = vpop.permute.xlu0 %4533  ;;  %4547 = vrot.lane.b32.xlu1 %v4532_v2, %s6043_s28  ;;  %5908 = vmatprep.subr.mxu0 %v5378_v62 }
 0x303   : > { %v8035_v5 = vsel %vm3974_vm13, %v4557_v18, %v4534_v45  ;;  %5909 = vmatpush3.msra.mxu0 %v5378_v62 }
 0x304   : > { %5910 = vmatprep.subr.mxu0 %v5377_v26 }
 0x305   : > { %5911 = vmatpush3.msra.mxu0 %v5377_v26 }
 0x306   : > { %v3947_v17 = vpop.permute.xlu0 %3946  ;;  %5912 = vmatprep.subr.mxu0 %v5376_v27 }
 0x307   : > { %v3977_v53 = vsel %vm3974_vm13, %v3968_v60, %v3947_v17  ;;  %5913 = vmatpush3.msra.mxu0 %v5376_v27 }
 0x308   : > { %5861 = vmatprep.mubr.msk.f32.mxu0 %vm3995_vm5, %v3977_v53  ;;  %5914 = vmatprep.subr.mxu0 %v5375_v12 }
 0x309   : > { %5915 = vmatpush3.msra.mxu0 %v5375_v12 }
 0x30a   : > { %v3885_v39 = vpop.permute.xlu1 %3884  ;;  %5916 = vmatprep.subr.mxu0 %v5374_v35  ;;  %v4536_v61 = vpop.permute.xlu0 %4535 }
 0x30b   : > { %5917 = vmatpush3.msra.mxu0 %v5374_v35  ;;  %v3969_v31 = vsel %vm1015_vm2, %v7828_v40, %v3885_v39  ;;  %v4558_v35 = vsel %vm1015_vm2, %v7768_v28, %v8011_v51 }
 0x30c   : > { %5918 = vmatprep.subr.mxu0 %v5373_v4 }
 0x30d   : > { %5919 = vmatpush3.msra.mxu0 %v5373_v4 }
 0x30e   : > { %v4230_v55 = vpop.permute.xlu1 %4229  ;;  %5920 = vmatprep.subr.mxu0 %v5372_v59 }
 0x30f   : > { %v4261_v46 = vsel %vm3974_vm13, %v4253_v32, %v4230_v55  ;;  %5921 = vmatpush3.msra.mxu0 %v5372_v59 }
 0x310   : > { %5894 = vmatprep.mubr.msk.f32.mxu1 %vm3995_vm5, %v4261_v46  ;;  %5922 = vmatprep.subr.mxu0 %v5371_v36 }
 0x311   : > { %5923 = vmatpush3.msra.mxu0 %v5371_v36 }
 0x312   : > { %v4170_v0 = vpop.permute.xlu1 %4169  ;;  %5924 = vmatprep.subr.mxu0 %v5370_v15 }
 0x313   : > { %5925 = vmatpush3.msra.mxu0 %v5370_v15  ;;  %v4255_v38 = vsel %vm1015_vm2, %v7836_v29, %v4170_v0 }
 0x314   : > { %5926 = vmatprep.subr.mxu0 %v5369_v10 }
 0x315   : > { %5927 = vmatpush3.msra.mxu0 %v5369_v10 }
 0x316   : > { %v4232_v34 = vpop.permute.xlu1 %4231  ;;  %5928 = vmatprep.subr.mxu0 %v5368_v11 }
 0x317   : > { %v4262_v25 = vsel %vm3974_vm13, %v4254_v63, %v4232_v34  ;;  %5929 = vmatpush3.msra.mxu0 %v5368_v11 }
 0x318   : > { %5895 = vmatmul.mubr.msk.f32.vlgmr.msra.gmra.mxu1 %vm3995_vm5, %v4262_v25 }
 0x31a   : > { %v3949_v41 = vpop.permute.xlu1 %3948  ;;  %v3887_v22 = vpop.permute.xlu0 %3886 }
 0x31b   : > { %v3978_v7 = vsel %vm3974_vm13, %v3969_v31, %v3949_v41  ;;  %v3970_v54 = vsel %vm1015_vm2, %v7850_v49, %v3887_v22 }
 0x31c   : > { %5862 = vmatmul.mubr.msk.f32.gmra.mxu0 %vm3995_vm5, %v3978_v7 }
 0x31e   : > { %v4234_v44 = vpop.permute.xlu1 %4233  ;;  %v4172_v19 = vpop.permute.xlu0 %4171 }
 0x31f   : > { %v4263_v47 = vsel %vm3974_vm13, %v4255_v38, %v4234_v44  ;;  %v4256_v42 = vsel %vm1015_vm2, %v7863_v9, %v4172_v19 }
 0x320   : > { %5897 = vmatprep.mubr.msk.f32.mxu1 %vm3995_vm5, %v4263_v47 }
 0x322   : > { %v3951_v24 = vpop.permute.xlu1 %3950 }
 0x323   : > { %v3979_v57 = vsel %vm3974_vm13, %v3970_v54, %v3951_v24  ;;  %v4801_v54 = vld [vmem:[%s8297_s9 + $0x10] sm:$0xff]  ;;  %v4799_v24 = vld [vmem:[%s8297_s9] sm:$0xff] }
 0x324   : > { %5864 = vmatprep.mubr.msk.f32.mxu0 %vm3995_vm5, %v3979_v57 }
 0x326   : > { %v4236_v3 = vpop.permute.xlu1 %4235 }
 0x327   : > { %v4264_v29 = vsel %vm3974_vm13, %v4256_v42, %v4236_v3 }
 0x328   : > { %5898 = vmatmul.mubr.msk.f32.gmra.mxu1 %vm3995_vm5, %v4264_v29 }
 0x32a   : > { %v3889_v20 = vpop.permute.xlu0 %3888 }
 0x32b   : > { %v3971_v14 = vsel %vm1015_vm2, %v7906_v33, %v3889_v20 }
 0x32e   : > { %v4174_v6 = vpop.permute.xlu0 %4173 }
 0x32f   : > { %v4257_v9 = vsel %vm1015_vm2, %v7935_v21, %v4174_v6 }
 0x33a   : > { %v3891_v50 = vpop.permute.xlu0 %3890 }
 0x33b   : > { %v3972_v26 = vsel %vm1015_vm2, %v7937_v16, %v3891_v50 }
 0x33c   : > { %v4176_v8 = vpop.permute.xlu1 %4175 }
 0x33d   : > { %v4258_v21 = vsel %vm1015_vm2, %v7954_v52, %v4176_v8  ;;  %v4566_v52 = vsel %vm3974_vm13, %v4558_v35, %v4536_v61 }
 0x33e   : > { %v3953_v58 = vpop.permute.xlu0 %3952 }
 0x33f   : > { %v3980_v37 = vsel %vm3974_vm13, %v3971_v14, %v3953_v58 }
 0x340   : > { %5865 = vmatmul.mubr.msk.f32.gmra.mxu0 %vm3995_vm5, %v3980_v37 }
 0x349   : > { %v3893_v43 = vpop.permute.xlu0 %3892 }
 0x34a   : > { %v3973_v27 = vsel %vm1015_vm2, %v7946_v48, %v3893_v43 }
 0x34c   : > { %v4178_v23 = vpop.permute.xlu1 %4177 }
 0x34d   : > { %v4238_v62 = vpop.permute.xlu0 %4237  ;;  %v4259_v4 = vsel %vm1015_vm2, %v7963_v1, %v4178_v23 }
 0x34e   : > { %v4265_v2 = vsel %vm3974_vm13, %v4257_v9, %v4238_v62 }
 0x34f   : > { %5900 = vmatprep.mubr.msk.f32.mxu1 %vm3995_vm5, %v4265_v2 }
 0x350   : > { %v3955_v18 = vpop.permute.xlu1 %3954 }
 0x351   : > { %v3981_v45 = vsel %vm3974_vm13, %v3972_v26, %v3955_v18  ;;  %v3957_v12 = vpop.permute.xlu0 %3956 }
 0x352   : > { %5867 = vmatprep.mubr.msk.f32.mxu0 %vm3995_vm5, %v3981_v45  ;;  %v3982_v60 = vsel %vm3974_vm13, %v3973_v27, %v3957_v12 }
 0x353   : > { %5868 = vmatmul.mubr.msk.f32.gmra.mxu0 %vm3995_vm5, %v3982_v60 }
 0x354   : > { %v4240_v17 = vpop.permute.xlu1 %4239  ;;  %5930 = vmatprep.mubr.msk.f32.mxu0 %vm3995_vm5, %v8035_v5 }
 0x355   : > { %v4266_v53 = vsel %vm3974_vm13, %v4258_v21, %v4240_v17  ;;  %v4242_v39 = vpop.permute.xlu0 %4241 }
 0x356   : > { %5901 = vmatmul.mubr.msk.f32.gmra.mxu1 %vm3995_vm5, %v4266_v53  ;;  %v4267_v59 = vsel %vm3974_vm13, %v4259_v4, %v4242_v39 }
 0x357   : > { %5903 = vmatprep.mubr.msk.f32.mxu1 %vm3995_vm5, %v4267_v59  ;;  %5931 = vmatmul.mubr.msk.f32.vlgmr.msra.gmra.mxu0 %vm3995_vm5, %v4566_v52 }
 0x358   : > { %v4180_v36 = vpop.permute.xlu1 %4179 }
 0x359   : > { %v4474_v5 = vpop.permute.xlu0 %4473  ;;  %v4260_v55 = vsel %vm1015_vm2, %v7980_v13, %v4180_v36 }
 0x35a   : > { %v4559_v28 = vsel %vm1015_vm2, %v7828_v40, %v4474_v5 }
 0x35c   : > { %v4476_v32 = vpop.permute.xlu1 %4475 }
 0x35d   : > { %v4538_v51 = vpop.permute.xlu0 %4537  ;;  %v4560_v0 = vsel %vm1015_vm2, %v7850_v49, %v4476_v32 }
 0x35e   : > { %v4567_v1 = vsel %vm3974_vm13, %v4559_v28, %v4538_v51 }
 0x35f   : > { %5933 = vmatprep.mubr.msk.f32.mxu0 %vm3995_vm5, %v4567_v1 }
 0x360   : > { %v4244_v46 = vpop.permute.xlu1 %4243 }
 0x361   : > { %v4268_v15 = vsel %vm3974_vm13, %v4260_v55, %v4244_v46  ;;  %v4478_v10 = vpop.permute.xlu0 %4477 }
 0x362   : > { %5904 = vmatmul.mubr.msk.f32.gmra.mxu1 %vm3995_vm5, %v4268_v15  ;;  %v4561_v40 = vsel %vm1015_vm2, %v7906_v33, %v4478_v10 }
 0x363   : > { %5950 = vmatprep.mubr.msk.f32.mxu1 %vm6044_vm3, %v8331_v30 }
 0x364   : > { %v4540_v11 = vpop.permute.xlu1 %4539 }
 0x365   : > { %v4568_v63 = vsel %vm3974_vm13, %v4560_v0, %v4540_v11  ;;  %v4542_v34 = vpop.permute.xlu0 %4541 }
 0x366   : > { %v4569_v25 = vsel %vm3974_vm13, %v4561_v40, %v4542_v34  ;;  %5934 = vmatmul.mubr.msk.f32.gmra.mxu0 %vm3995_vm5, %v4568_v63 }
 0x367   : > { %5936 = vmatprep.mubr.msk.f32.mxu0 %vm3995_vm5, %v4569_v25  ;;  %v5388_v25 = vld [vmem:[%s8295_s7] ss:$0 sm:$0xff] }
 0x368   : > { %v4480_v13 = vpop.permute.xlu1 %4479 }
 0x369   : > { %v4482_v61 = vpop.permute.xlu0 %4481  ;;  %v4562_v31 = vsel %vm1015_vm2, %v7937_v16, %v4480_v13 }
 0x36a   : > { %v4563_v49 = vsel %vm1015_vm2, %v7946_v48, %v4482_v61  ;;  %v4802_v48 = vld [vmem:[%s8297_s9 + $0x18] sm:$0xff] }
 0x36b   : > { %5943 = vmatpush3.msra.mxu1 %v4802_v48 }
 0x36c   : > { %v4544_v41 = vpop.permute.xlu1 %4543  ;;  %5944 = vmatprep.subr.mxu1 %v8331_v30 }
 0x36d   : > { %v4570_v33 = vsel %vm3974_vm13, %v4562_v31, %v4544_v41  ;;  %v4546_v7 = vpop.permute.xlu0 %4545  ;;  %5945 = vmatpush3.msra.mxu1 %v4801_v54 }
 0x36e   : > { %v4571_v22 = vsel %vm3974_vm13, %v4563_v49, %v4546_v7  ;;  %5937 = vmatmul.mubr.msk.f32.gmra.mxu0 %vm3995_vm5, %v4570_v33  ;;  %5946 = vmatprep.subr.mxu1 %v8331_v30 }
 0x36f   : > { %5939 = vmatprep.mubr.msk.f32.mxu0 %vm3995_vm5, %v4571_v22 }
 0x370   : > { %v4484_v38 = vpop.permute.xlu1 %4483 }
 0x371   : > { %v4564_v44 = vsel %vm1015_vm2, %v8014_v56, %v4484_v38  ;;  %v4800_v56 = vld [vmem:[%s8297_s9 + $0x8] sm:$0xff] }
 0x372   : > { %5947 = vmatpush3.msra.mxu1 %v4800_v56 }
 0x373   : > { %5948 = vmatprep.subr.mxu1 %v8331_v30 }
 0x374   : > { %v4548_v47 = vpop.permute.xlu1 %4547  ;;  %5949 = vmatpush3.msra.mxu1 %v4799_v24 }
 0x375   : > { %v4572_v16 = vsel %vm3974_vm13, %v4564_v44, %v4548_v47  ;;  %5953 = vmatprep.subr.mxu1 %v8331_v30  ;;  %v5389_v44 = vld [vmem:[%s8296_s8] ss:$0 sm:$0xff]  ;;  %vm4878_vm13 = vcmask 15360  }
 0x376   : > { %5940 = vmatmul.mubr.msk.f32.gmra.mxu0 %vm3995_vm5, %v4572_v16 }
 0x3c0   : > { %v5860_v19 = vpop.f32.mrf.mxu0 }
 0x3c1   : > { %4126 = vst.msk [vmem:[#allocation8 + $0x8] sm:$0xff] %vm1015_vm2, %v5860_v19 }
 0x3c2   : > { %v4086_v57 = vpop.f32.mrf.mxu0 }
 0x3c3   : > { %4125 = vst.msk [vmem:[#allocation8] sm:$0xff] %vm1015_vm2, %v4086_v57 }
 0x3c8   : > { %v4412_v3 = vld [vmem:[#allocation8 + $0x8] sm:$0xff] }
 0x3ca   : > { %v4411_v6 = vld [vmem:[#allocation8] sm:$0xff] }
 0x3d8   : > { %v5896_v42 = vpop.f32.mrf.mxu1 }
 0x3d9   : > { %v4420_v29 = vadd.f32 %v5896_v42, %v4412_v3 }
 0x3da   : > { %v4372_v20 = vpop.f32.mrf.mxu1 }
 0x3db   : > { %4428 = vst.msk [vmem:[#allocation8 + $0x8] sm:$0xff] %vm1015_vm2, %v4420_v29  ;;  %v4419_v50 = vadd.f32 %v4411_v6, %v4372_v20 }
 0x3dc   : > { %v5863_v14 = vpop.f32.mrf.mxu0 }
 0x3dd   : > { %4427 = vst.msk [vmem:[#allocation8] sm:$0xff] %vm1015_vm2, %v4419_v50  ;;  %4128 = vst.msk [vmem:[#allocation8 + $0x18] sm:$0xff] %vm1015_vm2, %v5863_v14 }
 0x3de   : > { %v4096_v58 = vpop.f32.mrf.mxu0 }
 0x3df   : > { %4127 = vst.msk [vmem:[#allocation8 + $0x10] sm:$0xff] %vm1015_vm2, %v4096_v58 }
 0x3e2   : > { %v4716_v35 = vld [vmem:[#allocation8 + $0x8] sm:$0xff] }
 0x3e4   : > { %v4414_v8 = vld [vmem:[#allocation8 + $0x18] sm:$0xff]  ;;  %v4715_v59 = vld [vmem:[#allocation8] sm:$0xff] }
 0x3e6   : > { %v4413_v9 = vld [vmem:[#allocation8 + $0x10] sm:$0xff] }
 0x3e8   : > { %v5899_v37 = vpop.f32.mrf.mxu1 }
 0x3e9   : > { %v4422_v43 = vadd.f32 %v5899_v37, %v4414_v8 }
 0x3ea   : > { %v4382_v23 = vpop.f32.mrf.mxu1 }
 0x3eb   : > { %4430 = vst.msk [vmem:[#allocation8 + $0x18] sm:$0xff] %vm1015_vm2, %v4422_v43  ;;  %v4421_v62 = vadd.f32 %v4413_v9, %v4382_v23 }
 0x3ed   : > { %4429 = vst.msk [vmem:[#allocation8 + $0x10] sm:$0xff] %vm1015_vm2, %v4421_v62 }
 0x3f2   : > { %v4718_v15 = vld [vmem:[#allocation8 + $0x18] sm:$0xff] }
 0x3f4   : > { %v4717_v11 = vld [vmem:[#allocation8 + $0x10] sm:$0xff] }
 0x400   : > { %v5866_v2 = vpop.f32.mrf.mxu0 }
 0x401   : > { %4130 = vst.msk [vmem:[#allocation8 + $0x28] sm:$0xff] %vm1015_vm2, %v5866_v2 }
 0x402   : > { %v4106_v26 = vpop.f32.mrf.mxu0 }
 0x403   : > { %4129 = vst.msk [vmem:[#allocation8 + $0x20] sm:$0xff] %vm1015_vm2, %v4106_v26 }
 0x408   : > { %v4416_v12 = vld [vmem:[#allocation8 + $0x28] sm:$0xff] }
 0x40a   : > { %v4415_v17 = vld [vmem:[#allocation8 + $0x20] sm:$0xff] }
 0x413   : > { %v5869_v18 = vpop.f32.mrf.mxu0 }
 0x414   : > { %4132 = vst.msk [vmem:[#allocation8 + $0x38] sm:$0xff] %vm1015_vm2, %v5869_v18 }
 0x415   : > { %v4116_v45 = vpop.f32.mrf.mxu0 }
 0x416   : > { %v5902_v27 = vpop.f32.mrf.mxu1  ;;  %4131 = vst.msk [vmem:[#allocation8 + $0x30] sm:$0xff] %vm1015_vm2, %v4116_v45 }
 0x417   : > { %v4424_v60 = vadd.f32 %v5902_v27, %v4416_v12  ;;  %v5932_v53 = vpop.f32.mrf.mxu0 }
 0x418   : > { %v4392_v21 = vpop.f32.mrf.mxu1  ;;  %v4724_v39 = vadd.f32 %v5932_v53, %v4716_v35 }
 0x419   : > { %4432 = vst.msk [vmem:[#allocation8 + $0x28] sm:$0xff] %vm1015_vm2, %v4424_v60  ;;  %v4423_v4 = vadd.f32 %v4415_v17, %v4392_v21  ;;  %v4676_v52 = vpop.f32.mrf.mxu0 }
 0x41a   : > { %4732 = vst.msk [vmem:[#allocation8 + $0x8] sm:$0xff] %vm1015_vm2, %v4724_v39  ;;  %v4723_v36 = vadd.f32 %v4715_v59, %v4676_v52 }
 0x41b   : > { %4431 = vst.msk [vmem:[#allocation8 + $0x20] sm:$0xff] %vm1015_vm2, %v4423_v4  ;;  %v4418_v32 = vld [vmem:[#allocation8 + $0x38] sm:$0xff] }
 0x41c   : > { %4731 = vst.msk [vmem:[#allocation8] sm:$0xff] %vm1015_vm2, %v4723_v36 }
 0x41d   : > { %v4417_v1 = vld [vmem:[#allocation8 + $0x30] sm:$0xff] }
 0x420   : > { %v4720_v61 = vld [vmem:[#allocation8 + $0x28] sm:$0xff] }
 0x421   : > { %v4740_v34 = vld [vmem:[#allocation8 + $0x8] sm:$0xff] }
 0x422   : > { %v5905_v5 = vpop.f32.mrf.mxu1  ;;  %v4719_v33 = vld [vmem:[#allocation8 + $0x20] sm:$0xff]  ;;  %v4755_v7 = vmul.f32 %v5388_v25, %v4740_v34 }
 0x423   : > { %v4426_v28 = vadd.f32 %v5905_v5, %v4418_v32  ;;  %v4739_v63 = vld [vmem:[#allocation8] sm:$0xff] }
 0x424   : > { %v4402_v51 = vpop.f32.mrf.mxu1  ;;  %v4754_v31 = vmul.f32 %v5388_v25, %v4739_v63  ;;  %v8199_v54 = vadd.f32 %v5389_v44, %v4755_v7  ;;  %v6031_v7 = vld [vmem:[%s6198_s22 + $0x70] sm:$0xff] }
 0x425   : > { %4434 = vst.msk [vmem:[#allocation8 + $0x38] sm:$0xff] %vm1015_vm2, %v4426_v28  ;;  %v4425_v55 = vadd.f32 %v4417_v1, %v4402_v51 }
 0x426   : > { %v5935_v46 = vpop.f32.mrf.mxu0  ;;  %v8197_v16 = vadd.f32 %v5389_v44, %v4754_v31  ;;  %v4778_v50 = vsel %vm1015_vm2, %v8199_v54, 0.0  ;;  %v6027_v31 = vld [vmem:[%s6198_s22 + $0x30] sm:$0xff] }
 0x427   : > { %4433 = vst.msk [vmem:[#allocation8 + $0x30] sm:$0xff] %vm1015_vm2, %v4425_v55  ;;  %v4726_v10 = vadd.f32 %v5935_v46, %v4718_v15 }
 0x428   : > { %v4686_v0 = vpop.f32.mrf.mxu0  ;;  %v4777_v3 = vsel %vm1015_vm2, %v8197_v16, 0.0 }
 0x429   : > { %4734 = vst.msk [vmem:[#allocation8 + $0x18] sm:$0xff] %vm1015_vm2, %v4726_v10  ;;  %v4725_v40 = vadd.f32 %v4717_v11, %v4686_v0  ;;  %v4779_v8 = vadd.f32 %v4778_v50, %v4777_v3  ;;  %v4877_v0 = vld [vmem:[%s8298_s10] sm:$0x3]  ;;  %v4975_v11 = vld [vmem:[%s8299_s11 + $0x8] sm:$0xff] }
 0x42b   : > { %4733 = vst.msk [vmem:[#allocation8 + $0x10] sm:$0xff] %vm1015_vm2, %v4725_v40 }
 0x42c   : > { %v4722_v19 = vld [vmem:[#allocation8 + $0x38] sm:$0xff] }
 0x42e   : > { %v5938_v13 = vpop.f32.mrf.mxu0  ;;  %v4721_v20 = vld [vmem:[#allocation8 + $0x30] sm:$0xff] }
 0x42f   : > { %v4728_v41 = vadd.f32 %v5938_v13, %v4720_v61  ;;  %v6025_v13 = vld [vmem:[%s6198_s22 + $0x10] sm:$0xff]  ;;  %v6026_v61 = vld [vmem:[%s6198_s22 + $0x20] sm:$0xff] }
 0x430   : > { %v4696_v49 = vpop.f32.mrf.mxu0  ;;  %v4742_v48 = vld [vmem:[#allocation8 + $0x18] sm:$0xff] }
 0x431   : > { %4736 = vst.msk [vmem:[#allocation8 + $0x28] sm:$0xff] %vm1015_vm2, %v4728_v41  ;;  %v4727_v22 = vadd.f32 %v4719_v33, %v4696_v49  ;;  %v4757_v42 = vmul.f32 %v5388_v25, %v4742_v48  ;;  %v6028_v41 = vld [vmem:[%s6198_s22 + $0x40] sm:$0xff]  ;;  %v6029_v49 = vld [vmem:[%s6198_s22 + $0x50] sm:$0xff] }
 0x432   : > { %v4741_v38 = vld [vmem:[#allocation8 + $0x10] sm:$0xff] }
 0x433   : > { %v4756_v47 = vmul.f32 %v5388_v25, %v4741_v38  ;;  %4735 = vst.msk [vmem:[#allocation8 + $0x20] sm:$0xff] %vm1015_vm2, %v4727_v22  ;;  %v8211_v23 = vadd.f32 %v5389_v44, %v4757_v42  ;;  %v6030_v33 = vld [vmem:[%s6198_s22 + $0x60] sm:$0xff] }
 0x435   : > { %v8201_v56 = vadd.f32 %v5389_v44, %v4756_v47  ;;  %v4782_v26 = vsel %vm1015_vm2, %v8211_v23, 0.0 }
 0x436   : > { %v5941_v24 = vpop.f32.mrf.mxu0 }
 0x437   : > { %v4730_v57 = vadd.f32 %v5941_v24, %v4722_v19  ;;  %v4780_v14 = vsel %vm1015_vm2, %v8201_v56, 0.0 }
 0x438   : > { %v4706_v29 = vpop.f32.mrf.mxu0  ;;  %v4744_v37 = vld [vmem:[#allocation8 + $0x28] sm:$0xff]  ;;  %v4781_v9 = vadd.f32 %v4780_v14, %v4779_v8  ;;  %v5402_v14 = vld [vmem:[%s8300_s12] ss:$0 sm:$0xff] }
 0x439   : > { %4738 = vst.msk [vmem:[#allocation8 + $0x38] sm:$0xff] %vm1015_vm2, %v4730_v57  ;;  %v4729_v6 = vadd.f32 %v4721_v20, %v4706_v29  ;;  %v4759_v62 = vmul.f32 %v5388_v25, %v4744_v37  ;;  %v4962_v20 = vlaneseq }
 0x43a   : > { %v4743_v58 = vld [vmem:[#allocation8 + $0x20] sm:$0xff]  ;;  %v4783_v27 = vadd.f32 %v4782_v26, %v4781_v9 }
 0x43b   : > { %4737 = vst.msk [vmem:[#allocation8 + $0x30] sm:$0xff] %vm1015_vm2, %v4729_v6  ;;  %v4758_v43 = vmul.f32 %v5388_v25, %v4743_v58  ;;  %v8219_v60 = vadd.f32 %v5389_v44, %v4759_v62  ;;  %v4963_v50 = vshrl.u32 %v4962_v20, 7 }
 0x43d   : > { %v8213_v2 = vadd.f32 %v5389_v44, %v4758_v43  ;;  %v4786_v39 = vsel %vm1015_vm2, %v8219_v60, 0.0  ;;  %v4964_v8 = vsub.s32 0, %v4963_v50  ;;  %v5403_v43 = vld [vmem:[%s8301_s13] ss:$0 sm:$0xff] }
 0x43f   : > { %v4784_v18 = vsel %vm1015_vm2, %v8213_v2, 0.0 }
 0x440   : > { %v4746_v45 = vld [vmem:[#allocation8 + $0x38] sm:$0xff]  ;;  %v4785_v17 = vadd.f32 %v4784_v18, %v4783_v27 }
 0x441   : > { %v4761_v12 = vmul.f32 %v5388_v25, %v4746_v45 }
 0x442   : > { %v4745_v21 = vld [vmem:[#allocation8 + $0x30] sm:$0xff]  ;;  %v4787_v52 = vadd.f32 %v4786_v39, %v4785_v17 }
 0x443   : > { %v4760_v53 = vmul.f32 %v5388_v25, %v4745_v21  ;;  %v8223_v4 = vadd.f32 %v5389_v44, %v4761_v12  ;;  %v4974_v25 = vld [vmem:[%s8299_s11] sm:$0xff] }
 0x445   : > { %v8221_v35 = vadd.f32 %v5389_v44, %v4760_v53  ;;  %v4790_v5 = vsel %vm1015_vm2, %v8223_v4, 0.0 }
 0x447   : > { %v4788_v59 = vsel %vm1015_vm2, %v8221_v35, 0.0 }
 0x448   : > { %v4789_v36 = vadd.f32 %v4788_v59, %v4787_v52 }
 0x44a   : > { %v4791_v32 = vadd.f32 %v4790_v5, %v4789_v36 }
 0x44c   : > { %v4792_v28 = vrot.slane %v4791_v32, 4 }
 0x44e   : > { %v4793_v51 = vadd.f32 %v4792_v28, %v4791_v32 }
 0x450   : > { %v4794_v1 = vrot.slane %v4793_v51, 2 }
 0x452   : > { %v4795_v55 = vadd.f32 %v4794_v1, %v4793_v51 }
 0x454   : > { %v4796_v46 = vrot.slane %v4795_v55, 1 }
 0x456   : > { %v4797_v15 = vadd.f32 %v4796_v46, %v4795_v55 }
 0x458   : > { %v4798_v10 = vmul.f32 0.015625, %v4797_v15 }
 0x45a   : > { %5951 = vmatmul.mubr.msk.f32.vlgmr.msra.gmra.mxu1 %vm1015_vm2, %v4798_v10 }
 0x45b   : > { %5954 = vmatpush3.msk.msra.mxu1 %vm4882_vm6, %v4877_v0  ;;  %5955 = vmatprep.mubr.msk.f32.mxu1 %vm6044_vm3, %v8331_v30  ;;  %v6024_v30 = vld [vmem:[%s6198_s22] sm:$0xff] }
 0x45c   : > { %5958 = vmatprep.subr.mxu1 %v4975_v11 }
 0x51a   : > { %v4872_v40 = vpop.f32.mrf.mxu1 }
 0x51b   : > { %v4876_v63 = vmax.f32 %v4872_v40, 0.0 }
 0x51c   : > { %v5952_v34 = vpop.f32.mrf.mxu1 }
 0x51d   : > { %5956 = vmatmul.mubr.msk.f32.vlgmr.msra.gmra.mxu1 %vm4878_vm13, %v4876_v63 }
 0x51e   : > { %5959 = vmatpush3.msra.mxu1 %v4975_v11  ;;  %5962 = vmatprep.mubr.msk.f32.mxu1 %vm599_vm0, %v6024_v30 }
 0x51f   : > { %5960 = vmatprep.subr.mxu1 %v4974_v25 }
 0x520   : > { %5961 = vmatpush3.msra.mxu1 %v4974_v25 }
 0x521   : > { %5963 = vmatmul.mubr.msk.f32.vlgmr.msra.gmra.mxu1 %vm599_vm0, %v6025_v13 }
 0x522   : > { %5965 = vmatprep.mubr.msk.f32.mxu1 %vm599_vm0, %v6026_v61 }
 0x525   : > { %5966 = vmatmul.mubr.msk.f32.gmra.mxu1 %vm599_vm0, %v6027_v31 }
 0x526   : > { %5968 = vmatprep.mubr.msk.f32.mxu1 %vm599_vm0, %v6028_v41 }
 0x529   : > { %5969 = vmatmul.mubr.msk.f32.gmra.mxu1 %vm599_vm0, %v6029_v49 }
 0x52a   : > { %5971 = vmatprep.mubr.msk.f32.mxu1 %vm599_vm0, %v6030_v33 }
 0x52d   : > { %5972 = vmatmul.mubr.msk.f32.gmra.mxu1 %vm599_vm0, %v6031_v7 }
 0x5dd   : > { %v4952_v22 = vpop.f32.mrf.mxu1 }
 0x5de   : > { %v5393_v38 = vmul.f32 -1.442695, %v4952_v22 }
 0x5df   : > { %v5957_v44 = vpop.f32.mrf.mxu1 }
 0x5e0   : > { %5987 = vpow2.f32 %v5393_v38 }
 0x5e1   : > { %v5964_v47 = vpop.f32.mrf.mxu1 }
 0x5e2   : > { %v5113_v37 = vmul.f32 %v5964_v47, %v5402_v14 }
 0x5e3   : > { %v5066_v48 = vpop.f32.mrf.mxu1 }
 0x5e4   : > { %v5112_v9 = vmul.f32 %v5402_v14, %v5066_v48  ;;  %v5128_v17 = vadd.f32 %v5403_v43, %v5113_v37 }
 0x5e5   : > { %v5967_v24 = vpop.f32.mrf.mxu1 }
 0x5e6   : > { %v5115_v62 = vmul.f32 %v5967_v24, %v5402_v14  ;;  %v5127_v39 = vadd.f32 %v5403_v43, %v5112_v9 }
 0x5e7   : > { %v5076_v19 = vpop.f32.mrf.mxu1 }
 0x5e8   : > { %v5114_v26 = vmul.f32 %v5402_v14, %v5076_v19  ;;  %v5130_v52 = vadd.f32 %v5403_v43, %v5115_v62 }
 0x5e9   : > { %v5970_v57 = vpop.f32.mrf.mxu1 }
 0x5ea   : > { %v5117_v18 = vmul.f32 %v5970_v57, %v5402_v14  ;;  %v5129_v59 = vadd.f32 %v5403_v43, %v5114_v26 }
 0x5eb   : > { %v5086_v29 = vpop.f32.mrf.mxu1 }
 0x5ec   : > { %v5116_v45 = vmul.f32 %v5402_v14, %v5086_v29  ;;  %v5132_v36 = vadd.f32 %v5403_v43, %v5117_v18 }
 0x5ed   : > { %v5988_v42 = vpop.eup %5987  ;;  %v5973_v6 = vpop.f32.mrf.mxu1 }
 0x5ee   : > { %v4959_v3 = vadd.f32 1.0, %v5988_v42  ;;  %v5119_v27 = vmul.f32 %v5973_v6, %v5402_v14  ;;  %v5131_v5 = vadd.f32 %v5403_v43, %v5116_v45 }
 0x5ef   : > { %v5096_v58 = vpop.f32.mrf.mxu1 }
 0x5f0   : > { %5989 = vrcp.f32 %v4959_v3  ;;  %v5118_v12 = vmul.f32 %v5402_v14, %v5096_v58  ;;  %v5134_v32 = vadd.f32 %v5403_v43, %v5119_v27 }
 0x5f2   : > { %v5133_v28 = vadd.f32 %v5403_v43, %v5118_v12 }
 0x5fd   : > { %v5990_v21 = vpop.eup %5989 }
 0x5fe   : > { %v4965_v53 = vrot.slane %v5990_v21, %v4964_v8 }
 0x600   : > { %v4967_v51 = vmul.f32 %v4965_v53, %v8199_v54  ;;  %v4966_v1 = vmul.f32 %v4965_v53, %v8197_v16  ;;  %v4969_v55 = vmul.f32 %v4965_v53, %v8211_v23  ;;  %v4968_v46 = vmul.f32 %v4965_v53, %v8201_v56 }
 0x601   : > { %v4971_v15 = vmul.f32 %v4965_v53, %v8219_v60  ;;  %v4970_v10 = vmul.f32 %v4965_v53, %v8213_v2  ;;  %v4973_v0 = vmul.f32 %v4965_v53, %v8223_v4  ;;  %v4972_v11 = vmul.f32 %v4965_v53, %v8221_v35 }
 0x602   : > { %v5136_v40 = vadd.f32 %v5128_v17, %v4967_v51  ;;  %v5135_v54 = vadd.f32 %v5127_v39, %v4966_v1  ;;  %v5138_v63 = vadd.f32 %v5130_v52, %v4969_v55  ;;  %v5137_v16 = vadd.f32 %v5129_v59, %v4968_v46 }
 0x603   : > { %v5140_v34 = vadd.f32 %v5132_v36, %v4971_v15  ;;  %v5139_v23 = vadd.f32 %v5131_v5, %v4970_v10  ;;  %v5142_v25 = vadd.f32 %v5134_v32, %v4973_v0  ;;  %v5141_v56 = vadd.f32 %v5133_v28, %v4972_v11 }
 0x604   : > { %5144 = vst.msk [vmem:[%s487_s23 + $0x8] sm:$0xff] %vm1015_vm2, %v5136_v40  ;;  %5143 = vst.msk [vmem:[%s487_s23] sm:$0xff] %vm1015_vm2, %v5135_v54 }
 0x605   : > { %5146 = vst.msk [vmem:[%s487_s23 + $0x18] sm:$0xff] %vm1015_vm2, %v5138_v63  ;;  %5145 = vst.msk [vmem:[%s487_s23 + $0x10] sm:$0xff] %vm1015_vm2, %v5137_v16 }
 0x606   : > { %5148 = vst.msk [vmem:[%s487_s23 + $0x28] sm:$0xff] %vm1015_vm2, %v5140_v34  ;;  %5147 = vst.msk [vmem:[%s487_s23 + $0x20] sm:$0xff] %vm1015_vm2, %v5139_v23 }
 0x607   : > { %5150 = vst.msk [vmem:[%s487_s23 + $0x38] sm:$0xff] %vm1015_vm2, %v5142_v25  ;;  %5149 = vst.msk [vmem:[%s487_s23 + $0x30] sm:$0xff] %vm1015_vm2, %v5141_v56 }
 0x608 PF: > { %s24_s29 = sadd.s32 1, %s6038_s29  }
 0x609   : > { %p21_p4 = scmp.ge.s32.totalorder %s24_s29, 4  }
 0x60b   :  { %23 = sbr.rel (!%p21_p4) target bundleno = 1 (0x1), region = 125 }

</bundles_post_ra>
